<compile_context>
chip_gen: v6e
topology: v6e:2x2x1
jax: 0.10.0
libtpu: 0.0.40
codegen_flags: <defaults>
</compile_context>

<pallas_src>
import jax
import jax.numpy as jnp
import numpy as np
from jax import lax
from jax.experimental import pallas as pl
from jax.experimental.pallas import tpu as pltpu

# Small, deterministic model configuration (consistent with the module)
HIDDEN_SIZE = 32
EMBED_SIZE = 16
NUM_PITCH = 24     # len(idx2pitch)
NUM_DUR = 12       # len(idx2dur)
NUM_LAYERS = 3
BATCH = 8          # >= 8 fills all sublanes of each [B, 128] vreg (perf review)
SEQ_LEN = 8

GATE_BLOCK = 128                       # lane-aligned gate block width
NUM_GATE_BLOCKS = 4                    # [ r | z | n_x | n_h ]
GATE_WIDTH = NUM_GATE_BLOCKS * GATE_BLOCK
H_PAD = 128                            # hidden state padded to one lane group
OUT_PAD = 128                          # lane-dense final output width


# ---------------------------------------------------------------------------
# Kernel
# ---------------------------------------------------------------------------
def _make_kernel(T, B):
    GB = GATE_BLOCK

    def kernel(gi0_ref, whh0_ref,
               wih1_ref, b1_ref, whh1_ref,
               wih2_ref, b2_ref, whh2_ref,
               wf_ref, bf_ref,
               out_ref, hist_ref, gi_ref):
        # gi0_ref : [T*B, 4*GB] f32   layer-0 input projection (+ all l0 biases)
        # whh*    : [H_PAD, 4*GB] bf16  hidden->gates (gate-block-h layout)
        # wih*    : [H_PAD, 4*GB] bf16  input->gates  (gate-block-x layout)
        # b1/b2   : [1, 4*GB] f32    folded b_ih + b_hh for layers 1/2
        # wf/bf   : [H_PAD, OUT_PAD] bf16 / [1, OUT_PAD] f32 (lane-dense final)
        # out_ref : [T*B, OUT_PAD] f32   combined pitch+dur probability slab
        # hist_ref: [T*B, H_PAD]  f32 scratch (per-layer hidden history)
        # gi_ref  : [T*B, 4*GB]   f32 scratch (next layer's input projection)

        def gru_gates(g, h_prev):
            # r and z share ONE fused sigmoid over the first two lane blocks;
            # the two 128-lane views below are pure vreg slices (no relayout).
            rz = jax.nn.sigmoid(g[:, :2 * GB])
            r = rz[:, :GB]
            z = rz[:, GB:]
            n = jnp.tanh(g[:, 2 * GB:3 * GB] + r * g[:, 3 * GB:])
            # Pad lanes: g is 0 there -> n is 0 -> h pad lanes stay exactly 0.
            return (1.0 - z) * n + z * h_prev

        def run_layer(gi_src_ref, whh_ref):
            # Serial recurrence: only one K=128 bf16 dot + gate math per step.
            # Weight ref is indexed inside the loop (short live range, no
            # whole-weight vreg hoist).
            h = jnp.zeros((B, H_PAD), jnp.float32)
            for t in range(T):                        # fully unrolled, static T
                rows = slice(t * B, (t + 1) * B)
                gh = jnp.dot(h.astype(jnp.bfloat16), whh_ref[...],
                             preferred_element_type=jnp.float32)
                h = gru_gates(gi_src_ref[rows, :] + gh, h)
                hist_ref[rows, :] = h                 # off the dependency chain

        def project(wih_ref, b_ref):
            # Off-chain batched input projection for the next layer:
            # one [T*B, 128] x [128, 512] MXU matmul.
            gi_ref[...] = jnp.dot(hist_ref[...].astype(jnp.bfloat16), wih_ref[...],
                                  preferred_element_type=jnp.float32) + b_ref[...]

        # Layer 0 (input projection precomputed in the wrapper).
        run_layer(gi0_ref, whh0_ref)
        # Layer 1
        project(wih1_ref, b1_ref)
        run_layer(gi_ref, whh1_ref)
        # Layer 2
        project(wih2_ref, b2_ref)
        run_layer(gi_ref, whh2_ref)

        # ---- Epilogue: batched final linear + segment-wise softmax ----------
        logits = jnp.dot(hist_ref[...].astype(jnp.bfloat16), wf_ref[...],
                         preferred_element_type=jnp.float32) + bf_ref[...]   # [T*B, 128]

        lane = lax.broadcasted_iota(jnp.int32, (1, OUT_PAD), 1)
        is_pitch = lane < NUM_PITCH
        is_dur = (lane >= NUM_PITCH) & (lane < NUM_PITCH + NUM_DUR)
        neg = jnp.float32(-1e30)
        m = jnp.where(
            is_pitch,
            jnp.max(jnp.where(is_pitch, logits, neg), axis=-1, keepdims=True),
            jnp.max(jnp.where(is_dur, logits, neg), axis=-1, keepdims=True))
        e = jnp.where(is_pitch | is_dur, jnp.exp(logits - m), 0.0)
        denom = jnp.where(
            is_pitch,
            jnp.sum(jnp.where(is_pitch, e, 0.0), axis=-1, keepdims=True),
            jnp.sum(jnp.where(is_dur, e, 0.0), axis=-1, keepdims=True))
        # Exact divide: the epilogue is off the latency chain; the previous
        # approximate reciprocal broke the probability sum-to-1 check.
        out_ref[...] = e / denom

    return kernel


# ---------------------------------------------------------------------------
# Host-side weight repacking into the lane-aligned gate layout
# ---------------------------------------------------------------------------
def _gate_cols_x(w_t):
    """[in, 3H] -> [in, 4*GB] with blocks [ W_r | W_z | W_n | 0 ] (input path)."""
    H = HIDDEN_SIZE
    pad = lambda b: jnp.pad(b, ((0, 0), (0, GATE_BLOCK - H)))
    zero = jnp.zeros((w_t.shape[0], GATE_BLOCK), jnp.float32)
    return jnp.concatenate(
        [pad(w_t[:, :H]), pad(w_t[:, H:2 * H]), pad(w_t[:, 2 * H:]), zero], axis=1)


def _gate_cols_h(w_t):
    """[in, 3H] -> [in, 4*GB] with blocks [ W_r | W_z | 0 | W_n ] (hidden path)."""
    H = HIDDEN_SIZE
    pad = lambda b: jnp.pad(b, ((0, 0), (0, GATE_BLOCK - H)))
    zero = jnp.zeros((w_t.shape[0], GATE_BLOCK), jnp.float32)
    return jnp.concatenate(
        [pad(w_t[:, :H]), pad(w_t[:, H:2 * H]), zero, pad(w_t[:, 2 * H:])], axis=1)


def _gate_bias_x(b):
    H = HIDDEN_SIZE
    pad = lambda v: jnp.pad(v, (0, GATE_BLOCK - H))
    zero = jnp.zeros((GATE_BLOCK,), jnp.float32)
    return jnp.concatenate([pad(b[:H]), pad(b[H:2 * H]), pad(b[2 * H:]), zero])[None, :]


def _gate_bias_h(b):
    H = HIDDEN_SIZE
    pad = lambda v: jnp.pad(v, (0, GATE_BLOCK - H))
    zero = jnp.zeros((GATE_BLOCK,), jnp.float32)
    return jnp.concatenate([pad(b[:H]), pad(b[H:2 * H]), zero, pad(b[2 * H:])])[None, :]


def _pad_rows(w, rows):
    return jnp.pad(w, ((0, rows - w.shape[0]), (0, 0)))


# ---------------------------------------------------------------------------
# Parameter init (matches the module's parameter shapes)
# ---------------------------------------------------------------------------
def init_params(key):
    keys = jax.random.split(key, 16)
    k = 1.0 / np.sqrt(HIDDEN_SIZE)
    params = {
        'pitch_emb': jax.random.normal(keys[0], (NUM_PITCH, EMBED_SIZE), jnp.float32),
        'dur_emb': jax.random.normal(keys[1], (NUM_DUR, EMBED_SIZE), jnp.float32),
    }
    in_sizes = [2 * EMBED_SIZE, HIDDEN_SIZE, HIDDEN_SIZE]
    for l in range(NUM_LAYERS):
        params[f'w_ih_l{l}'] = jax.random.uniform(
            keys[2 + 4 * l], (3 * HIDDEN_SIZE, in_sizes[l]), jnp.float32, -k, k)
        params[f'w_hh_l{l}'] = jax.random.uniform(
            keys[3 + 4 * l], (3 * HIDDEN_SIZE, HIDDEN_SIZE), jnp.float32, -k, k)
        params[f'b_ih_l{l}'] = jax.random.uniform(
            keys[4 + 4 * l], (3 * HIDDEN_SIZE,), jnp.float32, -k, k)
        params[f'b_hh_l{l}'] = jax.random.uniform(
            keys[5 + 4 * l], (3 * HIDDEN_SIZE,), jnp.float32, -k, k)
    kf = 1.0 / np.sqrt(HIDDEN_SIZE)
    params['w_final'] = jax.random.uniform(
        keys[14], (NUM_PITCH + NUM_DUR, HIDDEN_SIZE), jnp.float32, -kf, kf)
    params['b_final'] = jax.random.uniform(
        keys[15], (NUM_PITCH + NUM_DUR,), jnp.float32, -kf, kf)
    return params


# ---------------------------------------------------------------------------
# Forward (wrapper)
# ---------------------------------------------------------------------------
@jax.jit
def melody_lm_forward(input_seq, params):
    # input_seq: int32 [B, T, 2]  (pitch_idx, dur_idx)
    pitch_e = jnp.take(params['pitch_emb'], input_seq[:, :, 0], axis=0)   # [B, T, E]
    dur_e = jnp.take(params['dur_emb'], input_seq[:, :, 1], axis=0)       # [B, T, E]
    x = jnp.concatenate([pitch_e, dur_e], axis=-1)                        # [B, T, 2E]
    B, T = input_seq.shape[0], input_seq.shape[1]
    x_tb = jnp.transpose(x, (1, 0, 2)).reshape(T * B, 2 * EMBED_SIZE)     # [T*B, 2E]
    x_tb = x_tb.astype(jnp.float32)

    # Layer-0 input projection for ALL timesteps (one batched matmul, hoisted
    # out of the recurrence; b_ih_l0 + b_hh_l0 fully folded in -- the n-gate
    # biases land in their own n_x / n_h blocks, preserving GRU semantics).
    w0x = _gate_cols_x(params['w_ih_l0'].T)                               # [2E, 4*GB]
    b0 = _gate_bias_x(params['b_ih_l0']) + _gate_bias_h(params['b_hh_l0'])
    gi0 = (x_tb @ w0x + b0).astype(jnp.float32)                           # [T*B, 4*GB]

    # bf16 weights (MXU-native); gate biases for layers 1/2 folded into the
    # off-chain input projection bias.
    whh, wih, bias = [], [], []
    for l in range(NUM_LAYERS):
        whh.append(_pad_rows(_gate_cols_h(params[f'w_hh_l{l}'].T),
                             H_PAD).astype(jnp.bfloat16))                 # [H_PAD, 4*GB]
        if l > 0:
            wih.append(_pad_rows(_gate_cols_x(params[f'w_ih_l{l}'].T),
                                 H_PAD).astype(jnp.bfloat16))             # [H_PAD, 4*GB]
            bias.append(_gate_bias_x(params[f'b_ih_l{l}']) +
                        _gate_bias_h(params[f'b_hh_l{l}']))               # [1, 4*GB]

    # Lane-dense final projection (padded to 128 output lanes).
    PD = NUM_PITCH + NUM_DUR
    wf = jnp.pad(params['w_final'].T,
                 ((0, H_PAD - HIDDEN_SIZE), (0, OUT_PAD - PD))).astype(jnp.bfloat16)
    bfin = jnp.pad(params['b_final'], (0, OUT_PAD - PD))[None, :].astype(jnp.float32)

    vmem = lambda: pl.BlockSpec(memory_space=pltpu.MemorySpace.VMEM)
    out_flat = pl.pallas_call(
        _make_kernel(T, B),
        out_shape=jax.ShapeDtypeStruct((T * B, OUT_PAD), jnp.float32),
        in_specs=[vmem() for _ in range(10)],
        out_specs=vmem(),
        scratch_shapes=[pltpu.VMEM((T * B, H_PAD), jnp.float32),
                        pltpu.VMEM((T * B, GATE_WIDTH), jnp.float32)],
    )(gi0, whh[0], wih[0], bias[0], whh[1], wih[1], bias[1], whh[2], wf, bfin)

    out = jnp.transpose(out_flat.reshape(T, B, OUT_PAD), (1, 0, 2))       # [B, T, 128]
    pitch_dist = out[:, :, :NUM_PITCH]                                    # [B, T, num_pitch]
    dur_dist = out[:, :, NUM_PITCH:PD]                                    # [B, T, num_dur]
    return pitch_dist, dur_dist


# ---------------------------------------------------------------------------
# Pure-JAX reference reproducing the PyTorch forward semantics
# ---------------------------------------------------------------------------
def reference_forward(input_seq, params):
    pitch_e = jnp.take(params['pitch_emb'], input_seq[:, :, 0], axis=0)
    dur_e = jnp.take(params['dur_emb'], input_seq[:, :, 1], axis=0)
    x = jnp.concatenate([pitch_e, dur_e], axis=-1)
    B, T, _ = x.shape
    hs = [jnp.zeros((B, HIDDEN_SIZE), jnp.float32) for _ in range(NUM_LAYERS)]
    pitch_list, dur_list = [], []
    for t in range(T):
        inp = x[:, t]
        for l in range(NUM_LAYERS):
            gi = inp @ params[f'w_ih_l{l}'].T + params[f'b_ih_l{l}']
            gh = hs[l] @ params[f'w_hh_l{l}'].T + params[f'b_hh_l{l}']
            i_r, i_z, i_n = jnp.split(gi, 3, axis=-1)
            h_r, h_z, h_n = jnp.split(gh, 3, axis=-1)
            r = jax.nn.sigmoid(i_r + h_r)
            z = jax.nn.sigmoid(i_z + h_z)
            n = jnp.tanh(i_n + r * h_n)
            hs[l] = (1.0 - z) * n + z * hs[l]
            inp = hs[l]
        logits = inp @ params['w_final'].T + params['b_final']
        pitch_list.append(jax.nn.softmax(logits[:, :NUM_PITCH], axis=-1))
        dur_list.append(jax.nn.softmax(logits[:, NUM_PITCH:], axis=-1))
    return jnp.stack(pitch_list, axis=1), jnp.stack(dur_list, axis=1)


if __name__ == "__main__":
    key = jax.random.PRNGKey(0)
    pkey, ik1, ik2 = jax.random.split(key, 3)
    params = init_params(pkey)

    pitch_idx = jax.random.randint(ik1, (BATCH, SEQ_LEN), 0, NUM_PITCH)
    dur_idx = jax.random.randint(ik2, (BATCH, SEQ_LEN), 0, NUM_DUR)
    input_seq = jnp.stack([pitch_idx, dur_idx], axis=-1).astype(jnp.int32)  # [B, T, 2]

    pitch_dist, dur_dist = melody_lm_forward(input_seq, params)
    jax.block_until_ready((pitch_dist, dur_dist))

    ref_pitch, ref_dur = reference_forward(input_seq, params)

    assert pitch_dist.shape == (BATCH, SEQ_LEN, NUM_PITCH)
    assert dur_dist.shape == (BATCH, SEQ_LEN, NUM_DUR)
    assert np.all(np.isfinite(np.asarray(pitch_dist)))
    assert np.all(np.isfinite(np.asarray(dur_dist)))
    # Exact softmax divide -> rows sum to 1 up to f32 rounding.
    assert np.allclose(np.asarray(pitch_dist).sum(-1), 1.0, atol=1e-4)
    assert np.allclose(np.asarray(dur_dist).sum(-1), 1.0, atol=1e-4)
    # Loose tolerance: kernel matmuls use bf16 weights with f32 accumulation.
    assert np.allclose(np.asarray(pitch_dist), np.asarray(ref_pitch), atol=5e-2)
    assert np.allclose(np.asarray(dur_dist), np.asarray(ref_dur), atol=5e-2)

    print("KERNEL_OK")
</pallas_src>

<mosaic_0001>
module attributes {stable_mosaic.version = 11 : i64} {
  func.func @kernel(%arg0: memref<64x512xf32, #tpu.memory_space<vmem>>, %arg1: memref<128x512xbf16, #tpu.memory_space<vmem>>, %arg2: memref<128x512xbf16, #tpu.memory_space<vmem>>, %arg3: memref<1x512xf32, #tpu.memory_space<vmem>>, %arg4: memref<128x512xbf16, #tpu.memory_space<vmem>>, %arg5: memref<128x512xbf16, #tpu.memory_space<vmem>>, %arg6: memref<1x512xf32, #tpu.memory_space<vmem>>, %arg7: memref<128x512xbf16, #tpu.memory_space<vmem>>, %arg8: memref<128x128xbf16, #tpu.memory_space<vmem>>, %arg9: memref<1x128xf32, #tpu.memory_space<vmem>>, %arg10: memref<64x128xf32, #tpu.memory_space<vmem>>, %arg11: memref<64x128xf32, #tpu.memory_space<vmem>>, %arg12: memref<64x512xf32, #tpu.memory_space<vmem>>) attributes {dimension_semantics = [], scalar_prefetch = 0 : i64, scratch_operands = 2 : i64, tpu.core_type = #tpu.core_type<tc>} {
    %cst = arith.constant 0.000000e+00 : f32
    %0 = vector.broadcast %cst : f32 to vector<8x128xf32>
    %1 = arith.truncf %0 : vector<8x128xf32> to vector<8x128xbf16>
    %c0 = arith.constant 0 : index
    %c0_0 = arith.constant 0 : index
    %2 = vector.load %arg1[%c0, %c0_0] : memref<128x512xbf16, #tpu.memory_space<vmem>>, vector<128x512xbf16>
    %cst_1 = arith.constant dense<0.000000e+00> : vector<8x512xf32>
    %3 = tpu.matmul %1, %2, %cst_1 {dimension_numbers = #tpu.dot_dimension_numbers<[1], [0], [0], [1], [0, 0, 1, 1], [], []>} : vector<8x128xbf16>, vector<128x512xbf16>, vector<8x512xf32> -> vector<8x512xf32>
    %c0_2 = arith.constant 0 : index
    %c0_3 = arith.constant 0 : index
    %4 = vector.load %arg0[%c0_2, %c0_3] : memref<64x512xf32, #tpu.memory_space<vmem>>, vector<8x512xf32>
    %5 = arith.addf %4, %3 : vector<8x512xf32>
    %6 = vector.extract_strided_slice %5 {offsets = [0, 0], sizes = [8, 256], strides = [1, 1]} : vector<8x512xf32> to vector<8x256xf32>
    %7 = arith.negf %6 : vector<8x256xf32>
    %8 = math.exp %7 : vector<8x256xf32>
    %cst_4 = arith.constant 1.000000e+00 : f32
    %9 = vector.broadcast %cst_4 : f32 to vector<8x256xf32>
    %10 = arith.addf %9, %8 : vector<8x256xf32>
    %11 = arith.divf %9, %10 : vector<8x256xf32>
    %12 = vector.extract_strided_slice %11 {offsets = [0, 0], sizes = [8, 128], strides = [1, 1]} : vector<8x256xf32> to vector<8x128xf32>
    %13 = vector.extract_strided_slice %11 {offsets = [0, 128], sizes = [8, 128], strides = [1, 1]} : vector<8x256xf32> to vector<8x128xf32>
    %14 = vector.extract_strided_slice %5 {offsets = [0, 256], sizes = [8, 128], strides = [1, 1]} : vector<8x512xf32> to vector<8x128xf32>
    %15 = vector.extract_strided_slice %5 {offsets = [0, 384], sizes = [8, 128], strides = [1, 1]} : vector<8x512xf32> to vector<8x128xf32>
    %16 = arith.mulf %12, %15 : vector<8x128xf32>
    %17 = arith.addf %14, %16 : vector<8x128xf32>
    %18 = math.tanh %17 : vector<8x128xf32>
    %cst_5 = arith.constant 1.000000e+00 : f32
    %19 = vector.broadcast %cst_5 : f32 to vector<8x128xf32>
    %20 = arith.subf %19, %13 : vector<8x128xf32>
    %21 = arith.mulf %20, %18 : vector<8x128xf32>
    %22 = arith.mulf %13, %0 : vector<8x128xf32>
    %23 = arith.addf %21, %22 : vector<8x128xf32>
    %c0_6 = arith.constant 0 : index
    %c0_7 = arith.constant 0 : index
    %24 = vector.load %arg11[%c0_6, %c0_7] : memref<64x128xf32, #tpu.memory_space<vmem>>, vector<8x128xf32>
    tpu.vector_store %arg11[%c0_6, %c0_7], %23 {strides = array<i32>} : memref<64x128xf32, #tpu.memory_space<vmem>>, vector<8x128xf32>,
    %25 = arith.truncf %23 : vector<8x128xf32> to vector<8x128xbf16>
    %c0_8 = arith.constant 0 : index
    %c0_9 = arith.constant 0 : index
    %26 = vector.load %arg1[%c0_8, %c0_9] : memref<128x512xbf16, #tpu.memory_space<vmem>>, vector<128x512xbf16>
    %cst_10 = arith.constant dense<0.000000e+00> : vector<8x512xf32>
    %27 = tpu.matmul %25, %26, %cst_10 {dimension_numbers = #tpu.dot_dimension_numbers<[1], [0], [0], [1], [0, 0, 1, 1], [], []>} : vector<8x128xbf16>, vector<128x512xbf16>, vector<8x512xf32> -> vector<8x512xf32>
    %c8 = arith.constant 8 : index
    %c0_11 = arith.constant 0 : index
    %28 = vector.load %arg0[%c8, %c0_11] : memref<64x512xf32, #tpu.memory_space<vmem>>, vector<8x512xf32>
    %29 = arith.addf %28, %27 : vector<8x512xf32>
    %30 = vector.extract_strided_slice %29 {offsets = [0, 0], sizes = [8, 256], strides = [1, 1]} : vector<8x512xf32> to vector<8x256xf32>
    %31 = arith.negf %30 : vector<8x256xf32>
    %32 = math.exp %31 : vector<8x256xf32>
    %cst_12 = arith.constant 1.000000e+00 : f32
    %33 = vector.broadcast %cst_12 : f32 to vector<8x256xf32>
    %34 = arith.addf %33, %32 : vector<8x256xf32>
    %35 = arith.divf %33, %34 : vector<8x256xf32>
    %36 = vector.extract_strided_slice %35 {offsets = [0, 0], sizes = [8, 128], strides = [1, 1]} : vector<8x256xf32> to vector<8x128xf32>
    %37 = vector.extract_strided_slice %35 {offsets = [0, 128], sizes = [8, 128], strides = [1, 1]} : vector<8x256xf32> to vector<8x128xf32>
    %38 = vector.extract_strided_slice %29 {offsets = [0, 256], sizes = [8, 128], strides = [1, 1]} : vector<8x512xf32> to vector<8x128xf32>
    %39 = vector.extract_strided_slice %29 {offsets = [0, 384], sizes = [8, 128], strides = [1, 1]} : vector<8x512xf32> to vector<8x128xf32>
    %40 = arith.mulf %36, %39 : vector<8x128xf32>
    %41 = arith.addf %38, %40 : vector<8x128xf32>
    %42 = math.tanh %41 : vector<8x128xf32>
    %cst_13 = arith.constant 1.000000e+00 : f32
    %43 = vector.broadcast %cst_13 : f32 to vector<8x128xf32>
    %44 = arith.subf %43, %37 : vector<8x128xf32>
    %45 = arith.mulf %44, %42 : vector<8x128xf32>
    %46 = arith.mulf %37, %23 : vector<8x128xf32>
    %47 = arith.addf %45, %46 : vector<8x128xf32>
    %c8_14 = arith.constant 8 : index
    %c0_15 = arith.constant 0 : index
    %48 = vector.load %arg11[%c8_14, %c0_15] : memref<64x128xf32, #tpu.memory_space<vmem>>, vector<8x128xf32>
    tpu.vector_store %arg11[%c8_14, %c0_15], %47 {strides = array<i32>} : memref<64x128xf32, #tpu.memory_space<vmem>>, vector<8x128xf32>,
    %49 = arith.truncf %47 : vector<8x128xf32> to vector<8x128xbf16>
    %c0_16 = arith.constant 0 : index
    %c0_17 = arith.constant 0 : index
    %50 = vector.load %arg1[%c0_16, %c0_17] : memref<128x512xbf16, #tpu.memory_space<vmem>>, vector<128x512xbf16>
    %cst_18 = arith.constant dense<0.000000e+00> : vector<8x512xf32>
    %51 = tpu.matmul %49, %50, %cst_18 {dimension_numbers = #tpu.dot_dimension_numbers<[1], [0], [0], [1], [0, 0, 1, 1], [], []>} : vector<8x128xbf16>, vector<128x512xbf16>, vector<8x512xf32> -> vector<8x512xf32>
    %c16 = arith.constant 16 : index
    %c0_19 = arith.constant 0 : index
    %52 = vector.load %arg0[%c16, %c0_19] : memref<64x512xf32, #tpu.memory_space<vmem>>, vector<8x512xf32>
    %53 = arith.addf %52, %51 : vector<8x512xf32>
    %54 = vector.extract_strided_slice %53 {offsets = [0, 0], sizes = [8, 256], strides = [1, 1]} : vector<8x512xf32> to vector<8x256xf32>
    %55 = arith.negf %54 : vector<8x256xf32>
    %56 = math.exp %55 : vector<8x256xf32>
    %cst_20 = arith.constant 1.000000e+00 : f32
    %57 = vector.broadcast %cst_20 : f32 to vector<8x256xf32>
    %58 = arith.addf %57, %56 : vector<8x256xf32>
    %59 = arith.divf %57, %58 : vector<8x256xf32>
    %60 = vector.extract_strided_slice %59 {offsets = [0, 0], sizes = [8, 128], strides = [1, 1]} : vector<8x256xf32> to vector<8x128xf32>
    %61 = vector.extract_strided_slice %59 {offsets = [0, 128], sizes = [8, 128], strides = [1, 1]} : vector<8x256xf32> to vector<8x128xf32>
    %62 = vector.extract_strided_slice %53 {offsets = [0, 256], sizes = [8, 128], strides = [1, 1]} : vector<8x512xf32> to vector<8x128xf32>
    %63 = vector.extract_strided_slice %53 {offsets = [0, 384], sizes = [8, 128], strides = [1, 1]} : vector<8x512xf32> to vector<8x128xf32>
    %64 = arith.mulf %60, %63 : vector<8x128xf32>
    %65 = arith.addf %62, %64 : vector<8x128xf32>
    %66 = math.tanh %65 : vector<8x128xf32>
    %cst_21 = arith.constant 1.000000e+00 : f32
    %67 = vector.broadcast %cst_21 : f32 to vector<8x128xf32>
    %68 = arith.subf %67, %61 : vector<8x128xf32>
    %69 = arith.mulf %68, %66 : vector<8x128xf32>
    %70 = arith.mulf %61, %47 : vector<8x128xf32>
    %71 = arith.addf %69, %70 : vector<8x128xf32>
    %c16_22 = arith.constant 16 : index
    %c0_23 = arith.constant 0 : index
    %72 = vector.load %arg11[%c16_22, %c0_23] : memref<64x128xf32, #tpu.memory_space<vmem>>, vector<8x128xf32>
    tpu.vector_store %arg11[%c16_22, %c0_23], %71 {strides = array<i32>} : memref<64x128xf32, #tpu.memory_space<vmem>>, vector<8x128xf32>,
    %73 = arith.truncf %71 : vector<8x128xf32> to vector<8x128xbf16>
    %c0_24 = arith.constant 0 : index
    %c0_25 = arith.constant 0 : index
    %74 = vector.load %arg1[%c0_24, %c0_25] : memref<128x512xbf16, #tpu.memory_space<vmem>>, vector<128x512xbf16>
    %cst_26 = arith.constant dense<0.000000e+00> : vector<8x512xf32>
    %75 = tpu.matmul %73, %74, %cst_26 {dimension_numbers = #tpu.dot_dimension_numbers<[1], [0], [0], [1], [0, 0, 1, 1], [], []>} : vector<8x128xbf16>, vector<128x512xbf16>, vector<8x512xf32> -> vector<8x512xf32>
    %c24 = arith.constant 24 : index
    %c0_27 = arith.constant 0 : index
    %76 = vector.load %arg0[%c24, %c0_27] : memref<64x512xf32, #tpu.memory_space<vmem>>, vector<8x512xf32>
    %77 = arith.addf %76, %75 : vector<8x512xf32>
    %78 = vector.extract_strided_slice %77 {offsets = [0, 0], sizes = [8, 256], strides = [1, 1]} : vector<8x512xf32> to vector<8x256xf32>
    %79 = arith.negf %78 : vector<8x256xf32>
    %80 = math.exp %79 : vector<8x256xf32>
    %cst_28 = arith.constant 1.000000e+00 : f32
    %81 = vector.broadcast %cst_28 : f32 to vector<8x256xf32>
    %82 = arith.addf %81, %80 : vector<8x256xf32>
    %83 = arith.divf %81, %82 : vector<8x256xf32>
    %84 = vector.extract_strided_slice %83 {offsets = [0, 0], sizes = [8, 128], strides = [1, 1]} : vector<8x256xf32> to vector<8x128xf32>
    %85 = vector.extract_strided_slice %83 {offsets = [0, 128], sizes = [8, 128], strides = [1, 1]} : vector<8x256xf32> to vector<8x128xf32>
    %86 = vector.extract_strided_slice %77 {offsets = [0, 256], sizes = [8, 128], strides = [1, 1]} : vector<8x512xf32> to vector<8x128xf32>
    %87 = vector.extract_strided_slice %77 {offsets = [0, 384], sizes = [8, 128], strides = [1, 1]} : vector<8x512xf32> to vector<8x128xf32>
    %88 = arith.mulf %84, %87 : vector<8x128xf32>
    %89 = arith.addf %86, %88 : vector<8x128xf32>
    %90 = math.tanh %89 : vector<8x128xf32>
    %cst_29 = arith.constant 1.000000e+00 : f32
    %91 = vector.broadcast %cst_29 : f32 to vector<8x128xf32>
    %92 = arith.subf %91, %85 : vector<8x128xf32>
    %93 = arith.mulf %92, %90 : vector<8x128xf32>
    %94 = arith.mulf %85, %71 : vector<8x128xf32>
    %95 = arith.addf %93, %94 : vector<8x128xf32>
    %c24_30 = arith.constant 24 : index
    %c0_31 = arith.constant 0 : index
    %96 = vector.load %arg11[%c24_30, %c0_31] : memref<64x128xf32, #tpu.memory_space<vmem>>, vector<8x128xf32>
    tpu.vector_store %arg11[%c24_30, %c0_31], %95 {strides = array<i32>} : memref<64x128xf32, #tpu.memory_space<vmem>>, vector<8x128xf32>,
    %97 = arith.truncf %95 : vector<8x128xf32> to vector<8x128xbf16>
    %c0_32 = arith.constant 0 : index
    %c0_33 = arith.constant 0 : index
    %98 = vector.load %arg1[%c0_32, %c0_33] : memref<128x512xbf16, #tpu.memory_space<vmem>>, vector<128x512xbf16>
    %cst_34 = arith.constant dense<0.000000e+00> : vector<8x512xf32>
    %99 = tpu.matmul %97, %98, %cst_34 {dimension_numbers = #tpu.dot_dimension_numbers<[1], [0], [0], [1], [0, 0, 1, 1], [], []>} : vector<8x128xbf16>, vector<128x512xbf16>, vector<8x512xf32> -> vector<8x512xf32>
    %c32 = arith.constant 32 : index
    %c0_35 = arith.constant 0 : index
    %100 = vector.load %arg0[%c32, %c0_35] : memref<64x512xf32, #tpu.memory_space<vmem>>, vector<8x512xf32>
    %101 = arith.addf %100, %99 : vector<8x512xf32>
    %102 = vector.extract_strided_slice %101 {offsets = [0, 0], sizes = [8, 256], strides = [1, 1]} : vector<8x512xf32> to vector<8x256xf32>
    %103 = arith.negf %102 : vector<8x256xf32>
    %104 = math.exp %103 : vector<8x256xf32>
    %cst_36 = arith.constant 1.000000e+00 : f32
    %105 = vector.broadcast %cst_36 : f32 to vector<8x256xf32>
    %106 = arith.addf %105, %104 : vector<8x256xf32>
    %107 = arith.divf %105, %106 : vector<8x256xf32>
    %108 = vector.extract_strided_slice %107 {offsets = [0, 0], sizes = [8, 128], strides = [1, 1]} : vector<8x256xf32> to vector<8x128xf32>
    %109 = vector.extract_strided_slice %107 {offsets = [0, 128], sizes = [8, 128], strides = [1, 1]} : vector<8x256xf32> to vector<8x128xf32>
    %110 = vector.extract_strided_slice %101 {offsets = [0, 256], sizes = [8, 128], strides = [1, 1]} : vector<8x512xf32> to vector<8x128xf32>
    %111 = vector.extract_strided_slice %101 {offsets = [0, 384], sizes = [8, 128], strides = [1, 1]} : vector<8x512xf32> to vector<8x128xf32>
    %112 = arith.mulf %108, %111 : vector<8x128xf32>
    %113 = arith.addf %110, %112 : vector<8x128xf32>
    %114 = math.tanh %113 : vector<8x128xf32>
    %cst_37 = arith.constant 1.000000e+00 : f32
    %115 = vector.broadcast %cst_37 : f32 to vector<8x128xf32>
    %116 = arith.subf %115, %109 : vector<8x128xf32>
    %117 = arith.mulf %116, %114 : vector<8x128xf32>
    %118 = arith.mulf %109, %95 : vector<8x128xf32>
    %119 = arith.addf %117, %118 : vector<8x128xf32>
    %c32_38 = arith.constant 32 : index
    %c0_39 = arith.constant 0 : index
    %120 = vector.load %arg11[%c32_38, %c0_39] : memref<64x128xf32, #tpu.memory_space<vmem>>, vector<8x128xf32>
    tpu.vector_store %arg11[%c32_38, %c0_39], %119 {strides = array<i32>} : memref<64x128xf32, #tpu.memory_space<vmem>>, vector<8x128xf32>,
    %121 = arith.truncf %119 : vector<8x128xf32> to vector<8x128xbf16>
    %c0_40 = arith.constant 0 : index
    %c0_41 = arith.constant 0 : index
    %122 = vector.load %arg1[%c0_40, %c0_41] : memref<128x512xbf16, #tpu.memory_space<vmem>>, vector<128x512xbf16>
    %cst_42 = arith.constant dense<0.000000e+00> : vector<8x512xf32>
    %123 = tpu.matmul %121, %122, %cst_42 {dimension_numbers = #tpu.dot_dimension_numbers<[1], [0], [0], [1], [0, 0, 1, 1], [], []>} : vector<8x128xbf16>, vector<128x512xbf16>, vector<8x512xf32> -> vector<8x512xf32>
    %c40 = arith.constant 40 : index
    %c0_43 = arith.constant 0 : index
    %124 = vector.load %arg0[%c40, %c0_43] : memref<64x512xf32, #tpu.memory_space<vmem>>, vector<8x512xf32>
    %125 = arith.addf %124, %123 : vector<8x512xf32>
    %126 = vector.extract_strided_slice %125 {offsets = [0, 0], sizes = [8, 256], strides = [1, 1]} : vector<8x512xf32> to vector<8x256xf32>
    %127 = arith.negf %126 : vector<8x256xf32>
    %128 = math.exp %127 : vector<8x256xf32>
    %cst_44 = arith.constant 1.000000e+00 : f32
    %129 = vector.broadcast %cst_44 : f32 to vector<8x256xf32>
    %130 = arith.addf %129, %128 : vector<8x256xf32>
    %131 = arith.divf %129, %130 : vector<8x256xf32>
    %132 = vector.extract_strided_slice %131 {offsets = [0, 0], sizes = [8, 128], strides = [1, 1]} : vector<8x256xf32> to vector<8x128xf32>
    %133 = vector.extract_strided_slice %131 {offsets = [0, 128], sizes = [8, 128], strides = [1, 1]} : vector<8x256xf32> to vector<8x128xf32>
    %134 = vector.extract_strided_slice %125 {offsets = [0, 256], sizes = [8, 128], strides = [1, 1]} : vector<8x512xf32> to vector<8x128xf32>
    %135 = vector.extract_strided_slice %125 {offsets = [0, 384], sizes = [8, 128], strides = [1, 1]} : vector<8x512xf32> to vector<8x128xf32>
    %136 = arith.mulf %132, %135 : vector<8x128xf32>
    %137 = arith.addf %134, %136 : vector<8x128xf32>
    %138 = math.tanh %137 : vector<8x128xf32>
    %cst_45 = arith.constant 1.000000e+00 : f32
    %139 = vector.broadcast %cst_45 : f32 to vector<8x128xf32>
    %140 = arith.subf %139, %133 : vector<8x128xf32>
    %141 = arith.mulf %140, %138 : vector<8x128xf32>
    %142 = arith.mulf %133, %119 : vector<8x128xf32>
    %143 = arith.addf %141, %142 : vector<8x128xf32>
    %c40_46 = arith.constant 40 : index
    %c0_47 = arith.constant 0 : index
    %144 = vector.load %arg11[%c40_46, %c0_47] : memref<64x128xf32, #tpu.memory_space<vmem>>, vector<8x128xf32>
    tpu.vector_store %arg11[%c40_46, %c0_47], %143 {strides = array<i32>} : memref<64x128xf32, #tpu.memory_space<vmem>>, vector<8x128xf32>,
    %145 = arith.truncf %143 : vector<8x128xf32> to vector<8x128xbf16>
    %c0_48 = arith.constant 0 : index
    %c0_49 = arith.constant 0 : index
    %146 = vector.load %arg1[%c0_48, %c0_49] : memref<128x512xbf16, #tpu.memory_space<vmem>>, vector<128x512xbf16>
    %cst_50 = arith.constant dense<0.000000e+00> : vector<8x512xf32>
    %147 = tpu.matmul %145, %146, %cst_50 {dimension_numbers = #tpu.dot_dimension_numbers<[1], [0], [0], [1], [0, 0, 1, 1], [], []>} : vector<8x128xbf16>, vector<128x512xbf16>, vector<8x512xf32> -> vector<8x512xf32>
    %c48 = arith.constant 48 : index
    %c0_51 = arith.constant 0 : index
    %148 = vector.load %arg0[%c48, %c0_51] : memref<64x512xf32, #tpu.memory_space<vmem>>, vector<8x512xf32>
    %149 = arith.addf %148, %147 : vector<8x512xf32>
    %150 = vector.extract_strided_slice %149 {offsets = [0, 0], sizes = [8, 256], strides = [1, 1]} : vector<8x512xf32> to vector<8x256xf32>
    %151 = arith.negf %150 : vector<8x256xf32>
    %152 = math.exp %151 : vector<8x256xf32>
    %cst_52 = arith.constant 1.000000e+00 : f32
    %153 = vector.broadcast %cst_52 : f32 to vector<8x256xf32>
    %154 = arith.addf %153, %152 : vector<8x256xf32>
    %155 = arith.divf %153, %154 : vector<8x256xf32>
    %156 = vector.extract_strided_slice %155 {offsets = [0, 0], sizes = [8, 128], strides = [1, 1]} : vector<8x256xf32> to vector<8x128xf32>
    %157 = vector.extract_strided_slice %155 {offsets = [0, 128], sizes = [8, 128], strides = [1, 1]} : vector<8x256xf32> to vector<8x128xf32>
    %158 = vector.extract_strided_slice %149 {offsets = [0, 256], sizes = [8, 128], strides = [1, 1]} : vector<8x512xf32> to vector<8x128xf32>
    %159 = vector.extract_strided_slice %149 {offsets = [0, 384], sizes = [8, 128], strides = [1, 1]} : vector<8x512xf32> to vector<8x128xf32>
    %160 = arith.mulf %156, %159 : vector<8x128xf32>
    %161 = arith.addf %158, %160 : vector<8x128xf32>
    %162 = math.tanh %161 : vector<8x128xf32>
    %cst_53 = arith.constant 1.000000e+00 : f32
    %163 = vector.broadcast %cst_53 : f32 to vector<8x128xf32>
    %164 = arith.subf %163, %157 : vector<8x128xf32>
    %165 = arith.mulf %164, %162 : vector<8x128xf32>
    %166 = arith.mulf %157, %143 : vector<8x128xf32>
    %167 = arith.addf %165, %166 : vector<8x128xf32>
    %c48_54 = arith.constant 48 : index
    %c0_55 = arith.constant 0 : index
    %168 = vector.load %arg11[%c48_54, %c0_55] : memref<64x128xf32, #tpu.memory_space<vmem>>, vector<8x128xf32>
    tpu.vector_store %arg11[%c48_54, %c0_55], %167 {strides = array<i32>} : memref<64x128xf32, #tpu.memory_space<vmem>>, vector<8x128xf32>,
    %169 = arith.truncf %167 : vector<8x128xf32> to vector<8x128xbf16>
    %c0_56 = arith.constant 0 : index
    %c0_57 = arith.constant 0 : index
    %170 = vector.load %arg1[%c0_56, %c0_57] : memref<128x512xbf16, #tpu.memory_space<vmem>>, vector<128x512xbf16>
    %cst_58 = arith.constant dense<0.000000e+00> : vector<8x512xf32>
    %171 = tpu.matmul %169, %170, %cst_58 {dimension_numbers = #tpu.dot_dimension_numbers<[1], [0], [0], [1], [0, 0, 1, 1], [], []>} : vector<8x128xbf16>, vector<128x512xbf16>, vector<8x512xf32> -> vector<8x512xf32>
    %c56 = arith.constant 56 : index
    %c0_59 = arith.constant 0 : index
    %172 = vector.load %arg0[%c56, %c0_59] : memref<64x512xf32, #tpu.memory_space<vmem>>, vector<8x512xf32>
    %173 = arith.addf %172, %171 : vector<8x512xf32>
    %174 = vector.extract_strided_slice %173 {offsets = [0, 0], sizes = [8, 256], strides = [1, 1]} : vector<8x512xf32> to vector<8x256xf32>
    %175 = arith.negf %174 : vector<8x256xf32>
    %176 = math.exp %175 : vector<8x256xf32>
    %cst_60 = arith.constant 1.000000e+00 : f32
    %177 = vector.broadcast %cst_60 : f32 to vector<8x256xf32>
    %178 = arith.addf %177, %176 : vector<8x256xf32>
    %179 = arith.divf %177, %178 : vector<8x256xf32>
    %180 = vector.extract_strided_slice %179 {offsets = [0, 0], sizes = [8, 128], strides = [1, 1]} : vector<8x256xf32> to vector<8x128xf32>
    %181 = vector.extract_strided_slice %179 {offsets = [0, 128], sizes = [8, 128], strides = [1, 1]} : vector<8x256xf32> to vector<8x128xf32>
    %182 = vector.extract_strided_slice %173 {offsets = [0, 256], sizes = [8, 128], strides = [1, 1]} : vector<8x512xf32> to vector<8x128xf32>
    %183 = vector.extract_strided_slice %173 {offsets = [0, 384], sizes = [8, 128], strides = [1, 1]} : vector<8x512xf32> to vector<8x128xf32>
    %184 = arith.mulf %180, %183 : vector<8x128xf32>
    %185 = arith.addf %182, %184 : vector<8x128xf32>
    %186 = math.tanh %185 : vector<8x128xf32>
    %cst_61 = arith.constant 1.000000e+00 : f32
    %187 = vector.broadcast %cst_61 : f32 to vector<8x128xf32>
    %188 = arith.subf %187, %181 : vector<8x128xf32>
    %189 = arith.mulf %188, %186 : vector<8x128xf32>
    %190 = arith.mulf %181, %167 : vector<8x128xf32>
    %191 = arith.addf %189, %190 : vector<8x128xf32>
    %c56_62 = arith.constant 56 : index
    %c0_63 = arith.constant 0 : index
    %192 = vector.load %arg11[%c56_62, %c0_63] : memref<64x128xf32, #tpu.memory_space<vmem>>, vector<8x128xf32>
    tpu.vector_store %arg11[%c56_62, %c0_63], %191 {strides = array<i32>} : memref<64x128xf32, #tpu.memory_space<vmem>>, vector<8x128xf32>,
    %c0_64 = arith.constant 0 : index
    %c0_65 = arith.constant 0 : index
    %193 = vector.load %arg11[%c0_64, %c0_65] : memref<64x128xf32, #tpu.memory_space<vmem>>, vector<64x128xf32>
    %194 = arith.truncf %193 : vector<64x128xf32> to vector<64x128xbf16>
    %c0_66 = arith.constant 0 : index
    %c0_67 = arith.constant 0 : index
    %195 = vector.load %arg2[%c0_66, %c0_67] : memref<128x512xbf16, #tpu.memory_space<vmem>>, vector<128x512xbf16>
    %cst_68 = arith.constant dense<0.000000e+00> : vector<64x512xf32>
    %196 = tpu.matmul %194, %195, %cst_68 {dimension_numbers = #tpu.dot_dimension_numbers<[1], [0], [0], [1], [0, 0, 1, 1], [], []>} : vector<64x128xbf16>, vector<128x512xbf16>, vector<64x512xf32> -> vector<64x512xf32>
    %c0_69 = arith.constant 0 : index
    %c0_70 = arith.constant 0 : index
    %197 = vector.load %arg3[%c0_69, %c0_70] : memref<1x512xf32, #tpu.memory_space<vmem>>, vector<1x512xf32>
    %198 = vector.broadcast %197 : vector<1x512xf32> to vector<64x512xf32>
    %199 = arith.addf %196, %198 : vector<64x512xf32>
    %c0_71 = arith.constant 0 : index
    %c0_72 = arith.constant 0 : index
    %200 = vector.load %arg12[%c0_71, %c0_72] : memref<64x512xf32, #tpu.memory_space<vmem>>, vector<64x512xf32>
    tpu.vector_store %arg12[%c0_71, %c0_72], %199 {strides = array<i32>} : memref<64x512xf32, #tpu.memory_space<vmem>>, vector<64x512xf32>,
    %cst_73 = arith.constant 0.000000e+00 : f32
    %201 = vector.broadcast %cst_73 : f32 to vector<8x128xf32>
    %202 = arith.truncf %201 : vector<8x128xf32> to vector<8x128xbf16>
    %c0_74 = arith.constant 0 : index
    %c0_75 = arith.constant 0 : index
    %203 = vector.load %arg4[%c0_74, %c0_75] : memref<128x512xbf16, #tpu.memory_space<vmem>>, vector<128x512xbf16>
    %cst_76 = arith.constant dense<0.000000e+00> : vector<8x512xf32>
    %204 = tpu.matmul %202, %203, %cst_76 {dimension_numbers = #tpu.dot_dimension_numbers<[1], [0], [0], [1], [0, 0, 1, 1], [], []>} : vector<8x128xbf16>, vector<128x512xbf16>, vector<8x512xf32> -> vector<8x512xf32>
    %c0_77 = arith.constant 0 : index
    %c0_78 = arith.constant 0 : index
    %205 = vector.load %arg12[%c0_77, %c0_78] : memref<64x512xf32, #tpu.memory_space<vmem>>, vector<8x512xf32>
    %206 = arith.addf %205, %204 : vector<8x512xf32>
    %207 = vector.extract_strided_slice %206 {offsets = [0, 0], sizes = [8, 256], strides = [1, 1]} : vector<8x512xf32> to vector<8x256xf32>
    %208 = arith.negf %207 : vector<8x256xf32>
    %209 = math.exp %208 : vector<8x256xf32>
    %cst_79 = arith.constant 1.000000e+00 : f32
    %210 = vector.broadcast %cst_79 : f32 to vector<8x256xf32>
    %211 = arith.addf %210, %209 : vector<8x256xf32>
    %212 = arith.divf %210, %211 : vector<8x256xf32>
    %213 = vector.extract_strided_slice %212 {offsets = [0, 0], sizes = [8, 128], strides = [1, 1]} : vector<8x256xf32> to vector<8x128xf32>
    %214 = vector.extract_strided_slice %212 {offsets = [0, 128], sizes = [8, 128], strides = [1, 1]} : vector<8x256xf32> to vector<8x128xf32>
    %215 = vector.extract_strided_slice %206 {offsets = [0, 256], sizes = [8, 128], strides = [1, 1]} : vector<8x512xf32> to vector<8x128xf32>
    %216 = vector.extract_strided_slice %206 {offsets = [0, 384], sizes = [8, 128], strides = [1, 1]} : vector<8x512xf32> to vector<8x128xf32>
    %217 = arith.mulf %213, %216 : vector<8x128xf32>
    %218 = arith.addf %215, %217 : vector<8x128xf32>
    %219 = math.tanh %218 : vector<8x128xf32>
    %cst_80 = arith.constant 1.000000e+00 : f32
    %220 = vector.broadcast %cst_80 : f32 to vector<8x128xf32>
    %221 = arith.subf %220, %214 : vector<8x128xf32>
    %222 = arith.mulf %221, %219 : vector<8x128xf32>
    %223 = arith.mulf %214, %201 : vector<8x128xf32>
    %224 = arith.addf %222, %223 : vector<8x128xf32>
    %c0_81 = arith.constant 0 : index
    %c0_82 = arith.constant 0 : index
    %225 = vector.load %arg11[%c0_81, %c0_82] : memref<64x128xf32, #tpu.memory_space<vmem>>, vector<8x128xf32>
    tpu.vector_store %arg11[%c0_81, %c0_82], %224 {strides = array<i32>} : memref<64x128xf32, #tpu.memory_space<vmem>>, vector<8x128xf32>,
    %226 = arith.truncf %224 : vector<8x128xf32> to vector<8x128xbf16>
    %c0_83 = arith.constant 0 : index
    %c0_84 = arith.constant 0 : index
    %227 = vector.load %arg4[%c0_83, %c0_84] : memref<128x512xbf16, #tpu.memory_space<vmem>>, vector<128x512xbf16>
    %cst_85 = arith.constant dense<0.000000e+00> : vector<8x512xf32>
    %228 = tpu.matmul %226, %227, %cst_85 {dimension_numbers = #tpu.dot_dimension_numbers<[1], [0], [0], [1], [0, 0, 1, 1], [], []>} : vector<8x128xbf16>, vector<128x512xbf16>, vector<8x512xf32> -> vector<8x512xf32>
    %c8_86 = arith.constant 8 : index
    %c0_87 = arith.constant 0 : index
    %229 = vector.load %arg12[%c8_86, %c0_87] : memref<64x512xf32, #tpu.memory_space<vmem>>, vector<8x512xf32>
    %230 = arith.addf %229, %228 : vector<8x512xf32>
    %231 = vector.extract_strided_slice %230 {offsets = [0, 0], sizes = [8, 256], strides = [1, 1]} : vector<8x512xf32> to vector<8x256xf32>
    %232 = arith.negf %231 : vector<8x256xf32>
    %233 = math.exp %232 : vector<8x256xf32>
    %cst_88 = arith.constant 1.000000e+00 : f32
    %234 = vector.broadcast %cst_88 : f32 to vector<8x256xf32>
    %235 = arith.addf %234, %233 : vector<8x256xf32>
    %236 = arith.divf %234, %235 : vector<8x256xf32>
    %237 = vector.extract_strided_slice %236 {offsets = [0, 0], sizes = [8, 128], strides = [1, 1]} : vector<8x256xf32> to vector<8x128xf32>
    %238 = vector.extract_strided_slice %236 {offsets = [0, 128], sizes = [8, 128], strides = [1, 1]} : vector<8x256xf32> to vector<8x128xf32>
    %239 = vector.extract_strided_slice %230 {offsets = [0, 256], sizes = [8, 128], strides = [1, 1]} : vector<8x512xf32> to vector<8x128xf32>
    %240 = vector.extract_strided_slice %230 {offsets = [0, 384], sizes = [8, 128], strides = [1, 1]} : vector<8x512xf32> to vector<8x128xf32>
    %241 = arith.mulf %237, %240 : vector<8x128xf32>
    %242 = arith.addf %239, %241 : vector<8x128xf32>
    %243 = math.tanh %242 : vector<8x128xf32>
    %cst_89 = arith.constant 1.000000e+00 : f32
    %244 = vector.broadcast %cst_89 : f32 to vector<8x128xf32>
    %245 = arith.subf %244, %238 : vector<8x128xf32>
    %246 = arith.mulf %245, %243 : vector<8x128xf32>
    %247 = arith.mulf %238, %224 : vector<8x128xf32>
    %248 = arith.addf %246, %247 : vector<8x128xf32>
    %c8_90 = arith.constant 8 : index
    %c0_91 = arith.constant 0 : index
    %249 = vector.load %arg11[%c8_90, %c0_91] : memref<64x128xf32, #tpu.memory_space<vmem>>, vector<8x128xf32>
    tpu.vector_store %arg11[%c8_90, %c0_91], %248 {strides = array<i32>} : memref<64x128xf32, #tpu.memory_space<vmem>>, vector<8x128xf32>,
    %250 = arith.truncf %248 : vector<8x128xf32> to vector<8x128xbf16>
    %c0_92 = arith.constant 0 : index
    %c0_93 = arith.constant 0 : index
    %251 = vector.load %arg4[%c0_92, %c0_93] : memref<128x512xbf16, #tpu.memory_space<vmem>>, vector<128x512xbf16>
    %cst_94 = arith.constant dense<0.000000e+00> : vector<8x512xf32>
    %252 = tpu.matmul %250, %251, %cst_94 {dimension_numbers = #tpu.dot_dimension_numbers<[1], [0], [0], [1], [0, 0, 1, 1], [], []>} : vector<8x128xbf16>, vector<128x512xbf16>, vector<8x512xf32> -> vector<8x512xf32>
    %c16_95 = arith.constant 16 : index
    %c0_96 = arith.constant 0 : index
    %253 = vector.load %arg12[%c16_95, %c0_96] : memref<64x512xf32, #tpu.memory_space<vmem>>, vector<8x512xf32>
    %254 = arith.addf %253, %252 : vector<8x512xf32>
    %255 = vector.extract_strided_slice %254 {offsets = [0, 0], sizes = [8, 256], strides = [1, 1]} : vector<8x512xf32> to vector<8x256xf32>
    %256 = arith.negf %255 : vector<8x256xf32>
    %257 = math.exp %256 : vector<8x256xf32>
    %cst_97 = arith.constant 1.000000e+00 : f32
    %258 = vector.broadcast %cst_97 : f32 to vector<8x256xf32>
    %259 = arith.addf %258, %257 : vector<8x256xf32>
    %260 = arith.divf %258, %259 : vector<8x256xf32>
    %261 = vector.extract_strided_slice %260 {offsets = [0, 0], sizes = [8, 128], strides = [1, 1]} : vector<8x256xf32> to vector<8x128xf32>
    %262 = vector.extract_strided_slice %260 {offsets = [0, 128], sizes = [8, 128], strides = [1, 1]} : vector<8x256xf32> to vector<8x128xf32>
    %263 = vector.extract_strided_slice %254 {offsets = [0, 256], sizes = [8, 128], strides = [1, 1]} : vector<8x512xf32> to vector<8x128xf32>
    %264 = vector.extract_strided_slice %254 {offsets = [0, 384], sizes = [8, 128], strides = [1, 1]} : vector<8x512xf32> to vector<8x128xf32>
    %265 = arith.mulf %261, %264 : vector<8x128xf32>
    %266 = arith.addf %263, %265 : vector<8x128xf32>
    %267 = math.tanh %266 : vector<8x128xf32>
    %cst_98 = arith.constant 1.000000e+00 : f32
    %268 = vector.broadcast %cst_98 : f32 to vector<8x128xf32>
    %269 = arith.subf %268, %262 : vector<8x128xf32>
    %270 = arith.mulf %269, %267 : vector<8x128xf32>
    %271 = arith.mulf %262, %248 : vector<8x128xf32>
    %272 = arith.addf %270, %271 : vector<8x128xf32>
    %c16_99 = arith.constant 16 : index
    %c0_100 = arith.constant 0 : index
    %273 = vector.load %arg11[%c16_99, %c0_100] : memref<64x128xf32, #tpu.memory_space<vmem>>, vector<8x128xf32>
    tpu.vector_store %arg11[%c16_99, %c0_100], %272 {strides = array<i32>} : memref<64x128xf32, #tpu.memory_space<vmem>>, vector<8x128xf32>,
    %274 = arith.truncf %272 : vector<8x128xf32> to vector<8x128xbf16>
    %c0_101 = arith.constant 0 : index
    %c0_102 = arith.constant 0 : index
    %275 = vector.load %arg4[%c0_101, %c0_102] : memref<128x512xbf16, #tpu.memory_space<vmem>>, vector<128x512xbf16>
    %cst_103 = arith.constant dense<0.000000e+00> : vector<8x512xf32>
    %276 = tpu.matmul %274, %275, %cst_103 {dimension_numbers = #tpu.dot_dimension_numbers<[1], [0], [0], [1], [0, 0, 1, 1], [], []>} : vector<8x128xbf16>, vector<128x512xbf16>, vector<8x512xf32> -> vector<8x512xf32>
    %c24_104 = arith.constant 24 : index
    %c0_105 = arith.constant 0 : index
    %277 = vector.load %arg12[%c24_104, %c0_105] : memref<64x512xf32, #tpu.memory_space<vmem>>, vector<8x512xf32>
    %278 = arith.addf %277, %276 : vector<8x512xf32>
    %279 = vector.extract_strided_slice %278 {offsets = [0, 0], sizes = [8, 256], strides = [1, 1]} : vector<8x512xf32> to vector<8x256xf32>
    %280 = arith.negf %279 : vector<8x256xf32>
    %281 = math.exp %280 : vector<8x256xf32>
    %cst_106 = arith.constant 1.000000e+00 : f32
    %282 = vector.broadcast %cst_106 : f32 to vector<8x256xf32>
    %283 = arith.addf %282, %281 : vector<8x256xf32>
    %284 = arith.divf %282, %283 : vector<8x256xf32>
    %285 = vector.extract_strided_slice %284 {offsets = [0, 0], sizes = [8, 128], strides = [1, 1]} : vector<8x256xf32> to vector<8x128xf32>
    %286 = vector.extract_strided_slice %284 {offsets = [0, 128], sizes = [8, 128], strides = [1, 1]} : vector<8x256xf32> to vector<8x128xf32>
    %287 = vector.extract_strided_slice %278 {offsets = [0, 256], sizes = [8, 128], strides = [1, 1]} : vector<8x512xf32> to vector<8x128xf32>
    %288 = vector.extract_strided_slice %278 {offsets = [0, 384], sizes = [8, 128], strides = [1, 1]} : vector<8x512xf32> to vector<8x128xf32>
    %289 = arith.mulf %285, %288 : vector<8x128xf32>
    %290 = arith.addf %287, %289 : vector<8x128xf32>
    %291 = math.tanh %290 : vector<8x128xf32>
    %cst_107 = arith.constant 1.000000e+00 : f32
    %292 = vector.broadcast %cst_107 : f32 to vector<8x128xf32>
    %293 = arith.subf %292, %286 : vector<8x128xf32>
    %294 = arith.mulf %293, %291 : vector<8x128xf32>
    %295 = arith.mulf %286, %272 : vector<8x128xf32>
    %296 = arith.addf %294, %295 : vector<8x128xf32>
    %c24_108 = arith.constant 24 : index
    %c0_109 = arith.constant 0 : index
    %297 = vector.load %arg11[%c24_108, %c0_109] : memref<64x128xf32, #tpu.memory_space<vmem>>, vector<8x128xf32>
    tpu.vector_store %arg11[%c24_108, %c0_109], %296 {strides = array<i32>} : memref<64x128xf32, #tpu.memory_space<vmem>>, vector<8x128xf32>,
    %298 = arith.truncf %296 : vector<8x128xf32> to vector<8x128xbf16>
    %c0_110 = arith.constant 0 : index
    %c0_111 = arith.constant 0 : index
    %299 = vector.load %arg4[%c0_110, %c0_111] : memref<128x512xbf16, #tpu.memory_space<vmem>>, vector<128x512xbf16>
    %cst_112 = arith.constant dense<0.000000e+00> : vector<8x512xf32>
    %300 = tpu.matmul %298, %299, %cst_112 {dimension_numbers = #tpu.dot_dimension_numbers<[1], [0], [0], [1], [0, 0, 1, 1], [], []>} : vector<8x128xbf16>, vector<128x512xbf16>, vector<8x512xf32> -> vector<8x512xf32>
    %c32_113 = arith.constant 32 : index
    %c0_114 = arith.constant 0 : index
    %301 = vector.load %arg12[%c32_113, %c0_114] : memref<64x512xf32, #tpu.memory_space<vmem>>, vector<8x512xf32>
    %302 = arith.addf %301, %300 : vector<8x512xf32>
    %303 = vector.extract_strided_slice %302 {offsets = [0, 0], sizes = [8, 256], strides = [1, 1]} : vector<8x512xf32> to vector<8x256xf32>
    %304 = arith.negf %303 : vector<8x256xf32>
    %305 = math.exp %304 : vector<8x256xf32>
    %cst_115 = arith.constant 1.000000e+00 : f32
    %306 = vector.broadcast %cst_115 : f32 to vector<8x256xf32>
    %307 = arith.addf %306, %305 : vector<8x256xf32>
    %308 = arith.divf %306, %307 : vector<8x256xf32>
    %309 = vector.extract_strided_slice %308 {offsets = [0, 0], sizes = [8, 128], strides = [1, 1]} : vector<8x256xf32> to vector<8x128xf32>
    %310 = vector.extract_strided_slice %308 {offsets = [0, 128], sizes = [8, 128], strides = [1, 1]} : vector<8x256xf32> to vector<8x128xf32>
    %311 = vector.extract_strided_slice %302 {offsets = [0, 256], sizes = [8, 128], strides = [1, 1]} : vector<8x512xf32> to vector<8x128xf32>
    %312 = vector.extract_strided_slice %302 {offsets = [0, 384], sizes = [8, 128], strides = [1, 1]} : vector<8x512xf32> to vector<8x128xf32>
    %313 = arith.mulf %309, %312 : vector<8x128xf32>
    %314 = arith.addf %311, %313 : vector<8x128xf32>
    %315 = math.tanh %314 : vector<8x128xf32>
    %cst_116 = arith.constant 1.000000e+00 : f32
    %316 = vector.broadcast %cst_116 : f32 to vector<8x128xf32>
    %317 = arith.subf %316, %310 : vector<8x128xf32>
    %318 = arith.mulf %317, %315 : vector<8x128xf32>
    %319 = arith.mulf %310, %296 : vector<8x128xf32>
    %320 = arith.addf %318, %319 : vector<8x128xf32>
    %c32_117 = arith.constant 32 : index
    %c0_118 = arith.constant 0 : index
    %321 = vector.load %arg11[%c32_117, %c0_118] : memref<64x128xf32, #tpu.memory_space<vmem>>, vector<8x128xf32>
    tpu.vector_store %arg11[%c32_117, %c0_118], %320 {strides = array<i32>} : memref<64x128xf32, #tpu.memory_space<vmem>>, vector<8x128xf32>,
    %322 = arith.truncf %320 : vector<8x128xf32> to vector<8x128xbf16>
    %c0_119 = arith.constant 0 : index
    %c0_120 = arith.constant 0 : index
    %323 = vector.load %arg4[%c0_119, %c0_120] : memref<128x512xbf16, #tpu.memory_space<vmem>>, vector<128x512xbf16>
    %cst_121 = arith.constant dense<0.000000e+00> : vector<8x512xf32>
    %324 = tpu.matmul %322, %323, %cst_121 {dimension_numbers = #tpu.dot_dimension_numbers<[1], [0], [0], [1], [0, 0, 1, 1], [], []>} : vector<8x128xbf16>, vector<128x512xbf16>, vector<8x512xf32> -> vector<8x512xf32>
    %c40_122 = arith.constant 40 : index
    %c0_123 = arith.constant 0 : index
    %325 = vector.load %arg12[%c40_122, %c0_123] : memref<64x512xf32, #tpu.memory_space<vmem>>, vector<8x512xf32>
    %326 = arith.addf %325, %324 : vector<8x512xf32>
    %327 = vector.extract_strided_slice %326 {offsets = [0, 0], sizes = [8, 256], strides = [1, 1]} : vector<8x512xf32> to vector<8x256xf32>
    %328 = arith.negf %327 : vector<8x256xf32>
    %329 = math.exp %328 : vector<8x256xf32>
    %cst_124 = arith.constant 1.000000e+00 : f32
    %330 = vector.broadcast %cst_124 : f32 to vector<8x256xf32>
    %331 = arith.addf %330, %329 : vector<8x256xf32>
    %332 = arith.divf %330, %331 : vector<8x256xf32>
    %333 = vector.extract_strided_slice %332 {offsets = [0, 0], sizes = [8, 128], strides = [1, 1]} : vector<8x256xf32> to vector<8x128xf32>
    %334 = vector.extract_strided_slice %332 {offsets = [0, 128], sizes = [8, 128], strides = [1, 1]} : vector<8x256xf32> to vector<8x128xf32>
    %335 = vector.extract_strided_slice %326 {offsets = [0, 256], sizes = [8, 128], strides = [1, 1]} : vector<8x512xf32> to vector<8x128xf32>
    %336 = vector.extract_strided_slice %326 {offsets = [0, 384], sizes = [8, 128], strides = [1, 1]} : vector<8x512xf32> to vector<8x128xf32>
    %337 = arith.mulf %333, %336 : vector<8x128xf32>
    %338 = arith.addf %335, %337 : vector<8x128xf32>
    %339 = math.tanh %338 : vector<8x128xf32>
    %cst_125 = arith.constant 1.000000e+00 : f32
    %340 = vector.broadcast %cst_125 : f32 to vector<8x128xf32>
    %341 = arith.subf %340, %334 : vector<8x128xf32>
    %342 = arith.mulf %341, %339 : vector<8x128xf32>
    %343 = arith.mulf %334, %320 : vector<8x128xf32>
    %344 = arith.addf %342, %343 : vector<8x128xf32>
    %c40_126 = arith.constant 40 : index
    %c0_127 = arith.constant 0 : index
    %345 = vector.load %arg11[%c40_126, %c0_127] : memref<64x128xf32, #tpu.memory_space<vmem>>, vector<8x128xf32>
    tpu.vector_store %arg11[%c40_126, %c0_127], %344 {strides = array<i32>} : memref<64x128xf32, #tpu.memory_space<vmem>>, vector<8x128xf32>,
    %346 = arith.truncf %344 : vector<8x128xf32> to vector<8x128xbf16>
    %c0_128 = arith.constant 0 : index
    %c0_129 = arith.constant 0 : index
    %347 = vector.load %arg4[%c0_128, %c0_129] : memref<128x512xbf16, #tpu.memory_space<vmem>>, vector<128x512xbf16>
    %cst_130 = arith.constant dense<0.000000e+00> : vector<8x512xf32>
    %348 = tpu.matmul %346, %347, %cst_130 {dimension_numbers = #tpu.dot_dimension_numbers<[1], [0], [0], [1], [0, 0, 1, 1], [], []>} : vector<8x128xbf16>, vector<128x512xbf16>, vector<8x512xf32> -> vector<8x512xf32>
    %c48_131 = arith.constant 48 : index
    %c0_132 = arith.constant 0 : index
    %349 = vector.load %arg12[%c48_131, %c0_132] : memref<64x512xf32, #tpu.memory_space<vmem>>, vector<8x512xf32>
    %350 = arith.addf %349, %348 : vector<8x512xf32>
    %351 = vector.extract_strided_slice %350 {offsets = [0, 0], sizes = [8, 256], strides = [1, 1]} : vector<8x512xf32> to vector<8x256xf32>
    %352 = arith.negf %351 : vector<8x256xf32>
    %353 = math.exp %352 : vector<8x256xf32>
    %cst_133 = arith.constant 1.000000e+00 : f32
    %354 = vector.broadcast %cst_133 : f32 to vector<8x256xf32>
    %355 = arith.addf %354, %353 : vector<8x256xf32>
    %356 = arith.divf %354, %355 : vector<8x256xf32>
    %357 = vector.extract_strided_slice %356 {offsets = [0, 0], sizes = [8, 128], strides = [1, 1]} : vector<8x256xf32> to vector<8x128xf32>
    %358 = vector.extract_strided_slice %356 {offsets = [0, 128], sizes = [8, 128], strides = [1, 1]} : vector<8x256xf32> to vector<8x128xf32>
    %359 = vector.extract_strided_slice %350 {offsets = [0, 256], sizes = [8, 128], strides = [1, 1]} : vector<8x512xf32> to vector<8x128xf32>
    %360 = vector.extract_strided_slice %350 {offsets = [0, 384], sizes = [8, 128], strides = [1, 1]} : vector<8x512xf32> to vector<8x128xf32>
    %361 = arith.mulf %357, %360 : vector<8x128xf32>
    %362 = arith.addf %359, %361 : vector<8x128xf32>
    %363 = math.tanh %362 : vector<8x128xf32>
    %cst_134 = arith.constant 1.000000e+00 : f32
    %364 = vector.broadcast %cst_134 : f32 to vector<8x128xf32>
    %365 = arith.subf %364, %358 : vector<8x128xf32>
    %366 = arith.mulf %365, %363 : vector<8x128xf32>
    %367 = arith.mulf %358, %344 : vector<8x128xf32>
    %368 = arith.addf %366, %367 : vector<8x128xf32>
    %c48_135 = arith.constant 48 : index
    %c0_136 = arith.constant 0 : index
    %369 = vector.load %arg11[%c48_135, %c0_136] : memref<64x128xf32, #tpu.memory_space<vmem>>, vector<8x128xf32>
    tpu.vector_store %arg11[%c48_135, %c0_136], %368 {strides = array<i32>} : memref<64x128xf32, #tpu.memory_space<vmem>>, vector<8x128xf32>,
    %370 = arith.truncf %368 : vector<8x128xf32> to vector<8x128xbf16>
    %c0_137 = arith.constant 0 : index
    %c0_138 = arith.constant 0 : index
    %371 = vector.load %arg4[%c0_137, %c0_138] : memref<128x512xbf16, #tpu.memory_space<vmem>>, vector<128x512xbf16>
    %cst_139 = arith.constant dense<0.000000e+00> : vector<8x512xf32>
    %372 = tpu.matmul %370, %371, %cst_139 {dimension_numbers = #tpu.dot_dimension_numbers<[1], [0], [0], [1], [0, 0, 1, 1], [], []>} : vector<8x128xbf16>, vector<128x512xbf16>, vector<8x512xf32> -> vector<8x512xf32>
    %c56_140 = arith.constant 56 : index
    %c0_141 = arith.constant 0 : index
    %373 = vector.load %arg12[%c56_140, %c0_141] : memref<64x512xf32, #tpu.memory_space<vmem>>, vector<8x512xf32>
    %374 = arith.addf %373, %372 : vector<8x512xf32>
    %375 = vector.extract_strided_slice %374 {offsets = [0, 0], sizes = [8, 256], strides = [1, 1]} : vector<8x512xf32> to vector<8x256xf32>
    %376 = arith.negf %375 : vector<8x256xf32>
    %377 = math.exp %376 : vector<8x256xf32>
    %cst_142 = arith.constant 1.000000e+00 : f32
    %378 = vector.broadcast %cst_142 : f32 to vector<8x256xf32>
    %379 = arith.addf %378, %377 : vector<8x256xf32>
    %380 = arith.divf %378, %379 : vector<8x256xf32>
    %381 = vector.extract_strided_slice %380 {offsets = [0, 0], sizes = [8, 128], strides = [1, 1]} : vector<8x256xf32> to vector<8x128xf32>
    %382 = vector.extract_strided_slice %380 {offsets = [0, 128], sizes = [8, 128], strides = [1, 1]} : vector<8x256xf32> to vector<8x128xf32>
    %383 = vector.extract_strided_slice %374 {offsets = [0, 256], sizes = [8, 128], strides = [1, 1]} : vector<8x512xf32> to vector<8x128xf32>
    %384 = vector.extract_strided_slice %374 {offsets = [0, 384], sizes = [8, 128], strides = [1, 1]} : vector<8x512xf32> to vector<8x128xf32>
    %385 = arith.mulf %381, %384 : vector<8x128xf32>
    %386 = arith.addf %383, %385 : vector<8x128xf32>
    %387 = math.tanh %386 : vector<8x128xf32>
    %cst_143 = arith.constant 1.000000e+00 : f32
    %388 = vector.broadcast %cst_143 : f32 to vector<8x128xf32>
    %389 = arith.subf %388, %382 : vector<8x128xf32>
    %390 = arith.mulf %389, %387 : vector<8x128xf32>
    %391 = arith.mulf %382, %368 : vector<8x128xf32>
    %392 = arith.addf %390, %391 : vector<8x128xf32>
    %c56_144 = arith.constant 56 : index
    %c0_145 = arith.constant 0 : index
    %393 = vector.load %arg11[%c56_144, %c0_145] : memref<64x128xf32, #tpu.memory_space<vmem>>, vector<8x128xf32>
    tpu.vector_store %arg11[%c56_144, %c0_145], %392 {strides = array<i32>} : memref<64x128xf32, #tpu.memory_space<vmem>>, vector<8x128xf32>,
    %c0_146 = arith.constant 0 : index
    %c0_147 = arith.constant 0 : index
    %394 = vector.load %arg11[%c0_146, %c0_147] : memref<64x128xf32, #tpu.memory_space<vmem>>, vector<64x128xf32>
    %395 = arith.truncf %394 : vector<64x128xf32> to vector<64x128xbf16>
    %c0_148 = arith.constant 0 : index
    %c0_149 = arith.constant 0 : index
    %396 = vector.load %arg5[%c0_148, %c0_149] : memref<128x512xbf16, #tpu.memory_space<vmem>>, vector<128x512xbf16>
    %cst_150 = arith.constant dense<0.000000e+00> : vector<64x512xf32>
    %397 = tpu.matmul %395, %396, %cst_150 {dimension_numbers = #tpu.dot_dimension_numbers<[1], [0], [0], [1], [0, 0, 1, 1], [], []>} : vector<64x128xbf16>, vector<128x512xbf16>, vector<64x512xf32> -> vector<64x512xf32>
    %c0_151 = arith.constant 0 : index
    %c0_152 = arith.constant 0 : index
    %398 = vector.load %arg6[%c0_151, %c0_152] : memref<1x512xf32, #tpu.memory_space<vmem>>, vector<1x512xf32>
    %399 = vector.broadcast %398 : vector<1x512xf32> to vector<64x512xf32>
    %400 = arith.addf %397, %399 : vector<64x512xf32>
    %c0_153 = arith.constant 0 : index
    %c0_154 = arith.constant 0 : index
    %401 = vector.load %arg12[%c0_153, %c0_154] : memref<64x512xf32, #tpu.memory_space<vmem>>, vector<64x512xf32>
    tpu.vector_store %arg12[%c0_153, %c0_154], %400 {strides = array<i32>} : memref<64x512xf32, #tpu.memory_space<vmem>>, vector<64x512xf32>,
    %cst_155 = arith.constant 0.000000e+00 : f32
    %402 = vector.broadcast %cst_155 : f32 to vector<8x128xf32>
    %403 = arith.truncf %402 : vector<8x128xf32> to vector<8x128xbf16>
    %c0_156 = arith.constant 0 : index
    %c0_157 = arith.constant 0 : index
    %404 = vector.load %arg7[%c0_156, %c0_157] : memref<128x512xbf16, #tpu.memory_space<vmem>>, vector<128x512xbf16>
    %cst_158 = arith.constant dense<0.000000e+00> : vector<8x512xf32>
    %405 = tpu.matmul %403, %404, %cst_158 {dimension_numbers = #tpu.dot_dimension_numbers<[1], [0], [0], [1], [0, 0, 1, 1], [], []>} : vector<8x128xbf16>, vector<128x512xbf16>, vector<8x512xf32> -> vector<8x512xf32>
    %c0_159 = arith.constant 0 : index
    %c0_160 = arith.constant 0 : index
    %406 = vector.load %arg12[%c0_159, %c0_160] : memref<64x512xf32, #tpu.memory_space<vmem>>, vector<8x512xf32>
    %407 = arith.addf %406, %405 : vector<8x512xf32>
    %408 = vector.extract_strided_slice %407 {offsets = [0, 0], sizes = [8, 256], strides = [1, 1]} : vector<8x512xf32> to vector<8x256xf32>
    %409 = arith.negf %408 : vector<8x256xf32>
    %410 = math.exp %409 : vector<8x256xf32>
    %cst_161 = arith.constant 1.000000e+00 : f32
    %411 = vector.broadcast %cst_161 : f32 to vector<8x256xf32>
    %412 = arith.addf %411, %410 : vector<8x256xf32>
    %413 = arith.divf %411, %412 : vector<8x256xf32>
    %414 = vector.extract_strided_slice %413 {offsets = [0, 0], sizes = [8, 128], strides = [1, 1]} : vector<8x256xf32> to vector<8x128xf32>
    %415 = vector.extract_strided_slice %413 {offsets = [0, 128], sizes = [8, 128], strides = [1, 1]} : vector<8x256xf32> to vector<8x128xf32>
    %416 = vector.extract_strided_slice %407 {offsets = [0, 256], sizes = [8, 128], strides = [1, 1]} : vector<8x512xf32> to vector<8x128xf32>
    %417 = vector.extract_strided_slice %407 {offsets = [0, 384], sizes = [8, 128], strides = [1, 1]} : vector<8x512xf32> to vector<8x128xf32>
    %418 = arith.mulf %414, %417 : vector<8x128xf32>
    %419 = arith.addf %416, %418 : vector<8x128xf32>
    %420 = math.tanh %419 : vector<8x128xf32>
    %cst_162 = arith.constant 1.000000e+00 : f32
    %421 = vector.broadcast %cst_162 : f32 to vector<8x128xf32>
    %422 = arith.subf %421, %415 : vector<8x128xf32>
    %423 = arith.mulf %422, %420 : vector<8x128xf32>
    %424 = arith.mulf %415, %402 : vector<8x128xf32>
    %425 = arith.addf %423, %424 : vector<8x128xf32>
    %c0_163 = arith.constant 0 : index
    %c0_164 = arith.constant 0 : index
    %426 = vector.load %arg11[%c0_163, %c0_164] : memref<64x128xf32, #tpu.memory_space<vmem>>, vector<8x128xf32>
    tpu.vector_store %arg11[%c0_163, %c0_164], %425 {strides = array<i32>} : memref<64x128xf32, #tpu.memory_space<vmem>>, vector<8x128xf32>,
    %427 = arith.truncf %425 : vector<8x128xf32> to vector<8x128xbf16>
    %c0_165 = arith.constant 0 : index
    %c0_166 = arith.constant 0 : index
    %428 = vector.load %arg7[%c0_165, %c0_166] : memref<128x512xbf16, #tpu.memory_space<vmem>>, vector<128x512xbf16>
    %cst_167 = arith.constant dense<0.000000e+00> : vector<8x512xf32>
    %429 = tpu.matmul %427, %428, %cst_167 {dimension_numbers = #tpu.dot_dimension_numbers<[1], [0], [0], [1], [0, 0, 1, 1], [], []>} : vector<8x128xbf16>, vector<128x512xbf16>, vector<8x512xf32> -> vector<8x512xf32>
    %c8_168 = arith.constant 8 : index
    %c0_169 = arith.constant 0 : index
    %430 = vector.load %arg12[%c8_168, %c0_169] : memref<64x512xf32, #tpu.memory_space<vmem>>, vector<8x512xf32>
    %431 = arith.addf %430, %429 : vector<8x512xf32>
    %432 = vector.extract_strided_slice %431 {offsets = [0, 0], sizes = [8, 256], strides = [1, 1]} : vector<8x512xf32> to vector<8x256xf32>
    %433 = arith.negf %432 : vector<8x256xf32>
    %434 = math.exp %433 : vector<8x256xf32>
    %cst_170 = arith.constant 1.000000e+00 : f32
    %435 = vector.broadcast %cst_170 : f32 to vector<8x256xf32>
    %436 = arith.addf %435, %434 : vector<8x256xf32>
    %437 = arith.divf %435, %436 : vector<8x256xf32>
    %438 = vector.extract_strided_slice %437 {offsets = [0, 0], sizes = [8, 128], strides = [1, 1]} : vector<8x256xf32> to vector<8x128xf32>
    %439 = vector.extract_strided_slice %437 {offsets = [0, 128], sizes = [8, 128], strides = [1, 1]} : vector<8x256xf32> to vector<8x128xf32>
    %440 = vector.extract_strided_slice %431 {offsets = [0, 256], sizes = [8, 128], strides = [1, 1]} : vector<8x512xf32> to vector<8x128xf32>
    %441 = vector.extract_strided_slice %431 {offsets = [0, 384], sizes = [8, 128], strides = [1, 1]} : vector<8x512xf32> to vector<8x128xf32>
    %442 = arith.mulf %438, %441 : vector<8x128xf32>
    %443 = arith.addf %440, %442 : vector<8x128xf32>
    %444 = math.tanh %443 : vector<8x128xf32>
    %cst_171 = arith.constant 1.000000e+00 : f32
    %445 = vector.broadcast %cst_171 : f32 to vector<8x128xf32>
    %446 = arith.subf %445, %439 : vector<8x128xf32>
    %447 = arith.mulf %446, %444 : vector<8x128xf32>
    %448 = arith.mulf %439, %425 : vector<8x128xf32>
    %449 = arith.addf %447, %448 : vector<8x128xf32>
    %c8_172 = arith.constant 8 : index
    %c0_173 = arith.constant 0 : index
    %450 = vector.load %arg11[%c8_172, %c0_173] : memref<64x128xf32, #tpu.memory_space<vmem>>, vector<8x128xf32>
    tpu.vector_store %arg11[%c8_172, %c0_173], %449 {strides = array<i32>} : memref<64x128xf32, #tpu.memory_space<vmem>>, vector<8x128xf32>,
    %451 = arith.truncf %449 : vector<8x128xf32> to vector<8x128xbf16>
    %c0_174 = arith.constant 0 : index
    %c0_175 = arith.constant 0 : index
    %452 = vector.load %arg7[%c0_174, %c0_175] : memref<128x512xbf16, #tpu.memory_space<vmem>>, vector<128x512xbf16>
    %cst_176 = arith.constant dense<0.000000e+00> : vector<8x512xf32>
    %453 = tpu.matmul %451, %452, %cst_176 {dimension_numbers = #tpu.dot_dimension_numbers<[1], [0], [0], [1], [0, 0, 1, 1], [], []>} : vector<8x128xbf16>, vector<128x512xbf16>, vector<8x512xf32> -> vector<8x512xf32>
    %c16_177 = arith.constant 16 : index
    %c0_178 = arith.constant 0 : index
    %454 = vector.load %arg12[%c16_177, %c0_178] : memref<64x512xf32, #tpu.memory_space<vmem>>, vector<8x512xf32>
    %455 = arith.addf %454, %453 : vector<8x512xf32>
    %456 = vector.extract_strided_slice %455 {offsets = [0, 0], sizes = [8, 256], strides = [1, 1]} : vector<8x512xf32> to vector<8x256xf32>
    %457 = arith.negf %456 : vector<8x256xf32>
    %458 = math.exp %457 : vector<8x256xf32>
    %cst_179 = arith.constant 1.000000e+00 : f32
    %459 = vector.broadcast %cst_179 : f32 to vector<8x256xf32>
    %460 = arith.addf %459, %458 : vector<8x256xf32>
    %461 = arith.divf %459, %460 : vector<8x256xf32>
    %462 = vector.extract_strided_slice %461 {offsets = [0, 0], sizes = [8, 128], strides = [1, 1]} : vector<8x256xf32> to vector<8x128xf32>
    %463 = vector.extract_strided_slice %461 {offsets = [0, 128], sizes = [8, 128], strides = [1, 1]} : vector<8x256xf32> to vector<8x128xf32>
    %464 = vector.extract_strided_slice %455 {offsets = [0, 256], sizes = [8, 128], strides = [1, 1]} : vector<8x512xf32> to vector<8x128xf32>
    %465 = vector.extract_strided_slice %455 {offsets = [0, 384], sizes = [8, 128], strides = [1, 1]} : vector<8x512xf32> to vector<8x128xf32>
    %466 = arith.mulf %462, %465 : vector<8x128xf32>
    %467 = arith.addf %464, %466 : vector<8x128xf32>
    %468 = math.tanh %467 : vector<8x128xf32>
    %cst_180 = arith.constant 1.000000e+00 : f32
    %469 = vector.broadcast %cst_180 : f32 to vector<8x128xf32>
    %470 = arith.subf %469, %463 : vector<8x128xf32>
    %471 = arith.mulf %470, %468 : vector<8x128xf32>
    %472 = arith.mulf %463, %449 : vector<8x128xf32>
    %473 = arith.addf %471, %472 : vector<8x128xf32>
    %c16_181 = arith.constant 16 : index
    %c0_182 = arith.constant 0 : index
    %474 = vector.load %arg11[%c16_181, %c0_182] : memref<64x128xf32, #tpu.memory_space<vmem>>, vector<8x128xf32>
    tpu.vector_store %arg11[%c16_181, %c0_182], %473 {strides = array<i32>} : memref<64x128xf32, #tpu.memory_space<vmem>>, vector<8x128xf32>,
    %475 = arith.truncf %473 : vector<8x128xf32> to vector<8x128xbf16>
    %c0_183 = arith.constant 0 : index
    %c0_184 = arith.constant 0 : index
    %476 = vector.load %arg7[%c0_183, %c0_184] : memref<128x512xbf16, #tpu.memory_space<vmem>>, vector<128x512xbf16>
    %cst_185 = arith.constant dense<0.000000e+00> : vector<8x512xf32>
    %477 = tpu.matmul %475, %476, %cst_185 {dimension_numbers = #tpu.dot_dimension_numbers<[1], [0], [0], [1], [0, 0, 1, 1], [], []>} : vector<8x128xbf16>, vector<128x512xbf16>, vector<8x512xf32> -> vector<8x512xf32>
    %c24_186 = arith.constant 24 : index
    %c0_187 = arith.constant 0 : index
    %478 = vector.load %arg12[%c24_186, %c0_187] : memref<64x512xf32, #tpu.memory_space<vmem>>, vector<8x512xf32>
    %479 = arith.addf %478, %477 : vector<8x512xf32>
    %480 = vector.extract_strided_slice %479 {offsets = [0, 0], sizes = [8, 256], strides = [1, 1]} : vector<8x512xf32> to vector<8x256xf32>
    %481 = arith.negf %480 : vector<8x256xf32>
    %482 = math.exp %481 : vector<8x256xf32>
    %cst_188 = arith.constant 1.000000e+00 : f32
    %483 = vector.broadcast %cst_188 : f32 to vector<8x256xf32>
    %484 = arith.addf %483, %482 : vector<8x256xf32>
    %485 = arith.divf %483, %484 : vector<8x256xf32>
    %486 = vector.extract_strided_slice %485 {offsets = [0, 0], sizes = [8, 128], strides = [1, 1]} : vector<8x256xf32> to vector<8x128xf32>
    %487 = vector.extract_strided_slice %485 {offsets = [0, 128], sizes = [8, 128], strides = [1, 1]} : vector<8x256xf32> to vector<8x128xf32>
    %488 = vector.extract_strided_slice %479 {offsets = [0, 256], sizes = [8, 128], strides = [1, 1]} : vector<8x512xf32> to vector<8x128xf32>
    %489 = vector.extract_strided_slice %479 {offsets = [0, 384], sizes = [8, 128], strides = [1, 1]} : vector<8x512xf32> to vector<8x128xf32>
    %490 = arith.mulf %486, %489 : vector<8x128xf32>
    %491 = arith.addf %488, %490 : vector<8x128xf32>
    %492 = math.tanh %491 : vector<8x128xf32>
    %cst_189 = arith.constant 1.000000e+00 : f32
    %493 = vector.broadcast %cst_189 : f32 to vector<8x128xf32>
    %494 = arith.subf %493, %487 : vector<8x128xf32>
    %495 = arith.mulf %494, %492 : vector<8x128xf32>
    %496 = arith.mulf %487, %473 : vector<8x128xf32>
    %497 = arith.addf %495, %496 : vector<8x128xf32>
    %c24_190 = arith.constant 24 : index
    %c0_191 = arith.constant 0 : index
    %498 = vector.load %arg11[%c24_190, %c0_191] : memref<64x128xf32, #tpu.memory_space<vmem>>, vector<8x128xf32>
    tpu.vector_store %arg11[%c24_190, %c0_191], %497 {strides = array<i32>} : memref<64x128xf32, #tpu.memory_space<vmem>>, vector<8x128xf32>,
    %499 = arith.truncf %497 : vector<8x128xf32> to vector<8x128xbf16>
    %c0_192 = arith.constant 0 : index
    %c0_193 = arith.constant 0 : index
    %500 = vector.load %arg7[%c0_192, %c0_193] : memref<128x512xbf16, #tpu.memory_space<vmem>>, vector<128x512xbf16>
    %cst_194 = arith.constant dense<0.000000e+00> : vector<8x512xf32>
    %501 = tpu.matmul %499, %500, %cst_194 {dimension_numbers = #tpu.dot_dimension_numbers<[1], [0], [0], [1], [0, 0, 1, 1], [], []>} : vector<8x128xbf16>, vector<128x512xbf16>, vector<8x512xf32> -> vector<8x512xf32>
    %c32_195 = arith.constant 32 : index
    %c0_196 = arith.constant 0 : index
    %502 = vector.load %arg12[%c32_195, %c0_196] : memref<64x512xf32, #tpu.memory_space<vmem>>, vector<8x512xf32>
    %503 = arith.addf %502, %501 : vector<8x512xf32>
    %504 = vector.extract_strided_slice %503 {offsets = [0, 0], sizes = [8, 256], strides = [1, 1]} : vector<8x512xf32> to vector<8x256xf32>
    %505 = arith.negf %504 : vector<8x256xf32>
    %506 = math.exp %505 : vector<8x256xf32>
    %cst_197 = arith.constant 1.000000e+00 : f32
    %507 = vector.broadcast %cst_197 : f32 to vector<8x256xf32>
    %508 = arith.addf %507, %506 : vector<8x256xf32>
    %509 = arith.divf %507, %508 : vector<8x256xf32>
    %510 = vector.extract_strided_slice %509 {offsets = [0, 0], sizes = [8, 128], strides = [1, 1]} : vector<8x256xf32> to vector<8x128xf32>
    %511 = vector.extract_strided_slice %509 {offsets = [0, 128], sizes = [8, 128], strides = [1, 1]} : vector<8x256xf32> to vector<8x128xf32>
    %512 = vector.extract_strided_slice %503 {offsets = [0, 256], sizes = [8, 128], strides = [1, 1]} : vector<8x512xf32> to vector<8x128xf32>
    %513 = vector.extract_strided_slice %503 {offsets = [0, 384], sizes = [8, 128], strides = [1, 1]} : vector<8x512xf32> to vector<8x128xf32>
    %514 = arith.mulf %510, %513 : vector<8x128xf32>
    %515 = arith.addf %512, %514 : vector<8x128xf32>
    %516 = math.tanh %515 : vector<8x128xf32>
    %cst_198 = arith.constant 1.000000e+00 : f32
    %517 = vector.broadcast %cst_198 : f32 to vector<8x128xf32>
    %518 = arith.subf %517, %511 : vector<8x128xf32>
    %519 = arith.mulf %518, %516 : vector<8x128xf32>
    %520 = arith.mulf %511, %497 : vector<8x128xf32>
    %521 = arith.addf %519, %520 : vector<8x128xf32>
    %c32_199 = arith.constant 32 : index
    %c0_200 = arith.constant 0 : index
    %522 = vector.load %arg11[%c32_199, %c0_200] : memref<64x128xf32, #tpu.memory_space<vmem>>, vector<8x128xf32>
    tpu.vector_store %arg11[%c32_199, %c0_200], %521 {strides = array<i32>} : memref<64x128xf32, #tpu.memory_space<vmem>>, vector<8x128xf32>,
    %523 = arith.truncf %521 : vector<8x128xf32> to vector<8x128xbf16>
    %c0_201 = arith.constant 0 : index
    %c0_202 = arith.constant 0 : index
    %524 = vector.load %arg7[%c0_201, %c0_202] : memref<128x512xbf16, #tpu.memory_space<vmem>>, vector<128x512xbf16>
    %cst_203 = arith.constant dense<0.000000e+00> : vector<8x512xf32>
    %525 = tpu.matmul %523, %524, %cst_203 {dimension_numbers = #tpu.dot_dimension_numbers<[1], [0], [0], [1], [0, 0, 1, 1], [], []>} : vector<8x128xbf16>, vector<128x512xbf16>, vector<8x512xf32> -> vector<8x512xf32>
    %c40_204 = arith.constant 40 : index
    %c0_205 = arith.constant 0 : index
    %526 = vector.load %arg12[%c40_204, %c0_205] : memref<64x512xf32, #tpu.memory_space<vmem>>, vector<8x512xf32>
    %527 = arith.addf %526, %525 : vector<8x512xf32>
    %528 = vector.extract_strided_slice %527 {offsets = [0, 0], sizes = [8, 256], strides = [1, 1]} : vector<8x512xf32> to vector<8x256xf32>
    %529 = arith.negf %528 : vector<8x256xf32>
    %530 = math.exp %529 : vector<8x256xf32>
    %cst_206 = arith.constant 1.000000e+00 : f32
    %531 = vector.broadcast %cst_206 : f32 to vector<8x256xf32>
    %532 = arith.addf %531, %530 : vector<8x256xf32>
    %533 = arith.divf %531, %532 : vector<8x256xf32>
    %534 = vector.extract_strided_slice %533 {offsets = [0, 0], sizes = [8, 128], strides = [1, 1]} : vector<8x256xf32> to vector<8x128xf32>
    %535 = vector.extract_strided_slice %533 {offsets = [0, 128], sizes = [8, 128], strides = [1, 1]} : vector<8x256xf32> to vector<8x128xf32>
    %536 = vector.extract_strided_slice %527 {offsets = [0, 256], sizes = [8, 128], strides = [1, 1]} : vector<8x512xf32> to vector<8x128xf32>
    %537 = vector.extract_strided_slice %527 {offsets = [0, 384], sizes = [8, 128], strides = [1, 1]} : vector<8x512xf32> to vector<8x128xf32>
    %538 = arith.mulf %534, %537 : vector<8x128xf32>
    %539 = arith.addf %536, %538 : vector<8x128xf32>
    %540 = math.tanh %539 : vector<8x128xf32>
    %cst_207 = arith.constant 1.000000e+00 : f32
    %541 = vector.broadcast %cst_207 : f32 to vector<8x128xf32>
    %542 = arith.subf %541, %535 : vector<8x128xf32>
    %543 = arith.mulf %542, %540 : vector<8x128xf32>
    %544 = arith.mulf %535, %521 : vector<8x128xf32>
    %545 = arith.addf %543, %544 : vector<8x128xf32>
    %c40_208 = arith.constant 40 : index
    %c0_209 = arith.constant 0 : index
    %546 = vector.load %arg11[%c40_208, %c0_209] : memref<64x128xf32, #tpu.memory_space<vmem>>, vector<8x128xf32>
    tpu.vector_store %arg11[%c40_208, %c0_209], %545 {strides = array<i32>} : memref<64x128xf32, #tpu.memory_space<vmem>>, vector<8x128xf32>,
    %547 = arith.truncf %545 : vector<8x128xf32> to vector<8x128xbf16>
    %c0_210 = arith.constant 0 : index
    %c0_211 = arith.constant 0 : index
    %548 = vector.load %arg7[%c0_210, %c0_211] : memref<128x512xbf16, #tpu.memory_space<vmem>>, vector<128x512xbf16>
    %cst_212 = arith.constant dense<0.000000e+00> : vector<8x512xf32>
    %549 = tpu.matmul %547, %548, %cst_212 {dimension_numbers = #tpu.dot_dimension_numbers<[1], [0], [0], [1], [0, 0, 1, 1], [], []>} : vector<8x128xbf16>, vector<128x512xbf16>, vector<8x512xf32> -> vector<8x512xf32>
    %c48_213 = arith.constant 48 : index
    %c0_214 = arith.constant 0 : index
    %550 = vector.load %arg12[%c48_213, %c0_214] : memref<64x512xf32, #tpu.memory_space<vmem>>, vector<8x512xf32>
    %551 = arith.addf %550, %549 : vector<8x512xf32>
    %552 = vector.extract_strided_slice %551 {offsets = [0, 0], sizes = [8, 256], strides = [1, 1]} : vector<8x512xf32> to vector<8x256xf32>
    %553 = arith.negf %552 : vector<8x256xf32>
    %554 = math.exp %553 : vector<8x256xf32>
    %cst_215 = arith.constant 1.000000e+00 : f32
    %555 = vector.broadcast %cst_215 : f32 to vector<8x256xf32>
    %556 = arith.addf %555, %554 : vector<8x256xf32>
    %557 = arith.divf %555, %556 : vector<8x256xf32>
    %558 = vector.extract_strided_slice %557 {offsets = [0, 0], sizes = [8, 128], strides = [1, 1]} : vector<8x256xf32> to vector<8x128xf32>
    %559 = vector.extract_strided_slice %557 {offsets = [0, 128], sizes = [8, 128], strides = [1, 1]} : vector<8x256xf32> to vector<8x128xf32>
    %560 = vector.extract_strided_slice %551 {offsets = [0, 256], sizes = [8, 128], strides = [1, 1]} : vector<8x512xf32> to vector<8x128xf32>
    %561 = vector.extract_strided_slice %551 {offsets = [0, 384], sizes = [8, 128], strides = [1, 1]} : vector<8x512xf32> to vector<8x128xf32>
    %562 = arith.mulf %558, %561 : vector<8x128xf32>
    %563 = arith.addf %560, %562 : vector<8x128xf32>
    %564 = math.tanh %563 : vector<8x128xf32>
    %cst_216 = arith.constant 1.000000e+00 : f32
    %565 = vector.broadcast %cst_216 : f32 to vector<8x128xf32>
    %566 = arith.subf %565, %559 : vector<8x128xf32>
    %567 = arith.mulf %566, %564 : vector<8x128xf32>
    %568 = arith.mulf %559, %545 : vector<8x128xf32>
    %569 = arith.addf %567, %568 : vector<8x128xf32>
    %c48_217 = arith.constant 48 : index
    %c0_218 = arith.constant 0 : index
    %570 = vector.load %arg11[%c48_217, %c0_218] : memref<64x128xf32, #tpu.memory_space<vmem>>, vector<8x128xf32>
    tpu.vector_store %arg11[%c48_217, %c0_218], %569 {strides = array<i32>} : memref<64x128xf32, #tpu.memory_space<vmem>>, vector<8x128xf32>,
    %571 = arith.truncf %569 : vector<8x128xf32> to vector<8x128xbf16>
    %c0_219 = arith.constant 0 : index
    %c0_220 = arith.constant 0 : index
    %572 = vector.load %arg7[%c0_219, %c0_220] : memref<128x512xbf16, #tpu.memory_space<vmem>>, vector<128x512xbf16>
    %cst_221 = arith.constant dense<0.000000e+00> : vector<8x512xf32>
    %573 = tpu.matmul %571, %572, %cst_221 {dimension_numbers = #tpu.dot_dimension_numbers<[1], [0], [0], [1], [0, 0, 1, 1], [], []>} : vector<8x128xbf16>, vector<128x512xbf16>, vector<8x512xf32> -> vector<8x512xf32>
    %c56_222 = arith.constant 56 : index
    %c0_223 = arith.constant 0 : index
    %574 = vector.load %arg12[%c56_222, %c0_223] : memref<64x512xf32, #tpu.memory_space<vmem>>, vector<8x512xf32>
    %575 = arith.addf %574, %573 : vector<8x512xf32>
    %576 = vector.extract_strided_slice %575 {offsets = [0, 0], sizes = [8, 256], strides = [1, 1]} : vector<8x512xf32> to vector<8x256xf32>
    %577 = arith.negf %576 : vector<8x256xf32>
    %578 = math.exp %577 : vector<8x256xf32>
    %cst_224 = arith.constant 1.000000e+00 : f32
    %579 = vector.broadcast %cst_224 : f32 to vector<8x256xf32>
    %580 = arith.addf %579, %578 : vector<8x256xf32>
    %581 = arith.divf %579, %580 : vector<8x256xf32>
    %582 = vector.extract_strided_slice %581 {offsets = [0, 0], sizes = [8, 128], strides = [1, 1]} : vector<8x256xf32> to vector<8x128xf32>
    %583 = vector.extract_strided_slice %581 {offsets = [0, 128], sizes = [8, 128], strides = [1, 1]} : vector<8x256xf32> to vector<8x128xf32>
    %584 = vector.extract_strided_slice %575 {offsets = [0, 256], sizes = [8, 128], strides = [1, 1]} : vector<8x512xf32> to vector<8x128xf32>
    %585 = vector.extract_strided_slice %575 {offsets = [0, 384], sizes = [8, 128], strides = [1, 1]} : vector<8x512xf32> to vector<8x128xf32>
    %586 = arith.mulf %582, %585 : vector<8x128xf32>
    %587 = arith.addf %584, %586 : vector<8x128xf32>
    %588 = math.tanh %587 : vector<8x128xf32>
    %cst_225 = arith.constant 1.000000e+00 : f32
    %589 = vector.broadcast %cst_225 : f32 to vector<8x128xf32>
    %590 = arith.subf %589, %583 : vector<8x128xf32>
    %591 = arith.mulf %590, %588 : vector<8x128xf32>
    %592 = arith.mulf %583, %569 : vector<8x128xf32>
    %593 = arith.addf %591, %592 : vector<8x128xf32>
    %c56_226 = arith.constant 56 : index
    %c0_227 = arith.constant 0 : index
    %594 = vector.load %arg11[%c56_226, %c0_227] : memref<64x128xf32, #tpu.memory_space<vmem>>, vector<8x128xf32>
    tpu.vector_store %arg11[%c56_226, %c0_227], %593 {strides = array<i32>} : memref<64x128xf32, #tpu.memory_space<vmem>>, vector<8x128xf32>,
    %c0_228 = arith.constant 0 : index
    %c0_229 = arith.constant 0 : index
    %595 = vector.load %arg11[%c0_228, %c0_229] : memref<64x128xf32, #tpu.memory_space<vmem>>, vector<64x128xf32>
    %596 = arith.truncf %595 : vector<64x128xf32> to vector<64x128xbf16>
    %c0_230 = arith.constant 0 : index
    %c0_231 = arith.constant 0 : index
    %597 = vector.load %arg8[%c0_230, %c0_231] : memref<128x128xbf16, #tpu.memory_space<vmem>>, vector<128x128xbf16>
    %cst_232 = arith.constant dense<0.000000e+00> : vector<64x128xf32>
    %598 = tpu.matmul %596, %597, %cst_232 {dimension_numbers = #tpu.dot_dimension_numbers<[1], [0], [0], [1], [0, 0, 1, 1], [], []>} : vector<64x128xbf16>, vector<128x128xbf16>, vector<64x128xf32> -> vector<64x128xf32>
    %c0_233 = arith.constant 0 : index
    %c0_234 = arith.constant 0 : index
    %599 = vector.load %arg9[%c0_233, %c0_234] : memref<1x128xf32, #tpu.memory_space<vmem>>, vector<1x128xf32>
    %600 = vector.broadcast %599 : vector<1x128xf32> to vector<64x128xf32>
    %601 = arith.addf %598, %600 : vector<64x128xf32>
    %602 = tpu.iota {dimensions = array<i32: 1>} : vector<1x128xi32>
    %c24_i32 = arith.constant 24 : i32
    %603 = vector.broadcast %c24_i32 : i32 to vector<1x128xi32>
    %604 = arith.cmpi slt, %602, %603 : vector<1x128xi32>
    %c24_i32_235 = arith.constant 24 : i32
    %605 = vector.broadcast %c24_i32_235 : i32 to vector<1x128xi32>
    %606 = arith.cmpi sge, %602, %605 : vector<1x128xi32>
    %c36_i32 = arith.constant 36 : i32
    %607 = vector.broadcast %c36_i32 : i32 to vector<1x128xi32>
    %608 = arith.cmpi slt, %602, %607 : vector<1x128xi32>
    %609 = arith.andi %606, %608 : vector<1x128xi1>
    %cst_236 = arith.constant -1.000000e+30 : f32
    %610 = vector.shape_cast %604 : vector<1x128xi1> to vector<1x128xi1>
    %611 = vector.broadcast %610 : vector<1x128xi1> to vector<64x128xi1>
    %612 = vector.broadcast %cst_236 : f32 to vector<64x128xf32>
    %613 = arith.select %611, %601, %612 : vector<64x128xi1>, vector<64x128xf32>
    %cst_237 = arith.constant dense<0xFF800000> : vector<64xf32>
    %614 = vector.multi_reduction <maximumf>, %613, %cst_237 [1] : vector<64x128xf32> to vector<64xf32>
    %615 = vector.shape_cast %614 : vector<64xf32> to vector<64x1xf32>
    %cst_238 = arith.constant -1.000000e+30 : f32
    %616 = vector.shape_cast %609 : vector<1x128xi1> to vector<1x128xi1>
    %617 = vector.broadcast %616 : vector<1x128xi1> to vector<64x128xi1>
    %618 = vector.broadcast %cst_238 : f32 to vector<64x128xf32>
    %619 = arith.select %617, %601, %618 : vector<64x128xi1>, vector<64x128xf32>
    %cst_239 = arith.constant dense<0xFF800000> : vector<64xf32>
    %620 = vector.multi_reduction <maximumf>, %619, %cst_239 [1] : vector<64x128xf32> to vector<64xf32>
    %621 = vector.shape_cast %620 : vector<64xf32> to vector<64x1xf32>
    %622 = vector.shape_cast %604 : vector<1x128xi1> to vector<1x128xi1>
    %623 = vector.broadcast %622 : vector<1x128xi1> to vector<64x128xi1>
    %624 = vector.shape_cast %615 : vector<64x1xf32> to vector<64x1xf32>
    %625 = vector.broadcast %624 : vector<64x1xf32> to vector<64x128xf32>
    %626 = vector.shape_cast %621 : vector<64x1xf32> to vector<64x1xf32>
    %627 = vector.broadcast %626 : vector<64x1xf32> to vector<64x128xf32>
    %628 = arith.select %623, %625, %627 : vector<64x128xi1>, vector<64x128xf32>
    %629 = arith.ori %604, %609 : vector<1x128xi1>
    %630 = arith.subf %601, %628 : vector<64x128xf32>
    %631 = math.exp %630 : vector<64x128xf32>
    %cst_240 = arith.constant 0.000000e+00 : f32
    %632 = vector.shape_cast %629 : vector<1x128xi1> to vector<1x128xi1>
    %633 = vector.broadcast %632 : vector<1x128xi1> to vector<64x128xi1>
    %634 = vector.broadcast %cst_240 : f32 to vector<64x128xf32>
    %635 = arith.select %633, %631, %634 : vector<64x128xi1>, vector<64x128xf32>
    %cst_241 = arith.constant 0.000000e+00 : f32
    %636 = vector.shape_cast %604 : vector<1x128xi1> to vector<1x128xi1>
    %637 = vector.broadcast %636 : vector<1x128xi1> to vector<64x128xi1>
    %638 = vector.broadcast %cst_241 : f32 to vector<64x128xf32>
    %639 = arith.select %637, %635, %638 : vector<64x128xi1>, vector<64x128xf32>
    %cst_242 = arith.constant dense<0.000000e+00> : vector<64xf32>
    %640 = vector.multi_reduction <add>, %639, %cst_242 [1] : vector<64x128xf32> to vector<64xf32>
    %641 = vector.shape_cast %640 : vector<64xf32> to vector<64x1xf32>
    %cst_243 = arith.constant 0.000000e+00 : f32
    %642 = vector.shape_cast %609 : vector<1x128xi1> to vector<1x128xi1>
    %643 = vector.broadcast %642 : vector<1x128xi1> to vector<64x128xi1>
    %644 = vector.broadcast %cst_243 : f32 to vector<64x128xf32>
    %645 = arith.select %643, %635, %644 : vector<64x128xi1>, vector<64x128xf32>
    %cst_244 = arith.constant dense<0.000000e+00> : vector<64xf32>
    %646 = vector.multi_reduction <add>, %645, %cst_244 [1] : vector<64x128xf32> to vector<64xf32>
    %647 = vector.shape_cast %646 : vector<64xf32> to vector<64x1xf32>
    %648 = vector.shape_cast %604 : vector<1x128xi1> to vector<1x128xi1>
    %649 = vector.broadcast %648 : vector<1x128xi1> to vector<64x128xi1>
    %650 = vector.shape_cast %641 : vector<64x1xf32> to vector<64x1xf32>
    %651 = vector.broadcast %650 : vector<64x1xf32> to vector<64x128xf32>
    %652 = vector.shape_cast %647 : vector<64x1xf32> to vector<64x1xf32>
    %653 = vector.broadcast %652 : vector<64x1xf32> to vector<64x128xf32>
    %654 = arith.select %649, %651, %653 : vector<64x128xi1>, vector<64x128xf32>
    %655 = arith.divf %635, %654 : vector<64x128xf32>
    %c0_245 = arith.constant 0 : index
    %c0_246 = arith.constant 0 : index
    %656 = vector.load %arg10[%c0_245, %c0_246] : memref<64x128xf32, #tpu.memory_space<vmem>>, vector<64x128xf32>
    tpu.vector_store %arg10[%c0_245, %c0_246], %655 {strides = array<i32>} : memref<64x128xf32, #tpu.memory_space<vmem>>, vector<64x128xf32>,
    return
  }
}

</mosaic_0001>

<bundles_post_ra>
// kernel: melody_lm_forward.1
= control target key start
LH: loop header
LB: loop body
LE: loop exit
PB: predicated region body
PF: predicated region fallthrough
CT: control target
= control target key end

     0   :  { %v12816_v1 = vmov 0   ;;  %s12805_s1 = inlined_call_operand.vmem [shape: bf16[128,512], index: 1, kind: input, shape index: {}]   ;;  %s12806_s0 = inlined_call_operand.vmem [shape: f32[64,512], index: 0, kind: input, shape index: {}]   ;;  %s12807_s2 = inlined_call_operand.vmem [shape: bf16[128,512], index: 2, kind: input, shape index: {}]   ;;  %s12808_s4 = inlined_call_operand.vmem [shape: bf16[128,512], index: 4, kind: input, shape index: {}]   ;;  %s12809_s3 = inlined_call_operand.vmem [shape: f32[1,512], index: 3, kind: input, shape index: {}]   ;;  %s12810_s5 = inlined_call_operand.vmem [shape: bf16[128,512], index: 5, kind: input, shape index: {}]   ;;  %s12811_s7 = inlined_call_operand.vmem [shape: bf16[128,512], index: 7, kind: input, shape index: {}]   ;;  %s12812_s6 = inlined_call_operand.vmem [shape: f32[1,512], index: 6, kind: input, shape index: {}]   ;;  %s12813_s8 = inlined_call_operand.vmem [shape: bf16[128,128], index: 8, kind: input, shape index: {}]   ;;  %s12814_s9 = inlined_call_operand.vmem [shape: f32[1,128], index: 9, kind: input, shape index: {}]   ;;  %s12815_s10 = inlined_call_operand.vmem [shape: f32[64,128], index: 10, kind: output, shape index: {}]  }
   0x1   :  { %v10095_v0 = vld [vmem:[%s12805_s1 + $0xe4] ss:$16 sps:$4 sm:$0xff]   ;;  %260 = vmatprep.mubr.bf16.mxu1 %v12816_v1  ;;  %563 = vmatprep.mubr.bf16.mxu0 %v12816_v1  ;;  %v10102_v2 = vld [vmem:[%s12805_s1 + $0xe0] ss:$16 sps:$4 sm:$0xff]   ;;  %v10203_v17 = vld [vmem:[%s12805_s1 + $0xec] ss:$16 sps:$4 sm:$0xff]  }
   0x2   :  { %228 = vmatprep.subr.bf16.mxu1 %v10095_v0  ;;  %v10108_v3 = vld [vmem:[%s12805_s1 + $0xc4] ss:$16 sps:$4 sm:$0xff]   ;;  %531 = vmatprep.subr.bf16.mxu0 %v10095_v0  ;;  %v10115_v4 = vld [vmem:[%s12805_s1 + $0xc0] ss:$16 sps:$4 sm:$0xff]   ;;  %v10212_v18 = vld [vmem:[%s12805_s1 + $0xe8] ss:$16 sps:$4 sm:$0xff]  }
   0x3   :  { %229 = vmatpush1.bf16.msra.mxu1 %v10102_v2  ;;  %532 = vmatpush1.bf16.msra.mxu0 %v10102_v2  ;;  %v10122_v5 = vld [vmem:[%s12805_s1 + $0xa4] ss:$16 sps:$4 sm:$0xff]   ;;  %v10129_v6 = vld [vmem:[%s12805_s1 + $0xa0] ss:$16 sps:$4 sm:$0xff]   ;;  %v10220_v19 = vld [vmem:[%s12805_s1 + $0xcc] ss:$16 sps:$4 sm:$0xff]  }
   0x4   :  { %230 = vmatprep.subr.bf16.mxu1 %v10108_v3  ;;  %533 = vmatprep.subr.bf16.mxu0 %v10108_v3  ;;  %v10136_v7 = vld [vmem:[%s12805_s1 + $0x84] ss:$16 sps:$4 sm:$0xff]   ;;  %v10143_v8 = vld [vmem:[%s12805_s1 + $0x80] ss:$16 sps:$4 sm:$0xff]   ;;  %v10228_v20 = vld [vmem:[%s12805_s1 + $0xc8] ss:$16 sps:$4 sm:$0xff]  }
   0x5   :  { %v10150_v9 = vld [vmem:[%s12805_s1 + $0x64] ss:$16 sps:$4 sm:$0xff]   ;;  %v10157_v10 = vld [vmem:[%s12805_s1 + $0x60] ss:$16 sps:$4 sm:$0xff]   ;;  %v10235_v21 = vld [vmem:[%s12805_s1 + $0xac] ss:$16 sps:$4 sm:$0xff]  }
   0x6   :  { %v10164_v11 = vld [vmem:[%s12805_s1 + $0x44] ss:$16 sps:$4 sm:$0xff]   ;;  %v10171_v12 = vld [vmem:[%s12805_s1 + $0x40] ss:$16 sps:$4 sm:$0xff]   ;;  %v10241_v22 = vld [vmem:[%s12805_s1 + $0xa8] ss:$16 sps:$4 sm:$0xff]  }
   0x7   :  { %231 = vmatpush1.bf16.msra.mxu1 %v10115_v4  ;;  %534 = vmatpush1.bf16.msra.mxu0 %v10115_v4  ;;  %v10178_v13 = vld [vmem:[%s12805_s1 + $0x24] ss:$16 sps:$4 sm:$0xff]   ;;  %v10184_v14 = vld [vmem:[%s12805_s1 + $0x20] ss:$16 sps:$4 sm:$0xff]   ;;  %v10247_v23 = vld [vmem:[%s12805_s1 + $0x8c] ss:$16 sps:$4 sm:$0xff]  }
   0x8   :  { %232 = vmatprep.subr.bf16.mxu1 %v10122_v5  ;;  %535 = vmatprep.subr.bf16.mxu0 %v10122_v5  ;;  %v10189_v15 = vld [vmem:[%s12805_s1 + $0x4] ss:$16 sps:$4 sm:$0xff]   ;;  %v10198_v16 = vld [vmem:[%s12805_s1] ss:$16 sps:$4 sm:$0xff]   ;;  %v10253_v24 = vld [vmem:[%s12805_s1 + $0x88] ss:$16 sps:$4 sm:$0xff]  }
   0x9   :  { %v10259_v25 = vld [vmem:[%s12805_s1 + $0x6c] ss:$16 sps:$4 sm:$0xff]   ;;  %v10265_v26 = vld [vmem:[%s12805_s1 + $0x68] ss:$16 sps:$4 sm:$0xff]   ;;  %v310_v33 = vld [vmem:[%s12806_s0] sm:$0xff] }
   0xa   :  { %v10271_v27 = vld [vmem:[%s12805_s1 + $0x4c] ss:$16 sps:$4 sm:$0xff]   ;;  %v10277_v28 = vld [vmem:[%s12805_s1 + $0x48] ss:$16 sps:$4 sm:$0xff]   ;;  %v312_v50 = vld [vmem:[%s12806_s0 + $0x10] sm:$0xff] }
   0xb   :  { %233 = vmatpush1.bf16.msra.mxu1 %v10129_v6  ;;  %536 = vmatpush1.bf16.msra.mxu0 %v10129_v6  ;;  %v10283_v29 = vld [vmem:[%s12805_s1 + $0x2c] ss:$16 sps:$4 sm:$0xff]   ;;  %v10289_v30 = vld [vmem:[%s12805_s1 + $0x28] ss:$16 sps:$4 sm:$0xff]  }
   0xc   :  { %234 = vmatprep.subr.bf16.mxu1 %v10136_v7  ;;  %537 = vmatprep.subr.bf16.mxu0 %v10136_v7  ;;  %v10295_v31 = vld [vmem:[%s12805_s1 + $0xc] ss:$16 sps:$4 sm:$0xff]   ;;  %v10301_v32 = vld [vmem:[%s12805_s1 + $0x8] ss:$16 sps:$4 sm:$0xff]  }
   0xd   :  { %v311_v39 = vld [vmem:[%s12806_s0 + $0x8] sm:$0xff]  ;;  %v313_v47 = vld [vmem:[%s12806_s0 + $0x18] sm:$0xff] }
   0xf   :  { %235 = vmatpush1.bf16.msra.mxu1 %v10143_v8  ;;  %538 = vmatpush1.bf16.msra.mxu0 %v10143_v8 }
  0x10   :  { %236 = vmatprep.subr.bf16.mxu1 %v10150_v9  ;;  %539 = vmatprep.subr.bf16.mxu0 %v10150_v9 }
  0x13   :  { %237 = vmatpush1.bf16.msra.mxu1 %v10157_v10  ;;  %540 = vmatpush1.bf16.msra.mxu0 %v10157_v10 }
  0x14   :  { %238 = vmatprep.subr.bf16.mxu1 %v10164_v11  ;;  %541 = vmatprep.subr.bf16.mxu0 %v10164_v11 }
  0x17   :  { %239 = vmatpush1.bf16.msra.mxu1 %v10171_v12  ;;  %542 = vmatpush1.bf16.msra.mxu0 %v10171_v12 }
  0x18   :  { %240 = vmatprep.subr.bf16.mxu1 %v10178_v13  ;;  %543 = vmatprep.subr.bf16.mxu0 %v10178_v13 }
  0x1b   :  { %241 = vmatpush1.bf16.msra.mxu1 %v10184_v14  ;;  %544 = vmatpush1.bf16.msra.mxu0 %v10184_v14 }
  0x1c   :  { %242 = vmatprep.subr.bf16.mxu1 %v10189_v15  ;;  %545 = vmatprep.subr.bf16.mxu0 %v10189_v15 }
  0x1f   :  { %243 = vmatpush1.bf16.msra.mxu1 %v10198_v16  ;;  %546 = vmatpush1.bf16.msra.mxu0 %v10198_v16 }
  0x20   :  { %269 = vmatprep.subr.bf16.mxu1 %v10203_v17  ;;  %834 = vmatprep.subr.bf16.mxu0 %v10095_v0 }
  0x22   :  { %261 = vmatmul.mubr.bf16.vlgmr.msra.gmra.mxu1 %v12816_v1 }
  0x23   :  { %270 = vmatpush1.bf16.msra.mxu1 %v10212_v18  ;;  %301 = vmatprep.mubr.bf16.mxu1 %v12816_v1 }
  0x24   :  { %271 = vmatprep.subr.bf16.mxu1 %v10220_v19 }
  0x27   :  { %272 = vmatpush1.bf16.msra.mxu1 %v10228_v20 }
  0x28   :  { %273 = vmatprep.subr.bf16.mxu1 %v10235_v21 }
  0x2b   :  { %274 = vmatpush1.bf16.msra.mxu1 %v10241_v22 }
  0x2c   :  { %275 = vmatprep.subr.bf16.mxu1 %v10247_v23 }
  0x2f   :  { %276 = vmatpush1.bf16.msra.mxu1 %v10253_v24 }
  0x30   :  { %277 = vmatprep.subr.bf16.mxu1 %v10259_v25 }
  0x33   :  { %278 = vmatpush1.bf16.msra.mxu1 %v10265_v26 }
  0x34   :  { %279 = vmatprep.subr.bf16.mxu1 %v10271_v27 }
  0x37   :  { %280 = vmatpush1.bf16.msra.mxu1 %v10277_v28 }
  0x38   :  { %281 = vmatprep.subr.bf16.mxu1 %v10283_v29 }
  0x3b   :  { %282 = vmatpush1.bf16.msra.mxu1 %v10289_v30 }
  0x3c   :  { %283 = vmatprep.subr.bf16.mxu1 %v10295_v31 }
  0x3f   :  { %284 = vmatpush1.bf16.msra.mxu1 %v10301_v32 }
  0x40   :  { %572 = vmatprep.subr.bf16.mxu1 %v10203_v17 }
  0x42   :  { %302 = vmatmul.mubr.bf16.vlgmr.msra.gmra.mxu1 %v12816_v1 }
  0x43   :  { %573 = vmatpush1.bf16.msra.mxu1 %v10212_v18  ;;  %604 = vmatprep.mubr.bf16.mxu1 %v12816_v1 }
  0x44   :  { %574 = vmatprep.subr.bf16.mxu1 %v10220_v19 }
  0x47   :  { %575 = vmatpush1.bf16.msra.mxu1 %v10228_v20 }
  0x48   :  { %576 = vmatprep.subr.bf16.mxu1 %v10235_v21 }
  0x4b   :  { %577 = vmatpush1.bf16.msra.mxu1 %v10241_v22 }
  0x4c   :  { %578 = vmatprep.subr.bf16.mxu1 %v10247_v23 }
  0x4f   :  { %579 = vmatpush1.bf16.msra.mxu1 %v10253_v24 }
  0x50   :  { %580 = vmatprep.subr.bf16.mxu1 %v10259_v25 }
  0x53   :  { %581 = vmatpush1.bf16.msra.mxu1 %v10265_v26 }
  0x54   :  { %582 = vmatprep.subr.bf16.mxu1 %v10271_v27 }
  0x57   :  { %583 = vmatpush1.bf16.msra.mxu1 %v10277_v28 }
  0x58   :  { %584 = vmatprep.subr.bf16.mxu1 %v10283_v29 }
  0x5b   :  { %585 = vmatpush1.bf16.msra.mxu1 %v10289_v30 }
  0x5c   :  { %586 = vmatprep.subr.bf16.mxu1 %v10295_v31 }
  0x5f   :  { %587 = vmatpush1.bf16.msra.mxu1 %v10301_v32 }
  0x60   :  { %875 = vmatprep.subr.bf16.mxu1 %v10203_v17 }
  0xe2   :  { %v262_v34 = vpop.f32.mrf.mxu1 }
  0xe3   :  { %v314_v35 = vadd.f32 %v310_v33, %v262_v34  ;;  %v613_v34 = vld [vmem:[%s12806_s0 + $0x20] sm:$0xff] }
  0xe4   :  { %v264_v36 = vpop.f32.mrf.mxu1 }
  0xe5   :  { %v8478_v37 = vmul.f32 -1.442695, %v314_v35  ;;  %v315_v41 = vadd.f32 %v311_v39, %v264_v36 }
  0xe6   :  { %v266_v38 = vpop.f32.mrf.mxu1 }
  0xe7   :  { %9764 = vpow2.f32 %v8478_v37  ;;  %v8479_v42 = vmul.f32 -1.442695, %v315_v41  ;;  %v614_v41 = vld [vmem:[%s12806_s0 + $0x28] sm:$0xff] }
  0xe8   :  { %v267_v40 = vpop.f32.mrf.mxu1 }
  0xe9   :  { %9766 = vpow2.f32 %v8479_v42 }
  0xf4   :  { %v9765_v43 = vpop.eup %9764 }
  0xf5   :  { %v324_v44 = vadd.f32 1.0, %v9765_v43 }
  0xf6   :  { %v9767_v45 = vpop.eup %9766 }
  0xf7   :  { %9768 = vrcp.f32 %v324_v44  ;;  %v325_v48 = vadd.f32 1.0, %v9767_v45 }
  0xf9   :  { %9770 = vrcp.f32 %v325_v48 }
 0x102   :  { %v303_v46 = vpop.f32.mrf.mxu1 }
 0x103   :  { %v316_v54 = vadd.f32 %v312_v50, %v303_v46  ;;  %v616_v50 = vld [vmem:[%s12806_s0 + $0x38] sm:$0xff] }
 0x104   :  { %v9769_v49 = vpop.eup %9768  ;;  %v305_v51 = vpop.f32.mrf.mxu1 }
 0x105   :  { %v317_v52 = vadd.f32 %v313_v47, %v305_v51 }
 0x106   :  { %v307_v53 = vpop.f32.mrf.mxu1  ;;  %v9771_v58 = vpop.eup %9770 }
 0x107   :  { %v330_v55 = vmul.f32 %v9769_v49, %v317_v52  ;;  %v333_v59 = vsub.f32 1.0, %v9771_v58  ;;  %v335_v62 = vmul.f32 0.0, %v9771_v58  ;;  %v615_v52 = vld [vmem:[%s12806_s0 + $0x30] sm:$0xff] }
 0x108   :  { %v308_v56 = vpop.f32.mrf.mxu1 }
 0x109   :  { %v331_v57 = vadd.f32 %v330_v55, %v316_v54 }
 0x10b   :  { %9772 = vtanh.f32 %v331_v57 }
 0x118   :  { %v9773_v60 = vpop.eup %9772 }
 0x119   :  { %v334_v61 = vmul.f32 %v9773_v60, %v333_v59 }
 0x11b   :  { %v10336_v63 = vadd.f32 %v335_v62, %v334_v61 }
 0x11d   :  { %v338_v33 = vpack.c.bf16 %v10336_v63, %v10336_v63 }
 0x11f   :  { %564 = vmatmul.mubr.bf16.vlgmr.msra.gmra.mxu0 %v338_v33  ;;  %605 = vmatmul.mubr.bf16.vlgmr.msra.gmra.mxu1 %v338_v33 }
 0x120   :  { %835 = vmatpush1.bf16.msra.mxu0 %v10102_v2  ;;  %876 = vmatpush1.bf16.msra.mxu1 %v10212_v18 }
 0x121   :  { %836 = vmatprep.subr.bf16.mxu0 %v10108_v3  ;;  %877 = vmatprep.subr.bf16.mxu1 %v10220_v19 }
 0x122   :  { %866 = vmatprep.mubr.bf16.mxu0 %v12816_v1  ;;  %907 = vmatprep.mubr.bf16.mxu1 %v12816_v1 }
 0x124   :  { %837 = vmatpush1.bf16.msra.mxu0 %v10115_v4  ;;  %878 = vmatpush1.bf16.msra.mxu1 %v10228_v20 }
 0x125   :  { %838 = vmatprep.subr.bf16.mxu0 %v10122_v5  ;;  %879 = vmatprep.subr.bf16.mxu1 %v10235_v21 }
 0x128   :  { %839 = vmatpush1.bf16.msra.mxu0 %v10129_v6  ;;  %880 = vmatpush1.bf16.msra.mxu1 %v10241_v22 }
 0x129   :  { %840 = vmatprep.subr.bf16.mxu0 %v10136_v7  ;;  %881 = vmatprep.subr.bf16.mxu1 %v10247_v23 }
 0x12c   :  { %841 = vmatpush1.bf16.msra.mxu0 %v10143_v8  ;;  %882 = vmatpush1.bf16.msra.mxu1 %v10253_v24 }
 0x12d   :  { %842 = vmatprep.subr.bf16.mxu0 %v10150_v9  ;;  %883 = vmatprep.subr.bf16.mxu1 %v10259_v25 }
 0x130   :  { %843 = vmatpush1.bf16.msra.mxu0 %v10157_v10  ;;  %884 = vmatpush1.bf16.msra.mxu1 %v10265_v26 }
 0x131   :  { %844 = vmatprep.subr.bf16.mxu0 %v10164_v11  ;;  %885 = vmatprep.subr.bf16.mxu1 %v10271_v27 }
 0x134   :  { %845 = vmatpush1.bf16.msra.mxu0 %v10171_v12  ;;  %886 = vmatpush1.bf16.msra.mxu1 %v10277_v28 }
 0x135   :  { %846 = vmatprep.subr.bf16.mxu0 %v10178_v13  ;;  %887 = vmatprep.subr.bf16.mxu1 %v10283_v29 }
 0x138   :  { %847 = vmatpush1.bf16.msra.mxu0 %v10184_v14  ;;  %888 = vmatpush1.bf16.msra.mxu1 %v10289_v30 }
 0x139   :  { %848 = vmatprep.subr.bf16.mxu0 %v10189_v15  ;;  %889 = vmatprep.subr.bf16.mxu1 %v10295_v31 }
 0x13c   :  { %849 = vmatpush1.bf16.msra.mxu0 %v10198_v16  ;;  %890 = vmatpush1.bf16.msra.mxu1 %v10301_v32 }
 0x13d   :  { %1137 = vmatprep.subr.bf16.mxu0 %v10095_v0  ;;  %1178 = vmatprep.subr.bf16.mxu1 %v10203_v17 }
 0x1df   :  { %v565_v35 = vpop.f32.mrf.mxu0  ;;  %v606_v36 = vpop.f32.mrf.mxu1 }
 0x1e0   :  { %v617_v37 = vadd.f32 %v613_v34, %v565_v35  ;;  %v619_v55 = vadd.f32 %v615_v52, %v606_v36  ;;  %v10557_v52 = vld [vmem:[%s12805_s1 + $0x20] ss:$16 sps:$4 sm:$0xff]  }
 0x1e1   :  { %v567_v38 = vpop.f32.mrf.mxu0  ;;  %v608_v39 = vpop.f32.mrf.mxu1 }
 0x1e2   :  { %v8512_v40 = vmul.f32 -1.442695, %v617_v37  ;;  %v618_v45 = vadd.f32 %v614_v41, %v567_v38  ;;  %v620_v53 = vadd.f32 %v616_v50, %v608_v39  ;;  %v10544_v50 = vld [vmem:[%s12805_s1 + $0x8] ss:$16 sps:$4 sm:$0xff]  }
 0x1e3   :  { %v569_v42 = vpop.f32.mrf.mxu0  ;;  %v610_v43 = vpop.f32.mrf.mxu1 }
 0x1e4   :  { %9774 = vpow2.f32 %v8512_v40  ;;  %v8513_v46 = vmul.f32 -1.442695, %v618_v45 }
 0x1e5   :  { %v570_v0 = vpop.f32.mrf.mxu0  ;;  %v611_v44 = vpop.f32.mrf.mxu1 }
 0x1e6   :  { %9776 = vpow2.f32 %v8513_v46  ;;  %v10521_v46 = vld [vmem:[%s12805_s1 + $0x28] ss:$16 sps:$4 sm:$0xff]  }
 0x1f1   :  { %v9775_v47 = vpop.eup %9774 }
 0x1f2   :  { %v627_v48 = vadd.f32 1.0, %v9775_v47  ;;  %v10526_v47 = vld [vmem:[%s12805_s1 + $0x2c] ss:$16 sps:$4 sm:$0xff]  }
 0x1f3   :  { %v9777_v49 = vpop.eup %9776 }
 0x1f4   :  { %9778 = vrcp.f32 %v627_v48  ;;  %v628_v51 = vadd.f32 1.0, %v9777_v49  ;;  %v10531_v48 = vld [vmem:[%s12805_s1 + $0xc] ss:$16 sps:$4 sm:$0xff]   ;;  %v10538_v49 = vld [vmem:[%s12805_s1 + $0x40] ss:$16 sps:$4 sm:$0xff]  }
 0x1f6   :  { %9780 = vrcp.f32 %v628_v51  ;;  %v10550_v51 = vld [vmem:[%s12805_s1 + $0x24] ss:$16 sps:$4 sm:$0xff]  }
 0x201   :  { %v9779_v54 = vpop.eup %9778 }
 0x202   :  { %v633_v56 = vmul.f32 %v9779_v54, %v620_v53  ;;  %v10564_v53 = vld [vmem:[%s12805_s1 + $0x4] ss:$16 sps:$4 sm:$0xff]   ;;  %v10570_v54 = vld [vmem:[%s12805_s1] ss:$16 sps:$4 sm:$0xff]  }
 0x203   :  { %v9781_v58 = vpop.eup %9780 }
 0x204   :  { %v634_v57 = vadd.f32 %v633_v56, %v619_v55  ;;  %v636_v59 = vsub.f32 1.0, %v9781_v58  ;;  %v638_v62 = vmul.f32 %v9781_v58, %v10336_v63  ;;  %v1219_v55 = vld [vmem:[%s12806_s0 + $0x60] sm:$0xff] }
 0x206   :  { %9782 = vtanh.f32 %v634_v57 }
 0x213   :  { %v9783_v60 = vpop.eup %9782 }
 0x214   :  { %v637_v61 = vmul.f32 %v9783_v60, %v636_v59 }
 0x216   :  { %v10387_v33 = vadd.f32 %v638_v62, %v637_v61  ;;  %v1220_v62 = vld [vmem:[%s12806_s0 + $0x68] sm:$0xff] }
 0x218   :  { %v641_v34 = vpack.c.bf16 %v10387_v33, %v10387_v33 }
 0x21a   :  { %867 = vmatmul.mubr.bf16.vlgmr.msra.gmra.mxu0 %v641_v34  ;;  %908 = vmatmul.mubr.bf16.vlgmr.msra.gmra.mxu1 %v641_v34 }
 0x21b   :  { %1138 = vmatpush1.bf16.msra.mxu0 %v10102_v2  ;;  %1179 = vmatpush1.bf16.msra.mxu1 %v10212_v18  ;;  %v916_v2 = vld [vmem:[%s12806_s0 + $0x40] sm:$0xff] }
 0x21c   :  { %1139 = vmatprep.subr.bf16.mxu0 %v10108_v3  ;;  %1180 = vmatprep.subr.bf16.mxu1 %v10220_v19 }
 0x21d   :  { %1169 = vmatprep.mubr.bf16.mxu0 %v12816_v1  ;;  %1210 = vmatprep.mubr.bf16.mxu1 %v12816_v1 }
 0x21f   :  { %1140 = vmatpush1.bf16.msra.mxu0 %v10115_v4  ;;  %1181 = vmatpush1.bf16.msra.mxu1 %v10228_v20 }
 0x220   :  { %1141 = vmatprep.subr.bf16.mxu0 %v10122_v5  ;;  %1182 = vmatprep.subr.bf16.mxu1 %v10235_v21 }
 0x223   :  { %1142 = vmatpush1.bf16.msra.mxu0 %v10129_v6  ;;  %1183 = vmatpush1.bf16.msra.mxu1 %v10241_v22 }
 0x224   :  { %1143 = vmatprep.subr.bf16.mxu0 %v10136_v7  ;;  %1184 = vmatprep.subr.bf16.mxu1 %v10247_v23 }
 0x227   :  { %1144 = vmatpush1.bf16.msra.mxu0 %v10143_v8  ;;  %1185 = vmatpush1.bf16.msra.mxu1 %v10253_v24 }
 0x228   :  { %1145 = vmatprep.subr.bf16.mxu0 %v10150_v9  ;;  %1186 = vmatprep.subr.bf16.mxu1 %v10259_v25  ;;  %v917_v9 = vld [vmem:[%s12806_s0 + $0x48] sm:$0xff] }
 0x22b   :  { %1146 = vmatpush1.bf16.msra.mxu0 %v10157_v10  ;;  %1187 = vmatpush1.bf16.msra.mxu1 %v10265_v26 }
 0x22c   :  { %1147 = vmatprep.subr.bf16.mxu0 %v10164_v11  ;;  %1188 = vmatprep.subr.bf16.mxu1 %v10271_v27 }
 0x22f   :  { %1148 = vmatpush1.bf16.msra.mxu0 %v10171_v12  ;;  %1189 = vmatpush1.bf16.msra.mxu1 %v10277_v28 }
 0x230   :  { %1149 = vmatprep.subr.bf16.mxu0 %v10178_v13  ;;  %1190 = vmatprep.subr.bf16.mxu1 %v10283_v29 }
 0x233   :  { %1150 = vmatpush1.bf16.msra.mxu0 %v10184_v14  ;;  %1191 = vmatpush1.bf16.msra.mxu1 %v10289_v30  ;;  %v919_v30 = vld [vmem:[%s12806_s0 + $0x58] sm:$0xff] }
 0x234   :  { %1151 = vmatprep.subr.bf16.mxu0 %v10189_v15  ;;  %1192 = vmatprep.subr.bf16.mxu1 %v10295_v31 }
 0x237   :  { %1152 = vmatpush1.bf16.msra.mxu0 %v10198_v16  ;;  %1193 = vmatpush1.bf16.msra.mxu1 %v10301_v32  ;;  %v918_v32 = vld [vmem:[%s12806_s0 + $0x50] sm:$0xff] }
 0x238   :  { %1481 = vmatprep.subr.bf16.mxu1 %v10203_v17 }
 0x2da   :  { %v868_v3 = vpop.f32.mrf.mxu0  ;;  %v909_v4 = vpop.f32.mrf.mxu1 }
 0x2db   :  { %v920_v5 = vadd.f32 %v916_v2, %v868_v3  ;;  %v922_v37 = vadd.f32 %v918_v32, %v909_v4 }
 0x2dc   :  { %v870_v6 = vpop.f32.mrf.mxu0  ;;  %v911_v7 = vpop.f32.mrf.mxu1 }
 0x2dd   :  { %v8546_v8 = vmul.f32 -1.442695, %v920_v5  ;;  %v921_v14 = vadd.f32 %v917_v9, %v870_v6  ;;  %v923_v35 = vadd.f32 %v919_v30, %v911_v7 }
 0x2de   :  { %v872_v10 = vpop.f32.mrf.mxu0  ;;  %v913_v11 = vpop.f32.mrf.mxu1 }
 0x2df   :  { %9784 = vpow2.f32 %v8546_v8  ;;  %v8547_v15 = vmul.f32 -1.442695, %v921_v14  ;;  %v1222_v10 = vld [vmem:[%s12806_s0 + $0x78] sm:$0xff] }
 0x2e0   :  { %v873_v12 = vpop.f32.mrf.mxu0  ;;  %v914_v13 = vpop.f32.mrf.mxu1 }
 0x2e1   :  { %9786 = vpow2.f32 %v8547_v15  ;;  %v1221_v12 = vld [vmem:[%s12806_s0 + $0x70] sm:$0xff] }
 0x2ec   :  { %v9785_v16 = vpop.eup %9784 }
 0x2ed   :  { %v930_v17 = vadd.f32 1.0, %v9785_v16 }
 0x2ee   :  { %v9787_v29 = vpop.eup %9786 }
 0x2ef   :  { %9788 = vrcp.f32 %v930_v17  ;;  %v931_v31 = vadd.f32 1.0, %v9787_v29 }
 0x2f1   :  { %9790 = vrcp.f32 %v931_v31 }
 0x2fc   :  { %v9789_v36 = vpop.eup %9788 }
 0x2fd   :  { %v936_v38 = vmul.f32 %v9789_v36, %v923_v35 }
 0x2fe   :  { %v9791_v40 = vpop.eup %9790 }
 0x2ff   :  { %v937_v39 = vadd.f32 %v936_v38, %v922_v37  ;;  %v939_v41 = vsub.f32 1.0, %v9791_v40  ;;  %v941_v0 = vmul.f32 %v9791_v40, %v10387_v33  ;;  %v10613_v38 = vld [vmem:[%s12805_s1 + $0xec] ss:$16 sps:$4 sm:$0xff]  }
 0x300   :  { %v10625_v40 = vld [vmem:[%s12805_s1 + $0xcc] ss:$16 sps:$4 sm:$0xff]  }
 0x301   :  { %9792 = vtanh.f32 %v937_v39  ;;  %v10618_v39 = vld [vmem:[%s12805_s1 + $0xe8] ss:$16 sps:$4 sm:$0xff]  }
 0x30e   :  { %v9793_v42 = vpop.eup %9792 }
 0x30f   :  { %v940_v43 = vmul.f32 %v9793_v42, %v939_v41  ;;  %v10630_v41 = vld [vmem:[%s12805_s1 + $0xc8] ss:$16 sps:$4 sm:$0xff]   ;;  %v10637_v42 = vld [vmem:[%s12805_s1 + $0xac] ss:$16 sps:$4 sm:$0xff]  }
 0x311   :  { %v10437_v44 = vadd.f32 %v941_v0, %v940_v43  ;;  %v10642_v43 = vld [vmem:[%s12805_s1 + $0xa8] ss:$16 sps:$4 sm:$0xff]   ;;  %v10649_v0 = vld [vmem:[%s12805_s1 + $0x8c] ss:$16 sps:$4 sm:$0xff]  }
 0x313   :  { %v944_v45 = vpack.c.bf16 %v10437_v44, %v10437_v44 }
 0x315   :  { %1170 = vmatmul.mubr.bf16.vlgmr.msra.gmra.mxu0 %v944_v45  ;;  %1211 = vmatmul.mubr.bf16.vlgmr.msra.gmra.mxu1 %v944_v45  ;;  %v10654_v45 = vld [vmem:[%s12805_s1 + $0x88] ss:$16 sps:$4 sm:$0xff]  }
 0x316   :  { %1482 = vmatpush1.bf16.msra.mxu1 %v10212_v18  ;;  %1472 = vmatprep.mubr.bf16.mxu0 %v12816_v1  ;;  %v10457_v18 = vld [vmem:[%s12805_s1 + $0xe4] ss:$16 sps:$4 sm:$0xff]  }
 0x317   :  { %1483 = vmatprep.subr.bf16.mxu1 %v10220_v19  ;;  %1513 = vmatprep.mubr.bf16.mxu1 %v12816_v1  ;;  %v10462_v19 = vld [vmem:[%s12805_s1 + $0xe0] ss:$16 sps:$4 sm:$0xff]  }
 0x318   :  { %1440 = vmatprep.subr.bf16.mxu0 %v10457_v18 }
 0x319   :  { %1441 = vmatpush1.bf16.msra.mxu0 %v10462_v19 }
 0x31a   :  { %1484 = vmatpush1.bf16.msra.mxu1 %v10228_v20  ;;  %v10469_v20 = vld [vmem:[%s12805_s1 + $0xc4] ss:$16 sps:$4 sm:$0xff]  }
 0x31b   :  { %1485 = vmatprep.subr.bf16.mxu1 %v10235_v21  ;;  %v10474_v21 = vld [vmem:[%s12805_s1 + $0xc0] ss:$16 sps:$4 sm:$0xff]   ;;  %1442 = vmatprep.subr.bf16.mxu0 %v10469_v20 }
 0x31d   :  { %1443 = vmatpush1.bf16.msra.mxu0 %v10474_v21 }
 0x31e   :  { %1486 = vmatpush1.bf16.msra.mxu1 %v10241_v22  ;;  %v10481_v22 = vld [vmem:[%s12805_s1 + $0xa4] ss:$16 sps:$4 sm:$0xff]  }
 0x31f   :  { %1487 = vmatprep.subr.bf16.mxu1 %v10247_v23  ;;  %v10486_v23 = vld [vmem:[%s12805_s1 + $0xa0] ss:$16 sps:$4 sm:$0xff]   ;;  %1444 = vmatprep.subr.bf16.mxu0 %v10481_v22 }
 0x321   :  { %1445 = vmatpush1.bf16.msra.mxu0 %v10486_v23 }
 0x322   :  { %1488 = vmatpush1.bf16.msra.mxu1 %v10253_v24  ;;  %v10493_v24 = vld [vmem:[%s12805_s1 + $0x84] ss:$16 sps:$4 sm:$0xff]  }
 0x323   :  { %1489 = vmatprep.subr.bf16.mxu1 %v10259_v25  ;;  %v10498_v25 = vld [vmem:[%s12805_s1 + $0x80] ss:$16 sps:$4 sm:$0xff]   ;;  %1446 = vmatprep.subr.bf16.mxu0 %v10493_v24 }
 0x325   :  { %1447 = vmatpush1.bf16.msra.mxu0 %v10498_v25 }
 0x326   :  { %1490 = vmatpush1.bf16.msra.mxu1 %v10265_v26  ;;  %v10504_v26 = vld [vmem:[%s12805_s1 + $0x64] ss:$16 sps:$4 sm:$0xff]  }
 0x327   :  { %1491 = vmatprep.subr.bf16.mxu1 %v10271_v27  ;;  %v10510_v27 = vld [vmem:[%s12805_s1 + $0x60] ss:$16 sps:$4 sm:$0xff]   ;;  %1448 = vmatprep.subr.bf16.mxu0 %v10504_v26 }
 0x329   :  { %1449 = vmatpush1.bf16.msra.mxu0 %v10510_v27 }
 0x32a   :  { %1492 = vmatpush1.bf16.msra.mxu1 %v10277_v28  ;;  %v10516_v28 = vld [vmem:[%s12805_s1 + $0x44] ss:$16 sps:$4 sm:$0xff]  }
 0x32b   :  { %1493 = vmatprep.subr.bf16.mxu1 %v10526_v47  ;;  %1450 = vmatprep.subr.bf16.mxu0 %v10516_v28 }
 0x32d   :  { %1451 = vmatpush1.bf16.msra.mxu0 %v10538_v49 }
 0x32e   :  { %1494 = vmatpush1.bf16.msra.mxu1 %v10521_v46  ;;  %1452 = vmatprep.subr.bf16.mxu0 %v10550_v51 }
 0x32f   :  { %1495 = vmatprep.subr.bf16.mxu1 %v10531_v48 }
 0x331   :  { %1453 = vmatpush1.bf16.msra.mxu0 %v10557_v52 }
 0x332   :  { %1496 = vmatpush1.bf16.msra.mxu1 %v10544_v50  ;;  %1454 = vmatprep.subr.bf16.mxu0 %v10564_v53 }
 0x333   :  { %1784 = vmatprep.subr.bf16.mxu1 %v10613_v38 }
 0x335   :  { %1455 = vmatpush1.bf16.msra.mxu0 %v10570_v54 }
 0x336   :  { %1743 = vmatprep.subr.bf16.mxu0 %v10457_v18 }
 0x3d5   :  { %v1171_v56 = vpop.f32.mrf.mxu0  ;;  %v1212_v57 = vpop.f32.mrf.mxu1 }
 0x3d6   :  { %v1223_v58 = vadd.f32 %v1219_v55, %v1171_v56  ;;  %v1225_v15 = vadd.f32 %v1221_v12, %v1212_v57  ;;  %v10660_v55 = vld [vmem:[%s12805_s1 + $0x6c] ss:$16 sps:$4 sm:$0xff]   ;;  %v10666_v56 = vld [vmem:[%s12805_s1 + $0x68] ss:$16 sps:$4 sm:$0xff]  }
 0x3d7   :  { %v1173_v59 = vpop.f32.mrf.mxu0  ;;  %v1214_v60 = vpop.f32.mrf.mxu1  ;;  %v10672_v57 = vld [vmem:[%s12805_s1 + $0x4c] ss:$16 sps:$4 sm:$0xff]  }
 0x3d8   :  { %v8580_v61 = vmul.f32 -1.442695, %v1223_v58  ;;  %v1224_v5 = vadd.f32 %v1220_v62, %v1173_v59  ;;  %v1226_v13 = vadd.f32 %v1222_v10, %v1214_v60  ;;  %v10678_v58 = vld [vmem:[%s12805_s1 + $0x48] ss:$16 sps:$4 sm:$0xff]   ;;  %v1522_v59 = vld [vmem:[%s12806_s0 + $0x80] sm:$0xff] }
 0x3d9   :  { %v1175_v34 = vpop.f32.mrf.mxu0  ;;  %v1216_v2 = vpop.f32.mrf.mxu1 }
 0x3da   :  { %9794 = vpow2.f32 %v8580_v61  ;;  %v8581_v6 = vmul.f32 -1.442695, %v1224_v5 }
 0x3db   :  { %v1176_v3 = vpop.f32.mrf.mxu0  ;;  %v1217_v4 = vpop.f32.mrf.mxu1 }
 0x3dc   :  { %9796 = vpow2.f32 %v8581_v6  ;;  %v1523_v4 = vld [vmem:[%s12806_s0 + $0x88] sm:$0xff] }
 0x3e7   :  { %v9795_v7 = vpop.eup %9794 }
 0x3e8   :  { %v1233_v8 = vadd.f32 1.0, %v9795_v7 }
 0x3e9   :  { %v9797_v9 = vpop.eup %9796 }
 0x3ea   :  { %9798 = vrcp.f32 %v1233_v8  ;;  %v1234_v11 = vadd.f32 1.0, %v9797_v9 }
 0x3ec   :  { %9800 = vrcp.f32 %v1234_v11 }
 0x3f7   :  { %v9799_v14 = vpop.eup %9798 }
 0x3f8   :  { %v1239_v16 = vmul.f32 %v9799_v14, %v1226_v13  ;;  %v1525_v14 = vld [vmem:[%s12806_s0 + $0x98] sm:$0xff] }
 0x3f9   :  { %v9801_v29 = vpop.eup %9800 }
 0x3fa   :  { %v1240_v17 = vadd.f32 %v1239_v16, %v1225_v15  ;;  %v1242_v30 = vsub.f32 1.0, %v9801_v29  ;;  %v1244_v35 = vmul.f32 %v9801_v29, %v10437_v44  ;;  %v1524_v16 = vld [vmem:[%s12806_s0 + $0x90] sm:$0xff] }
 0x3fc   :  { %9802 = vtanh.f32 %v1240_v17 }
 0x409   :  { %v9803_v31 = vpop.eup %9802 }
 0x40a   :  { %v1243_v32 = vmul.f32 %v9803_v31, %v1242_v30 }
 0x40c   :  { %v10588_v36 = vadd.f32 %v1244_v35, %v1243_v32 }
 0x40e   :  { %v1247_v37 = vpack.c.bf16 %v10588_v36, %v10588_v36 }
 0x410   :  { %1473 = vmatmul.mubr.bf16.vlgmr.msra.gmra.mxu0 %v1247_v37  ;;  %1514 = vmatmul.mubr.bf16.vlgmr.msra.gmra.mxu1 %v1247_v37 }
 0x411   :  { %1744 = vmatpush1.bf16.msra.mxu0 %v10462_v19  ;;  %1775 = vmatprep.mubr.bf16.mxu0 %v12816_v1 }
 0x412   :  { %1745 = vmatprep.subr.bf16.mxu0 %v10469_v20  ;;  %1816 = vmatprep.mubr.bf16.mxu1 %v12816_v1 }
 0x413   :  { %1785 = vmatpush1.bf16.msra.mxu1 %v10618_v39 }
 0x414   :  { %1786 = vmatprep.subr.bf16.mxu1 %v10625_v40 }
 0x415   :  { %1746 = vmatpush1.bf16.msra.mxu0 %v10474_v21 }
 0x416   :  { %1747 = vmatprep.subr.bf16.mxu0 %v10481_v22 }
 0x417   :  { %1787 = vmatpush1.bf16.msra.mxu1 %v10630_v41 }
 0x418   :  { %1788 = vmatprep.subr.bf16.mxu1 %v10637_v42 }
 0x419   :  { %1748 = vmatpush1.bf16.msra.mxu0 %v10486_v23 }
 0x41a   :  { %1749 = vmatprep.subr.bf16.mxu0 %v10493_v24 }
 0x41b   :  { %1789 = vmatpush1.bf16.msra.mxu1 %v10642_v43 }
 0x41c   :  { %1790 = vmatprep.subr.bf16.mxu1 %v10649_v0 }
 0x41d   :  { %1750 = vmatpush1.bf16.msra.mxu0 %v10498_v25 }
 0x41e   :  { %1751 = vmatprep.subr.bf16.mxu0 %v10504_v26 }
 0x41f   :  { %1791 = vmatpush1.bf16.msra.mxu1 %v10654_v45 }
 0x420   :  { %1792 = vmatprep.subr.bf16.mxu1 %v10660_v55 }
 0x421   :  { %1752 = vmatpush1.bf16.msra.mxu0 %v10510_v27 }
 0x422   :  { %1753 = vmatprep.subr.bf16.mxu0 %v10516_v28 }
 0x423   :  { %1793 = vmatpush1.bf16.msra.mxu1 %v10666_v56 }
 0x424   :  { %1794 = vmatprep.subr.bf16.mxu1 %v10672_v57 }
 0x425   :  { %1754 = vmatpush1.bf16.msra.mxu0 %v10538_v49 }
 0x426   :  { %1755 = vmatprep.subr.bf16.mxu0 %v10550_v51 }
 0x427   :  { %1795 = vmatpush1.bf16.msra.mxu1 %v10678_v58 }
 0x428   :  { %1796 = vmatprep.subr.bf16.mxu1 %v10526_v47 }
 0x429   :  { %1756 = vmatpush1.bf16.msra.mxu0 %v10557_v52 }
 0x42a   :  { %1757 = vmatprep.subr.bf16.mxu0 %v10564_v53 }
 0x42b   :  { %1797 = vmatpush1.bf16.msra.mxu1 %v10521_v46 }
 0x42c   :  { %1798 = vmatprep.subr.bf16.mxu1 %v10531_v48 }
 0x42d   :  { %1758 = vmatpush1.bf16.msra.mxu0 %v10570_v54 }
 0x42e   :  { %2046 = vmatprep.subr.bf16.mxu0 %v10457_v18 }
 0x42f   :  { %1799 = vmatpush1.bf16.msra.mxu1 %v10544_v50 }
 0x430   :  { %2087 = vmatprep.subr.bf16.mxu1 %v10613_v38 }
 0x4d0   :  { %v1474_v60 = vpop.f32.mrf.mxu0  ;;  %v1515_v61 = vpop.f32.mrf.mxu1 }
 0x4d1   :  { %v1526_v62 = vadd.f32 %v1522_v59, %v1474_v60  ;;  %v1528_v30 = vadd.f32 %v1524_v16, %v1515_v61  ;;  %v1825_v61 = vld [vmem:[%s12806_s0 + $0xa0] sm:$0xff] }
 0x4d2   :  { %v1476_v34 = vpop.f32.mrf.mxu0  ;;  %v1517_v2 = vpop.f32.mrf.mxu1 }
 0x4d3   :  { %v8614_v3 = vmul.f32 -1.442695, %v1526_v62  ;;  %v1527_v9 = vadd.f32 %v1523_v4, %v1476_v34  ;;  %v1529_v17 = vadd.f32 %v1525_v14, %v1517_v2 }
 0x4d4   :  { %v1478_v5 = vpop.f32.mrf.mxu0  ;;  %v1519_v6 = vpop.f32.mrf.mxu1 }
 0x4d5   :  { %9804 = vpow2.f32 %v8614_v3  ;;  %v8615_v10 = vmul.f32 -1.442695, %v1527_v9  ;;  %v1826_v9 = vld [vmem:[%s12806_s0 + $0xa8] sm:$0xff] }
 0x4d6   :  { %v1479_v7 = vpop.f32.mrf.mxu0  ;;  %v1520_v8 = vpop.f32.mrf.mxu1 }
 0x4d7   :  { %9806 = vpow2.f32 %v8615_v10 }
 0x4e2   :  { %v9805_v11 = vpop.eup %9804 }
 0x4e3   :  { %v1536_v12 = vadd.f32 1.0, %v9805_v11 }
 0x4e4   :  { %v9807_v13 = vpop.eup %9806 }
 0x4e5   :  { %9808 = vrcp.f32 %v1536_v12  ;;  %v1537_v15 = vadd.f32 1.0, %v9807_v13 }
 0x4e7   :  { %9810 = vrcp.f32 %v1537_v15 }
 0x4f2   :  { %v9809_v29 = vpop.eup %9808 }
 0x4f3   :  { %v1542_v31 = vmul.f32 %v9809_v29, %v1529_v17  ;;  %v1828_v17 = vld [vmem:[%s12806_s0 + $0xb8] sm:$0xff] }
 0x4f4   :  { %v9811_v35 = vpop.eup %9810 }
 0x4f5   :  { %v1543_v32 = vadd.f32 %v1542_v31, %v1528_v30  ;;  %v1545_v37 = vsub.f32 1.0, %v9811_v35  ;;  %v1547_v62 = vmul.f32 %v9811_v35, %v10588_v36  ;;  %v1827_v30 = vld [vmem:[%s12806_s0 + $0xb0] sm:$0xff] }
 0x4f7   :  { %9812 = vtanh.f32 %v1543_v32 }
 0x504   :  { %v9813_v59 = vpop.eup %9812 }
 0x505   :  { %v1546_v60 = vmul.f32 %v9813_v59, %v1545_v37 }
 0x507   :  { %v10700_v34 = vadd.f32 %v1547_v62, %v1546_v60 }
 0x509   :  { %v1550_v3 = vpack.c.bf16 %v10700_v34, %v10700_v34 }
 0x50b   :  { %1776 = vmatmul.mubr.bf16.vlgmr.msra.gmra.mxu0 %v1550_v3  ;;  %1817 = vmatmul.mubr.bf16.vlgmr.msra.gmra.mxu1 %v1550_v3 }
 0x50c   :  { %2047 = vmatpush1.bf16.msra.mxu0 %v10462_v19  ;;  %2088 = vmatpush1.bf16.msra.mxu1 %v10618_v39 }
 0x50d   :  { %2048 = vmatprep.subr.bf16.mxu0 %v10469_v20  ;;  %2089 = vmatprep.subr.bf16.mxu1 %v10625_v40 }
 0x50e   :  { %2078 = vmatprep.mubr.bf16.mxu0 %v12816_v1  ;;  %2119 = vmatprep.mubr.bf16.mxu1 %v12816_v1 }
 0x510   :  { %2049 = vmatpush1.bf16.msra.mxu0 %v10474_v21  ;;  %2090 = vmatpush1.bf16.msra.mxu1 %v10630_v41 }
 0x511   :  { %2050 = vmatprep.subr.bf16.mxu0 %v10481_v22  ;;  %2091 = vmatprep.subr.bf16.mxu1 %v10637_v42 }
 0x514   :  { %2051 = vmatpush1.bf16.msra.mxu0 %v10486_v23  ;;  %2092 = vmatpush1.bf16.msra.mxu1 %v10642_v43 }
 0x515   :  { %2052 = vmatprep.subr.bf16.mxu0 %v10493_v24  ;;  %2093 = vmatprep.subr.bf16.mxu1 %v10649_v0 }
 0x518   :  { %2053 = vmatpush1.bf16.msra.mxu0 %v10498_v25  ;;  %2094 = vmatpush1.bf16.msra.mxu1 %v10654_v45 }
 0x519   :  { %2054 = vmatprep.subr.bf16.mxu0 %v10504_v26  ;;  %2095 = vmatprep.subr.bf16.mxu1 %v10660_v55 }
 0x51c   :  { %2055 = vmatpush1.bf16.msra.mxu0 %v10510_v27  ;;  %2096 = vmatpush1.bf16.msra.mxu1 %v10666_v56 }
 0x51d   :  { %2056 = vmatprep.subr.bf16.mxu0 %v10516_v28  ;;  %2097 = vmatprep.subr.bf16.mxu1 %v10672_v57 }
 0x520   :  { %2057 = vmatpush1.bf16.msra.mxu0 %v10538_v49  ;;  %2098 = vmatpush1.bf16.msra.mxu1 %v10678_v58 }
 0x521   :  { %2058 = vmatprep.subr.bf16.mxu0 %v10550_v51  ;;  %2099 = vmatprep.subr.bf16.mxu1 %v10526_v47 }
 0x524   :  { %2059 = vmatpush1.bf16.msra.mxu0 %v10557_v52  ;;  %2100 = vmatpush1.bf16.msra.mxu1 %v10521_v46 }
 0x525   :  { %2060 = vmatprep.subr.bf16.mxu0 %v10564_v53  ;;  %2101 = vmatprep.subr.bf16.mxu1 %v10531_v48 }
 0x528   :  { %2061 = vmatpush1.bf16.msra.mxu0 %v10570_v54  ;;  %2102 = vmatpush1.bf16.msra.mxu1 %v10544_v50 }
 0x529   :  { %2349 = vmatprep.subr.bf16.mxu0 %v10457_v18  ;;  %2390 = vmatprep.subr.bf16.mxu1 %v10613_v38 }
 0x5cb   :  { %v1777_v2 = vpop.f32.mrf.mxu0  ;;  %v1818_v4 = vpop.f32.mrf.mxu1 }
 0x5cc   :  { %v1829_v5 = vadd.f32 %v1825_v61, %v1777_v2  ;;  %v1831_v35 = vadd.f32 %v1827_v30, %v1818_v4  ;;  %v9491_v30 = vld [vmem:[%s12807_s2 + $0x8c] ss:$16 sps:$4 sm:$0xff]  }
 0x5cd   :  { %v1779_v6 = vpop.f32.mrf.mxu0  ;;  %v1820_v7 = vpop.f32.mrf.mxu1 }
 0x5ce   :  { %v8648_v8 = vmul.f32 -1.442695, %v1829_v5  ;;  %v1830_v38 = vadd.f32 %v1826_v9, %v1779_v6  ;;  %v1832_v31 = vadd.f32 %v1828_v17, %v1820_v7  ;;  %v9468_v9 = vld [vmem:[%s12807_s2 + $0xe0] ss:$16 sps:$4 sm:$0xff]   ;;  %v9483_v17 = vld [vmem:[%s12807_s2 + $0xa8] ss:$16 sps:$4 sm:$0xff]  }
 0x5cf   :  { %v1781_v10 = vpop.f32.mrf.mxu0  ;;  %v1822_v11 = vpop.f32.mrf.mxu1 }
 0x5d0   :  { %9814 = vpow2.f32 %v8648_v8  ;;  %v8649_v13 = vmul.f32 -1.442695, %v1830_v38  ;;  %v9471_v10 = vld [vmem:[%s12807_s2 + $0xe8] ss:$16 sps:$4 sm:$0xff]   ;;  %v9474_v38 = vld [vmem:[%s12807_s2 + $0xc0] ss:$16 sps:$4 sm:$0xff]  }
 0x5d1   :  { %v1782_v18 = vpop.f32.mrf.mxu0  ;;  %v1823_v12 = vpop.f32.mrf.mxu1 }
 0x5d2   :  { %9816 = vpow2.f32 %v8649_v13  ;;  %v9476_v18 = vld [vmem:[%s12807_s2 + $0xc4] ss:$16 sps:$4 sm:$0xff]   ;;  %v9479_v12 = vld [vmem:[%s12807_s2 + $0xcc] ss:$16 sps:$4 sm:$0xff]   ;;  %v9477_v13 = vld [vmem:[%s12807_s2 + $0xc8] ss:$16 sps:$4 sm:$0xff]  }
 0x5dd   :  { %v9815_v14 = vpop.eup %9814 }
 0x5de   :  { %v1839_v15 = vadd.f32 1.0, %v9815_v14  ;;  %v9482_v14 = vld [vmem:[%s12807_s2 + $0xa4] ss:$16 sps:$4 sm:$0xff]  }
 0x5df   :  { %v9817_v16 = vpop.eup %9816 }
 0x5e0   :  { %9818 = vrcp.f32 %v1839_v15  ;;  %v1840_v29 = vadd.f32 1.0, %v9817_v16  ;;  %v9485_v15 = vld [vmem:[%s12807_s2 + $0xac] ss:$16 sps:$4 sm:$0xff]   ;;  %v9480_v16 = vld [vmem:[%s12807_s2 + $0xa0] ss:$16 sps:$4 sm:$0xff]  }
 0x5e2   :  { %9820 = vrcp.f32 %v1840_v29  ;;  %v9488_v29 = vld [vmem:[%s12807_s2 + $0x84] ss:$16 sps:$4 sm:$0xff]  }
 0x5ed   :  { %v9819_v32 = vpop.eup %9818 }
 0x5ee   :  { %v1845_v37 = vmul.f32 %v9819_v32, %v1832_v31  ;;  %v9486_v31 = vld [vmem:[%s12807_s2 + $0x80] ss:$16 sps:$4 sm:$0xff]   ;;  %v9489_v32 = vld [vmem:[%s12807_s2 + $0x88] ss:$16 sps:$4 sm:$0xff]  }
 0x5ef   :  { %v9821_v60 = vpop.eup %9820 }
 0x5f0   :  { %v1846_v59 = vadd.f32 %v1845_v37, %v1831_v35  ;;  %v1848_v62 = vsub.f32 1.0, %v9821_v60  ;;  %v1850_v2 = vmul.f32 %v9821_v60, %v10700_v34  ;;  %v9494_v35 = vld [vmem:[%s12807_s2 + $0x64] ss:$16 sps:$4 sm:$0xff]   ;;  %v9497_v37 = vld [vmem:[%s12807_s2 + $0x6c] ss:$16 sps:$4 sm:$0xff]  }
 0x5f1   :  { %v9495_v60 = vld [vmem:[%s12807_s2 + $0x68] ss:$16 sps:$4 sm:$0xff]  }
 0x5f2   :  { %9822 = vtanh.f32 %v1846_v59  ;;  %v9492_v59 = vld [vmem:[%s12807_s2 + $0x60] ss:$16 sps:$4 sm:$0xff]  }
 0x5ff   :  { %v9823_v3 = vpop.eup %9822 }
 0x600   :  { %v1849_v61 = vmul.f32 %v9823_v3, %v1848_v62  ;;  %v9500_v62 = vld [vmem:[%s12807_s2 + $0x44] ss:$16 sps:$4 sm:$0xff]   ;;  %v9503_v3 = vld [vmem:[%s12807_s2 + $0x4c] ss:$16 sps:$4 sm:$0xff]  }
 0x602   :  { %v10751_v5 = vadd.f32 %v1850_v2, %v1849_v61  ;;  %v9498_v61 = vld [vmem:[%s12807_s2 + $0x40] ss:$16 sps:$4 sm:$0xff]   ;;  %v9501_v2 = vld [vmem:[%s12807_s2 + $0x48] ss:$16 sps:$4 sm:$0xff]  }
 0x604   :  { %v1853_v6 = vpack.c.bf16 %v10751_v5, %v10751_v5 }
 0x606   :  { %2079 = vmatmul.mubr.bf16.vlgmr.msra.gmra.mxu0 %v1853_v6  ;;  %2120 = vmatmul.mubr.bf16.vlgmr.msra.gmra.mxu1 %v1853_v6  ;;  %v9506_v6 = vld [vmem:[%s12807_s2 + $0x24] ss:$16 sps:$4 sm:$0xff]  }
 0x607   :  { %2350 = vmatpush1.bf16.msra.mxu0 %v10462_v19  ;;  %2391 = vmatpush1.bf16.msra.mxu1 %v10618_v39  ;;  %v9470_v19 = vld [vmem:[%s12807_s2 + $0xe4] ss:$16 sps:$4 sm:$0xff]   ;;  %v2131_v39 = vld [vmem:[%s12806_s0 + $0xd8] sm:$0xff] }
 0x608   :  { %2351 = vmatprep.subr.bf16.mxu0 %v10469_v20  ;;  %2392 = vmatprep.subr.bf16.mxu1 %v10625_v40  ;;  %v9473_v20 = vld [vmem:[%s12807_s2 + $0xec] ss:$16 sps:$4 sm:$0xff]  }
 0x609   :  { %2381 = vmatprep.mubr.bf16.mxu0 %v12816_v1  ;;  %2422 = vmatprep.mubr.bf16.mxu1 %v12816_v1 }
 0x60b   :  { %2352 = vmatpush1.bf16.msra.mxu0 %v10474_v21  ;;  %2393 = vmatpush1.bf16.msra.mxu1 %v10630_v41  ;;  %v2128_v21 = vld [vmem:[%s12806_s0 + $0xc0] sm:$0xff]  ;;  %v2130_v41 = vld [vmem:[%s12806_s0 + $0xd0] sm:$0xff] }
 0x60c   :  { %2353 = vmatprep.subr.bf16.mxu0 %v10481_v22  ;;  %2394 = vmatprep.subr.bf16.mxu1 %v10637_v42 }
 0x60f   :  { %2354 = vmatpush1.bf16.msra.mxu0 %v10486_v23  ;;  %2395 = vmatpush1.bf16.msra.mxu1 %v10642_v43 }
 0x610   :  { %2355 = vmatprep.subr.bf16.mxu0 %v10493_v24  ;;  %2396 = vmatprep.subr.bf16.mxu1 %v10649_v0 }
 0x613   :  { %2356 = vmatpush1.bf16.msra.mxu0 %v10498_v25  ;;  %2397 = vmatpush1.bf16.msra.mxu1 %v10654_v45 }
 0x614   :  { %2357 = vmatprep.subr.bf16.mxu0 %v10504_v26  ;;  %2398 = vmatprep.subr.bf16.mxu1 %v10660_v55 }
 0x617   :  { %2358 = vmatpush1.bf16.msra.mxu0 %v10510_v27  ;;  %2399 = vmatpush1.bf16.msra.mxu1 %v10666_v56 }
 0x618   :  { %2359 = vmatprep.subr.bf16.mxu0 %v10516_v28  ;;  %2400 = vmatprep.subr.bf16.mxu1 %v10672_v57  ;;  %v2129_v28 = vld [vmem:[%s12806_s0 + $0xc8] sm:$0xff] }
 0x61b   :  { %2360 = vmatpush1.bf16.msra.mxu0 %v10538_v49  ;;  %2401 = vmatpush1.bf16.msra.mxu1 %v10678_v58 }
 0x61c   :  { %2361 = vmatprep.subr.bf16.mxu0 %v10550_v51  ;;  %2402 = vmatprep.subr.bf16.mxu1 %v10526_v47 }
 0x61f   :  { %2362 = vmatpush1.bf16.msra.mxu0 %v10557_v52  ;;  %2403 = vmatpush1.bf16.msra.mxu1 %v10521_v46 }
 0x620   :  { %2363 = vmatprep.subr.bf16.mxu0 %v10564_v53  ;;  %2404 = vmatprep.subr.bf16.mxu1 %v10531_v48 }
 0x623   :  { %2364 = vmatpush1.bf16.msra.mxu0 %v10570_v54  ;;  %2405 = vmatpush1.bf16.msra.mxu1 %v10544_v50 }
 0x624   :  { %2685 = vmatprep.subr.bf16.mxu0 %v9470_v19  ;;  %2758 = vmatprep.subr.bf16.mxu1 %v9473_v20  ;;  %v9509_v19 = vld [vmem:[%s12807_s2 + $0x2c] ss:$16 sps:$4 sm:$0xff]   ;;  %v9504_v20 = vld [vmem:[%s12807_s2 + $0x20] ss:$16 sps:$4 sm:$0xff]  }
 0x6c6   :  { %v2080_v22 = vpop.f32.mrf.mxu0  ;;  %v2121_v23 = vpop.f32.mrf.mxu1 }
 0x6c7   :  { %v2132_v24 = vadd.f32 %v2128_v21, %v2080_v22  ;;  %v2134_v0 = vadd.f32 %v2130_v41, %v2121_v23  ;;  %v9507_v21 = vld [vmem:[%s12807_s2 + $0x28] ss:$16 sps:$4 sm:$0xff]   ;;  %v9512_v22 = vld [vmem:[%s12807_s2 + $0x4] ss:$16 sps:$4 sm:$0xff]   ;;  %v9515_v23 = vld [vmem:[%s12807_s2 + $0xc] ss:$16 sps:$4 sm:$0xff]  }
 0x6c8   :  { %v2082_v25 = vpop.f32.mrf.mxu0  ;;  %v2123_v26 = vpop.f32.mrf.mxu1  ;;  %v11017_v41 = vld [vmem:[%s12808_s4 + $0x6c] ss:$16 sps:$4 sm:$0xff]  }
 0x6c9   :  { %v8682_v27 = vmul.f32 -1.442695, %v2132_v24  ;;  %v2133_v50 = vadd.f32 %v2129_v28, %v2082_v25  ;;  %v2135_v42 = vadd.f32 %v2131_v39, %v2123_v26  ;;  %v9510_v24 = vld [vmem:[%s12807_s2] ss:$16 sps:$4 sm:$0xff]   ;;  %v9513_v25 = vld [vmem:[%s12807_s2 + $0x8] ss:$16 sps:$4 sm:$0xff]   ;;  %v2467_v26 = vpack.c.bf16 %v10387_v33, %v10336_v63 }
 0x6ca   :  { %v2084_v46 = vpop.f32.mrf.mxu0  ;;  %v2125_v47 = vpop.f32.mrf.mxu1  ;;  %v2469_v28 = vpack.c.bf16 %v10751_v5, %v10700_v34  ;;  %v10917_v63 = vld [vmem:[%s12808_s4 + $0xe4] ss:$16 sps:$4 sm:$0xff]   ;;  %v10922_v33 = vld [vmem:[%s12808_s4 + $0xe0] ss:$16 sps:$4 sm:$0xff]   ;;  %v11004_v39 = vld [vmem:[%s12808_s4 + $0x88] ss:$16 sps:$4 sm:$0xff]  }
 0x6cb   :  { %9824 = vpow2.f32 %v8682_v27  ;;  %v8683_v51 = vmul.f32 -1.442695, %v2133_v50  ;;  %v2468_v27 = vpack.c.bf16 %v10588_v36, %v10437_v44  ;;  %v10928_v44 = vld [vmem:[%s12808_s4 + $0xe8] ss:$16 sps:$4 sm:$0xff]   ;;  %v10933_v36 = vld [vmem:[%s12808_s4 + $0xec] ss:$16 sps:$4 sm:$0xff]  }
 0x6cc   :  { %v2085_v48 = vpop.f32.mrf.mxu0  ;;  %v2126_v49 = vpop.f32.mrf.mxu1  ;;  %v10940_v34 = vld [vmem:[%s12808_s4 + $0xc4] ss:$16 sps:$4 sm:$0xff]   ;;  %v10951_v46 = vld [vmem:[%s12808_s4 + $0xc0] ss:$16 sps:$4 sm:$0xff]   ;;  %v10956_v47 = vld [vmem:[%s12808_s4 + $0xc8] ss:$16 sps:$4 sm:$0xff]  }
 0x6cd   :  { %9826 = vpow2.f32 %v8683_v51  ;;  %v10964_v48 = vld [vmem:[%s12808_s4 + $0xa4] ss:$16 sps:$4 sm:$0xff]   ;;  %v10969_v49 = vld [vmem:[%s12808_s4 + $0xac] ss:$16 sps:$4 sm:$0xff]   ;;  %v10975_v50 = vld [vmem:[%s12808_s4 + $0xa0] ss:$16 sps:$4 sm:$0xff]  }
 0x6ce   :  { %v10980_v51 = vld [vmem:[%s12808_s4 + $0xa8] ss:$16 sps:$4 sm:$0xff]  }
 0x6d8   :  { %v9825_v52 = vpop.eup %9824 }
 0x6d9   :  { %v2142_v53 = vadd.f32 1.0, %v9825_v52  ;;  %v10988_v52 = vld [vmem:[%s12808_s4 + $0x84] ss:$16 sps:$4 sm:$0xff]  }
 0x6da   :  { %v9827_v54 = vpop.eup %9826 }
 0x6db   :  { %9828 = vrcp.f32 %v2142_v53  ;;  %v2143_v40 = vadd.f32 1.0, %v9827_v54  ;;  %v10993_v53 = vld [vmem:[%s12808_s4 + $0x8c] ss:$16 sps:$4 sm:$0xff]   ;;  %v10999_v54 = vld [vmem:[%s12808_s4 + $0x80] ss:$16 sps:$4 sm:$0xff]  }
 0x6dd   :  { %9830 = vrcp.f32 %v2143_v40  ;;  %v11012_v40 = vld [vmem:[%s12808_s4 + $0x64] ss:$16 sps:$4 sm:$0xff]  }
 0x6e8   :  { %v9829_v43 = vpop.eup %9828 }
 0x6e9   :  { %v2148_v45 = vmul.f32 %v9829_v43, %v2135_v42  ;;  %v11023_v42 = vld [vmem:[%s12808_s4 + $0x60] ss:$16 sps:$4 sm:$0xff]   ;;  %v11028_v43 = vld [vmem:[%s12808_s4 + $0x68] ss:$16 sps:$4 sm:$0xff]  }
 0x6ea   :  { %v9831_v56 = vpop.eup %9830 }
 0x6eb   :  { %v2149_v55 = vadd.f32 %v2148_v45, %v2134_v0  ;;  %v2151_v57 = vsub.f32 1.0, %v9831_v56  ;;  %v2153_v7 = vmul.f32 %v9831_v56, %v10751_v5  ;;  %v10945_v5 = vld [vmem:[%s12808_s4 + $0xcc] ss:$16 sps:$4 sm:$0xff]   ;;  %v11036_v0 = vld [vmem:[%s12808_s4 + $0x44] ss:$16 sps:$4 sm:$0xff]  }
 0x6ec   :  { %v11041_v45 = vld [vmem:[%s12808_s4 + $0x4c] ss:$16 sps:$4 sm:$0xff]   ;;  %v11052_v56 = vld [vmem:[%s12808_s4 + $0x48] ss:$16 sps:$4 sm:$0xff]  }
 0x6ed   :  { %9832 = vtanh.f32 %v2149_v55  ;;  %v11047_v55 = vld [vmem:[%s12808_s4 + $0x40] ss:$16 sps:$4 sm:$0xff]  }
 0x6fa   :  { %v9833_v58 = vpop.eup %9832 }
 0x6fb   :  { %v2152_v4 = vmul.f32 %v9833_v58, %v2151_v57  ;;  %v11057_v57 = vld [vmem:[%s12808_s4 + $0x20] ss:$16 sps:$4 sm:$0xff]   ;;  %v11064_v58 = vld [vmem:[%s12808_s4 + $0x24] ss:$16 sps:$4 sm:$0xff]  }
 0x6fd   :  { %v10806_v8 = vadd.f32 %v2153_v7, %v2152_v4  ;;  %v11071_v4 = vld [vmem:[%s12808_s4 + $0x2c] ss:$16 sps:$4 sm:$0xff]   ;;  %v11077_v7 = vld [vmem:[%s12808_s4 + $0x28] ss:$16 sps:$4 sm:$0xff]  }
 0x6ff   :  { %v2156_v11 = vpack.c.bf16 %v10806_v8, %v10806_v8 }
 0x701   :  { %2382 = vmatmul.mubr.bf16.vlgmr.msra.gmra.mxu0 %v2156_v11  ;;  %2423 = vmatmul.mubr.bf16.vlgmr.msra.gmra.mxu1 %v2156_v11  ;;  %v11093_v11 = vld [vmem:[%s12808_s4 + $0xc] ss:$16 sps:$4 sm:$0xff]  }
 0x702   :  { %2686 = vmatpush1.bf16.msra.mxu0 %v9468_v9  ;;  %2759 = vmatpush1.bf16.msra.mxu1 %v9471_v10  ;;  %v11082_v9 = vld [vmem:[%s12808_s4 + $0x4] ss:$16 sps:$4 sm:$0xff]   ;;  %v11088_v10 = vld [vmem:[%s12808_s4] ss:$16 sps:$4 sm:$0xff]  }
 0x703   :  { %2687 = vmatprep.subr.bf16.mxu0 %v9476_v18  ;;  %2760 = vmatprep.subr.bf16.mxu1 %v9479_v12  ;;  %v11099_v18 = vld [vmem:[%s12808_s4 + $0x8] ss:$16 sps:$4 sm:$0xff]   ;;  %v2431_v12 = vld [vmem:[%s12806_s0 + $0xe0] sm:$0xff] }
 0x704   :  { %2717 = vmatprep.mubr.bf16.mxu0 %v12816_v1  ;;  %2790 = vmatprep.mubr.bf16.mxu1 %v12816_v1 }
 0x706   :  { %2688 = vmatpush1.bf16.msra.mxu0 %v9474_v38  ;;  %2761 = vmatpush1.bf16.msra.mxu1 %v9477_v13 }
 0x707   :  { %2689 = vmatprep.subr.bf16.mxu0 %v9482_v14  ;;  %2762 = vmatprep.subr.bf16.mxu1 %v9485_v15 }
 0x70a   :  { %2690 = vmatpush1.bf16.msra.mxu0 %v9480_v16  ;;  %2763 = vmatpush1.bf16.msra.mxu1 %v9483_v17 }
 0x70b   :  { %2691 = vmatprep.subr.bf16.mxu0 %v9488_v29  ;;  %2764 = vmatprep.subr.bf16.mxu1 %v9491_v30  ;;  %v2432_v29 = vld [vmem:[%s12806_s0 + $0xe8] sm:$0xff] }
 0x70e   :  { %2692 = vmatpush1.bf16.msra.mxu0 %v9486_v31  ;;  %2765 = vmatpush1.bf16.msra.mxu1 %v9489_v32 }
 0x70f   :  { %2693 = vmatprep.subr.bf16.mxu0 %v9494_v35  ;;  %2766 = vmatprep.subr.bf16.mxu1 %v9497_v37 }
 0x712   :  { %2694 = vmatpush1.bf16.msra.mxu0 %v9492_v59  ;;  %2767 = vmatpush1.bf16.msra.mxu1 %v9495_v60 }
 0x713   :  { %2695 = vmatprep.subr.bf16.mxu0 %v9500_v62  ;;  %2768 = vmatprep.subr.bf16.mxu1 %v9503_v3 }
 0x716   :  { %2696 = vmatpush1.bf16.msra.mxu0 %v9498_v61  ;;  %2769 = vmatpush1.bf16.msra.mxu1 %v9501_v2  ;;  %v2434_v61 = vld [vmem:[%s12806_s0 + $0xf8] sm:$0xff] }
 0x717   :  { %2697 = vmatprep.subr.bf16.mxu0 %v9506_v6  ;;  %2770 = vmatprep.subr.bf16.mxu1 %v9509_v19  ;;  %v2433_v6 = vld [vmem:[%s12806_s0 + $0xf0] sm:$0xff] }
 0x71a   :  { %2698 = vmatpush1.bf16.msra.mxu0 %v9504_v20  ;;  %2771 = vmatpush1.bf16.msra.mxu1 %v9507_v21 }
 0x71b   :  { %2699 = vmatprep.subr.bf16.mxu0 %v9512_v22  ;;  %2772 = vmatprep.subr.bf16.mxu1 %v9515_v23 }
 0x71e   :  { %2700 = vmatpush1.bf16.msra.mxu0 %v9510_v24  ;;  %2773 = vmatpush1.bf16.msra.mxu1 %v9513_v25 }
 0x71f   :  { %3055 = vmatprep.subr.bf16.mxu0 %v10917_v63  ;;  %3096 = vmatprep.subr.bf16.mxu1 %v10933_v36 }
 0x721   :  { %2718 = vmatmul.mubr.bf16.vlgmr.msra.gmra.mxu0 %v2467_v26  ;;  %2791 = vmatmul.mubr.bf16.vlgmr.msra.gmra.mxu1 %v2467_v26 }
 0x722   :  { %2727 = vmatprep.mubr.bf16.mxu0 %v12816_v1  ;;  %2800 = vmatprep.mubr.bf16.mxu1 %v12816_v1 }
 0x723   :  { %3056 = vmatpush1.bf16.msra.mxu0 %v10922_v33  ;;  %3097 = vmatpush1.bf16.msra.mxu1 %v10928_v44 }
 0x724   :  { %3057 = vmatprep.subr.bf16.mxu0 %v10940_v34  ;;  %3098 = vmatprep.subr.bf16.mxu1 %v10945_v5 }
 0x727   :  { %3058 = vmatpush1.bf16.msra.mxu0 %v10951_v46  ;;  %3099 = vmatpush1.bf16.msra.mxu1 %v10956_v47 }
 0x728   :  { %3059 = vmatprep.subr.bf16.mxu0 %v10964_v48  ;;  %3100 = vmatprep.subr.bf16.mxu1 %v10969_v49 }
 0x729   :  { %2728 = vmatmul.mubr.bf16.gmra.mxu0 %v2468_v27  ;;  %2801 = vmatmul.mubr.bf16.gmra.mxu1 %v2468_v27 }
 0x72a   :  { %2737 = vmatprep.mubr.bf16.mxu0 %v12816_v1  ;;  %2810 = vmatprep.mubr.bf16.mxu1 %v12816_v1 }
 0x72b   :  { %3060 = vmatpush1.bf16.msra.mxu0 %v10975_v50  ;;  %3101 = vmatpush1.bf16.msra.mxu1 %v10980_v51 }
 0x72c   :  { %3061 = vmatprep.subr.bf16.mxu0 %v10988_v52  ;;  %3102 = vmatprep.subr.bf16.mxu1 %v10993_v53 }
 0x72f   :  { %3062 = vmatpush1.bf16.msra.mxu0 %v10999_v54  ;;  %3103 = vmatpush1.bf16.msra.mxu1 %v11004_v39 }
 0x730   :  { %3063 = vmatprep.subr.bf16.mxu0 %v11012_v40  ;;  %3104 = vmatprep.subr.bf16.mxu1 %v11017_v41 }
 0x731   :  { %2738 = vmatmul.mubr.bf16.gmra.mxu0 %v2469_v28  ;;  %2811 = vmatmul.mubr.bf16.gmra.mxu1 %v2469_v28 }
 0x732   :  { %2747 = vmatprep.mubr.bf16.mxu0 %v12816_v1  ;;  %2820 = vmatprep.mubr.bf16.mxu1 %v12816_v1 }
 0x733   :  { %3064 = vmatpush1.bf16.msra.mxu0 %v11023_v42  ;;  %3105 = vmatpush1.bf16.msra.mxu1 %v11028_v43 }
 0x734   :  { %3065 = vmatprep.subr.bf16.mxu0 %v11036_v0  ;;  %3106 = vmatprep.subr.bf16.mxu1 %v11041_v45 }
 0x737   :  { %3066 = vmatpush1.bf16.msra.mxu0 %v11047_v55  ;;  %3107 = vmatpush1.bf16.msra.mxu1 %v11052_v56 }
 0x738   :  { %3067 = vmatprep.subr.bf16.mxu0 %v11064_v58  ;;  %3108 = vmatprep.subr.bf16.mxu1 %v11071_v4 }
 0x73b   :  { %3068 = vmatpush1.bf16.msra.mxu0 %v11057_v57  ;;  %3109 = vmatpush1.bf16.msra.mxu1 %v11077_v7 }
 0x73c   :  { %3069 = vmatprep.subr.bf16.mxu0 %v11082_v9  ;;  %3110 = vmatprep.subr.bf16.mxu1 %v11093_v11 }
 0x73f   :  { %3070 = vmatpush1.bf16.msra.mxu0 %v11088_v10  ;;  %3111 = vmatpush1.bf16.msra.mxu1 %v11099_v18 }
 0x740   :  { %3358 = vmatprep.subr.bf16.mxu0 %v10917_v63  ;;  %3399 = vmatprep.subr.bf16.mxu1 %v10933_v36 }
 0x7c1   :  { %v2383_v38 = vpop.f32.mrf.mxu0  ;;  %v2424_v13 = vpop.f32.mrf.mxu1 }
 0x7c2   :  { %v2435_v14 = vadd.f32 %v2431_v12, %v2383_v38  ;;  %v2437_v21 = vadd.f32 %v2433_v6, %v2424_v13 }
 0x7c3   :  { %v2385_v15 = vpop.f32.mrf.mxu0  ;;  %v2426_v16 = vpop.f32.mrf.mxu1 }
 0x7c4   :  { %v8716_v17 = vmul.f32 -1.442695, %v2435_v14  ;;  %v2436_v37 = vadd.f32 %v2432_v29, %v2385_v15  ;;  %v2438_v19 = vadd.f32 %v2434_v61, %v2426_v16 }
 0x7c5   :  { %v2387_v30 = vpop.f32.mrf.mxu0  ;;  %v2428_v31 = vpop.f32.mrf.mxu1 }
 0x7c6   :  { %9834 = vpow2.f32 %v8716_v17  ;;  %v8717_v59 = vmul.f32 -1.442695, %v2436_v37 }
 0x7c7   :  { %v2388_v32 = vpop.f32.mrf.mxu0  ;;  %v2429_v35 = vpop.f32.mrf.mxu1 }
 0x7c8   :  { %9836 = vpow2.f32 %v8717_v59 }
 0x7d3   :  { %v9835_v60 = vpop.eup %9834 }
 0x7d4   :  { %v2445_v62 = vadd.f32 1.0, %v9835_v60 }
 0x7d5   :  { %v9837_v3 = vpop.eup %9836 }
 0x7d6   :  { %9838 = vrcp.f32 %v2445_v62  ;;  %v2446_v2 = vadd.f32 1.0, %v9837_v3 }
 0x7d8   :  { %9840 = vrcp.f32 %v2446_v2 }
 0x7e1   :  { %v11160_v13 = vpop.f32.mrf.mxu1 }
 0x7e3   :  { %v9839_v20 = vpop.eup %9838  ;;  %v2794_v15 = vpop.f32.mrf.mxu1 }
 0x7e4   :  { %v2451_v22 = vmul.f32 %v9839_v20, %v2438_v19  ;;  %v12818_v20 = vlaneseq }
 0x7e5   :  { %v9841_v24 = vpop.eup %9840  ;;  %v11164_v17 = vpop.f32.mrf.mxu1 }
 0x7e6   :  { %v2452_v23 = vadd.f32 %v2451_v22, %v2437_v21  ;;  %v2454_v25 = vsub.f32 1.0, %v9841_v24  ;;  %v2456_v28 = vmul.f32 %v9841_v24, %v10806_v8 }
 0x7e7   :  { %v11168_v30 = vpop.f32.mrf.mxu1 }
 0x7e8   :  { %9842 = vtanh.f32 %v2452_v23  ;;  %v11199_v23 = vshrl.u32 %v12818_v20, 7 }
 0x7e9   :  { %v11172_v32 = vpop.f32.mrf.mxu1 }
 0x7ea   :  { %12835 = vst [vmem:[#allocation14_spill] sm:$0xff] %v11199_v23 }
 0x7eb   :  { %v11176_v37 = vpop.f32.mrf.mxu1 }
 0x7ed   :  { %v11180_v60 = vpop.f32.mrf.mxu1 }
 0x7ee   :  { %12826 = vst [vmem:[#allocation5_spill] sm:$0xff] %v11180_v60 }
 0x7ef   :  { %v11184_v3 = vpop.f32.mrf.mxu1 }
 0x7f0   :  { %12828 = vst [vmem:[#allocation7_spill] sm:$0xff] %v11184_v3 }
 0x7f1   :  { %v11188_v2 = vpop.f32.mrf.mxu1 }
 0x7f2   :  { %12830 = vst [vmem:[#allocation9_spill] sm:$0xff] %v11188_v2 }
 0x7f3   :  { %v11192_v19 = vpop.f32.mrf.mxu1 }
 0x7f4   :  { %12832 = vst [vmem:[#allocation11_spill] sm:$0xff] %v11192_v19 }
 0x7f5   :  { %v9843_v26 = vpop.eup %9842  ;;  %v11196_v22 = vpop.f32.mrf.mxu1 }
 0x7f6   :  { %v2455_v27 = vmul.f32 %v9843_v26, %v2454_v25  ;;  %12834 = vst [vmem:[#allocation13_spill] sm:$0xff] %v11196_v22  ;;  %v12819_v26 = vsub.s32 0, %v11199_v23 }
 0x7f7   :  { %v11203_v25 = vpop.f32.mrf.mxu1 }
 0x7f8   :  { %v2457_v12 = vadd.f32 %v2456_v28, %v2455_v27  ;;  %12837 = vst [vmem:[#allocation16_spill] sm:$0xff] %v11203_v25  ;;  %v2503_v27 = vld [vmem:[%s12809_s3] sm:$0xf] }
 0x7f9   :  { %v11219_v20 = vrot.slane %v2503_v27, %v12819_v26 }
 0x7fa   :  { %v2470_v38 = vpack.c.bf16 %v2457_v12, %v10806_v8  ;;  %v2719_v8 = vpop.f32.mrf.mxu0 }
 0x7fc   :  { %2748 = vmatmul.mubr.bf16.gmra.mxu0 %v2470_v38  ;;  %2821 = vmatmul.mubr.bf16.gmra.mxu1 %v2470_v38  ;;  %v2721_v14 = vpop.f32.mrf.mxu0 }
 0x7fd   :  { %3087 = vmatprep.mubr.bf16.mxu0 %v12816_v1  ;;  %3128 = vmatprep.mubr.bf16.mxu1 %v12816_v1 }
 0x7fe   :  { %v11162_v16 = vpop.f32.mrf.mxu0 }
 0x800   :  { %v11166_v29 = vpop.f32.mrf.mxu0 }
 0x802   :  { %v11170_v31 = vpop.f32.mrf.mxu0 }
 0x804   :  { %3088 = vmatmul.mubr.bf16.vlgmr.msra.gmra.mxu0 %v12816_v1  ;;  %3129 = vmatmul.mubr.bf16.vlgmr.msra.gmra.mxu1 %v12816_v1  ;;  %v11174_v35 = vpop.f32.mrf.mxu0 }
 0x805   :  { %3359 = vmatpush1.bf16.msra.mxu0 %v10922_v33  ;;  %3400 = vmatpush1.bf16.msra.mxu1 %v10928_v44 }
 0x806   :  { %3360 = vmatprep.subr.bf16.mxu0 %v10940_v34  ;;  %3401 = vmatprep.subr.bf16.mxu1 %v10945_v5  ;;  %v11178_v59 = vpop.f32.mrf.mxu0 }
 0x807   :  { %3390 = vmatprep.mubr.bf16.mxu0 %v12816_v1  ;;  %3431 = vmatprep.mubr.bf16.mxu1 %v12816_v1  ;;  %12825 = vst [vmem:[#allocation4_spill] sm:$0xff] %v11178_v59 }
 0x808   :  { %v11182_v62 = vpop.f32.mrf.mxu0 }
 0x809   :  { %3361 = vmatpush1.bf16.msra.mxu0 %v10951_v46  ;;  %3402 = vmatpush1.bf16.msra.mxu1 %v10956_v47  ;;  %12827 = vst [vmem:[#allocation6_spill] sm:$0xff] %v11182_v62 }
 0x80a   :  { %3362 = vmatprep.subr.bf16.mxu0 %v10964_v48  ;;  %3403 = vmatprep.subr.bf16.mxu1 %v10969_v49  ;;  %v11186_v61 = vpop.f32.mrf.mxu0 }
 0x80b   :  { %12829 = vst [vmem:[#allocation8_spill] sm:$0xff] %v11186_v61 }
 0x80c   :  { %v11190_v6 = vpop.f32.mrf.mxu0 }
 0x80d   :  { %3363 = vmatpush1.bf16.msra.mxu0 %v10975_v50  ;;  %3404 = vmatpush1.bf16.msra.mxu1 %v10980_v51  ;;  %12831 = vst [vmem:[#allocation10_spill] sm:$0xff] %v11190_v6 }
 0x80e   :  { %3364 = vmatprep.subr.bf16.mxu0 %v10988_v52  ;;  %3405 = vmatprep.subr.bf16.mxu1 %v10993_v53  ;;  %v11194_v21 = vpop.f32.mrf.mxu0 }
 0x80f   :  { %12833 = vst [vmem:[#allocation12_spill] sm:$0xff] %v11194_v21 }
 0x810   :  { %v11201_v24 = vpop.f32.mrf.mxu0 }
 0x811   :  { %3365 = vmatpush1.bf16.msra.mxu0 %v10999_v54  ;;  %3406 = vmatpush1.bf16.msra.mxu1 %v11004_v39  ;;  %12836 = vst [vmem:[#allocation15_spill] sm:$0xff] %v11201_v24  ;;  %v12820_v24 = vsub.s32 1, %v11199_v23 }
 0x812   :  { %3366 = vmatprep.subr.bf16.mxu0 %v11012_v40  ;;  %3407 = vmatprep.subr.bf16.mxu1 %v11017_v41 }
 0x815   :  { %3367 = vmatpush1.bf16.msra.mxu0 %v11023_v42  ;;  %3408 = vmatpush1.bf16.msra.mxu1 %v11028_v43 }
 0x816   :  { %3368 = vmatprep.subr.bf16.mxu0 %v11036_v0  ;;  %3409 = vmatprep.subr.bf16.mxu1 %v11041_v45 }
 0x819   :  { %3369 = vmatpush1.bf16.msra.mxu0 %v11047_v55  ;;  %3410 = vmatpush1.bf16.msra.mxu1 %v11052_v56 }
 0x81a   :  { %3370 = vmatprep.subr.bf16.mxu0 %v11064_v58  ;;  %3411 = vmatprep.subr.bf16.mxu1 %v11071_v4 }
 0x81d   :  { %3371 = vmatpush1.bf16.msra.mxu0 %v11057_v57  ;;  %3412 = vmatpush1.bf16.msra.mxu1 %v11077_v7 }
 0x81e   :  { %3372 = vmatprep.subr.bf16.mxu0 %v11082_v9  ;;  %3413 = vmatprep.subr.bf16.mxu1 %v11093_v11 }
 0x821   :  { %3373 = vmatpush1.bf16.msra.mxu0 %v11088_v10  ;;  %3414 = vmatpush1.bf16.msra.mxu1 %v11099_v18 }
 0x822   :  { %3661 = vmatprep.subr.bf16.mxu0 %v10917_v63  ;;  %3702 = vmatprep.subr.bf16.mxu1 %v10933_v36 }
 0x8bc   :  { %v11209_v28 = vpop.f32.mrf.mxu0  ;;  %v11211_v12 = vpop.f32.mrf.mxu1 }
 0x8bd   :  { %12838 = vst [vmem:[#allocation17_spill] sm:$0xff] %v11209_v28  ;;  %12839 = vst [vmem:[#allocation18_spill] sm:$0xff] %v11211_v12  ;;  %v2720_v12 = vadd.f32 %v2719_v8, %v11219_v20 }
 0x8be   :  { %v11213_v38 = vpop.f32.mrf.mxu0  ;;  %v11215_v1 = vpop.f32.mrf.mxu1 }
 0x8bf   :  { %12840 = vst [vmem:[#allocation19_spill] sm:$0xff] %v11213_v38  ;;  %12841 = vst [vmem:[#allocation20_spill] sm:$0xff] %v11215_v1  ;;  %v11233_v1 = vrot.slane %v2503_v27, %v12820_v24  ;;  %v12821_v24 = vsub.s32 3, %v11199_v23 }
 0x8c0   :  { %v11221_v22 = vpop.f32.mrf.mxu0  ;;  %v11223_v25 = vpop.f32.mrf.mxu1 }
 0x8c1   :  { %12842 = vst [vmem:[#allocation21_spill] sm:$0xff] %v11221_v22  ;;  %12843 = vst [vmem:[#allocation22_spill] sm:$0xff] %v11223_v25  ;;  %v2722_v60 = vadd.f32 %v2721_v14, %v11233_v1 }
 0x8c2   :  { %v11226_v21 = vpop.f32.mrf.mxu0  ;;  %v11228_v2 = vpop.f32.mrf.mxu1 }
 0x8c3   :  { %12844 = vst [vmem:[#allocation23_spill] sm:$0xff] %v11226_v21  ;;  %12845 = vst [vmem:[#allocation24_spill] sm:$0xff] %v11228_v2 }
 0x8c4   :  { %v3089_v28 = vpop.f32.mrf.mxu0  ;;  %v3130_v38 = vpop.f32.mrf.mxu1 }
 0x8c5   :  { %v3141_v26 = vadd.f32 %v3089_v28, %v2720_v12  ;;  %v12824_v28 = vsub.s32 2, %v11199_v23 }
 0x8c6   :  { %v3091_v19 = vpop.f32.mrf.mxu0  ;;  %v3132_v6 = vpop.f32.mrf.mxu1 }
 0x8c7   :  { %v8782_v22 = vmul.f32 -1.442695, %v3141_v26  ;;  %v3142_v2 = vadd.f32 %v3091_v19, %v2722_v60  ;;  %v11240_v26 = vrot.slane %v2503_v27, %v12821_v24  ;;  %v11244_v14 = vrot.slane %v2503_v27, %v12824_v28 }
 0x8c8   :  { %v3093_v61 = vpop.f32.mrf.mxu0  ;;  %v3134_v25 = vpop.f32.mrf.mxu1 }
 0x8c9   :  { %9844 = vpow2.f32 %v8782_v22  ;;  %v8783_v62 = vmul.f32 -1.442695, %v3142_v2  ;;  %v2795_v60 = vadd.f32 %v2794_v15, %v11240_v26 }
 0x8ca   :  { %v3094_v21 = vpop.f32.mrf.mxu0  ;;  %v3135_v3 = vpop.f32.mrf.mxu1 }
 0x8cb   :  { %9846 = vpow2.f32 %v8783_v62  ;;  %v2793_v62 = vadd.f32 %v11160_v13, %v11244_v14  ;;  %v12846_v13 = vmov 0  }
 0x8cd   :  { %v3143_v19 = vadd.f32 %v3130_v38, %v2793_v62 }
 0x8d6   :  { %v9845_v8 = vpop.eup %9844 }
 0x8d7   :  { %v3151_v59 = vadd.f32 1.0, %v9845_v8 }
 0x8d8   :  { %v9847_v61 = vpop.eup %9846 }
 0x8d9   :  { %9848 = vrcp.f32 %v3151_v59  ;;  %v3152_v3 = vadd.f32 1.0, %v9847_v61  ;;  %v3144_v59 = vadd.f32 %v3132_v6, %v2795_v60  ;;  %v2724_v6 = vadd.f32 %v11162_v16, %v11219_v20 }
 0x8db   :  { %9850 = vrcp.f32 %v3152_v3 }
 0x8e6   :  { %v9849_v2 = vpop.eup %9848 }
 0x8e7   :  { %v3157_v21 = vmul.f32 %v9849_v2, %v3144_v59  ;;  %v2726_v2 = vadd.f32 %v11166_v29, %v11233_v1 }
 0x8e8   :  { %v9851_v25 = vpop.eup %9850 }
 0x8e9   :  { %v3158_v22 = vadd.f32 %v3157_v21, %v3143_v19  ;;  %v3160_v12 = vsub.f32 1.0, %v9851_v25  ;;  %v3162_v23 = vmul.f32 0.0, %v9851_v25 }
 0x8eb   :  { %9852 = vtanh.f32 %v3158_v22 }
 0x8f8   :  { %v9853_v8 = vpop.eup %9852 }
 0x8f9   :  { %v3161_v24 = vmul.f32 %v9853_v8, %v3160_v12  ;;  %v2799_v12 = vadd.f32 %v11168_v30, %v11240_v26 }
 0x8fb   :  { %v11249_v27 = vadd.f32 %v3162_v23, %v3161_v24 }
 0x8fd   :  { %v3165_v15 = vpack.c.bf16 %v11249_v27, %v11249_v27 }
 0x8ff   :  { %3391 = vmatmul.mubr.bf16.vlgmr.msra.gmra.mxu0 %v3165_v15  ;;  %3432 = vmatmul.mubr.bf16.vlgmr.msra.gmra.mxu1 %v3165_v15  ;;  %v2797_v15 = vadd.f32 %v11164_v17, %v11244_v14 }
 0x900   :  { %3662 = vmatpush1.bf16.msra.mxu0 %v10922_v33  ;;  %3703 = vmatpush1.bf16.msra.mxu1 %v10928_v44 }
 0x901   :  { %3663 = vmatprep.subr.bf16.mxu0 %v10940_v34  ;;  %3704 = vmatprep.subr.bf16.mxu1 %v10945_v5 }
 0x902   :  { %3693 = vmatprep.mubr.bf16.mxu0 %v12846_v13  ;;  %3734 = vmatprep.mubr.bf16.mxu1 %v12846_v13 }
 0x904   :  { %3664 = vmatpush1.bf16.msra.mxu0 %v10951_v46  ;;  %3705 = vmatpush1.bf16.msra.mxu1 %v10956_v47 }
 0x905   :  { %3665 = vmatprep.subr.bf16.mxu0 %v10964_v48  ;;  %3706 = vmatprep.subr.bf16.mxu1 %v10969_v49 }
 0x908   :  { %3666 = vmatpush1.bf16.msra.mxu0 %v10975_v50  ;;  %3707 = vmatpush1.bf16.msra.mxu1 %v10980_v51 }
 0x909   :  { %3667 = vmatprep.subr.bf16.mxu0 %v10988_v52  ;;  %3708 = vmatprep.subr.bf16.mxu1 %v10993_v53 }
 0x90c   :  { %3668 = vmatpush1.bf16.msra.mxu0 %v10999_v54  ;;  %3709 = vmatpush1.bf16.msra.mxu1 %v11004_v39 }
 0x90d   :  { %3669 = vmatprep.subr.bf16.mxu0 %v11012_v40  ;;  %3710 = vmatprep.subr.bf16.mxu1 %v11017_v41 }
 0x910   :  { %3670 = vmatpush1.bf16.msra.mxu0 %v11023_v42  ;;  %3711 = vmatpush1.bf16.msra.mxu1 %v11028_v43 }
 0x911   :  { %3671 = vmatprep.subr.bf16.mxu0 %v11036_v0  ;;  %3712 = vmatprep.subr.bf16.mxu1 %v11041_v45 }
 0x914   :  { %3672 = vmatpush1.bf16.msra.mxu0 %v11047_v55  ;;  %3713 = vmatpush1.bf16.msra.mxu1 %v11052_v56 }
 0x915   :  { %3673 = vmatprep.subr.bf16.mxu0 %v11064_v58  ;;  %3714 = vmatprep.subr.bf16.mxu1 %v11071_v4 }
 0x918   :  { %3674 = vmatpush1.bf16.msra.mxu0 %v11057_v57  ;;  %3715 = vmatpush1.bf16.msra.mxu1 %v11077_v7 }
 0x919   :  { %3675 = vmatprep.subr.bf16.mxu0 %v11082_v9  ;;  %3716 = vmatprep.subr.bf16.mxu1 %v11093_v11 }
 0x91c   :  { %3676 = vmatpush1.bf16.msra.mxu0 %v11088_v10  ;;  %3717 = vmatpush1.bf16.msra.mxu1 %v11099_v18 }
 0x91d   :  { %3964 = vmatprep.subr.bf16.mxu0 %v10917_v63  ;;  %4005 = vmatprep.subr.bf16.mxu1 %v10933_v36 }
 0x9bf   :  { %v3392_v23 = vpop.f32.mrf.mxu0  ;;  %v3433_v24 = vpop.f32.mrf.mxu1 }
 0x9c0   :  { %v3444_v38 = vadd.f32 %v3392_v23, %v2724_v6  ;;  %v3446_v29 = vadd.f32 %v3433_v24, %v2797_v15  ;;  %v11365_v24 = vld [vmem:[%s12808_s4 + $0xe8] ss:$16 sps:$4 sm:$0xff]   ;;  %v11422_v15 = vld [vmem:[%s12808_s4 + $0x84] ss:$16 sps:$4 sm:$0xff]  }
 0x9c1   :  { %v3394_v61 = vpop.f32.mrf.mxu0  ;;  %v3435_v60 = vpop.f32.mrf.mxu1 }
 0x9c2   :  { %v8816_v3 = vmul.f32 -1.442695, %v3444_v38  ;;  %v3445_v63 = vadd.f32 %v3394_v61, %v2726_v2  ;;  %v3447_v6 = vadd.f32 %v3435_v60, %v2799_v12  ;;  %v11374_v60 = vld [vmem:[%s12808_s4 + $0xc4] ss:$16 sps:$4 sm:$0xff]   ;;  %v11408_v12 = vld [vmem:[%s12808_s4 + $0xa0] ss:$16 sps:$4 sm:$0xff]  }
 0x9c3   :  { %v3396_v62 = vpop.f32.mrf.mxu0  ;;  %v3437_v59 = vpop.f32.mrf.mxu1 }
 0x9c4   :  { %9854 = vpow2.f32 %v8816_v3  ;;  %v8817_v22 = vmul.f32 -1.442695, %v3445_v63  ;;  %v11379_v63 = vld [vmem:[%s12808_s4 + $0xcc] ss:$16 sps:$4 sm:$0xff]  }
 0x9c5   :  { %v3397_v19 = vpop.f32.mrf.mxu0  ;;  %v3438_v21 = vpop.f32.mrf.mxu1 }
 0x9c6   :  { %9856 = vpow2.f32 %v8817_v22  ;;  %v11384_v22 = vld [vmem:[%s12808_s4 + $0xc0] ss:$16 sps:$4 sm:$0xff]  }
 0x9d1   :  { %v9855_v36 = vpop.eup %9854 }
 0x9d2   :  { %v3454_v25 = vadd.f32 1.0, %v9855_v36  ;;  %v11389_v36 = vld [vmem:[%s12808_s4 + $0xc8] ss:$16 sps:$4 sm:$0xff]  }
 0x9d3   :  { %v9857_v16 = vpop.eup %9856 }
 0x9d4   :  { %9858 = vrcp.f32 %v3454_v25  ;;  %v3455_v8 = vadd.f32 1.0, %v9857_v16  ;;  %v11398_v25 = vld [vmem:[%s12808_s4 + $0xa4] ss:$16 sps:$4 sm:$0xff]   ;;  %v11403_v16 = vld [vmem:[%s12808_s4 + $0xac] ss:$16 sps:$4 sm:$0xff]  }
 0x9d6   :  { %9860 = vrcp.f32 %v3455_v8  ;;  %v11413_v8 = vld [vmem:[%s12808_s4 + $0xa8] ss:$16 sps:$4 sm:$0xff]  }
 0x9e1   :  { %v9859_v23 = vpop.eup %9858 }
 0x9e2   :  { %v3460_v38 = vmul.f32 %v9859_v23, %v3447_v6  ;;  %v11427_v6 = vld [vmem:[%s12808_s4 + $0x8c] ss:$16 sps:$4 sm:$0xff]   ;;  %v11432_v23 = vld [vmem:[%s12808_s4 + $0x80] ss:$16 sps:$4 sm:$0xff]  }
 0x9e3   :  { %v9861_v61 = vpop.eup %9860 }
 0x9e4   :  { %v3461_v3 = vadd.f32 %v3460_v38, %v3446_v29  ;;  %v3463_v62 = vsub.f32 1.0, %v9861_v61  ;;  %v3465_v19 = vmul.f32 %v9861_v61, %v11249_v27  ;;  %v11437_v29 = vld [vmem:[%s12808_s4 + $0x88] ss:$16 sps:$4 sm:$0xff]   ;;  %v11444_v38 = vld [vmem:[%s12808_s4 + $0x64] ss:$16 sps:$4 sm:$0xff]  }
 0x9e5   :  { %v11456_v61 = vld [vmem:[%s12808_s4 + $0x60] ss:$16 sps:$4 sm:$0xff]  }
 0x9e6   :  { %9862 = vtanh.f32 %v3461_v3  ;;  %v11449_v3 = vld [vmem:[%s12808_s4 + $0x6c] ss:$16 sps:$4 sm:$0xff]  }
 0x9f3   :  { %v9863_v59 = vpop.eup %9862 }
 0x9f4   :  { %v3464_v2 = vmul.f32 %v9863_v59, %v3463_v62  ;;  %v11461_v62 = vld [vmem:[%s12808_s4 + $0x68] ss:$16 sps:$4 sm:$0xff]   ;;  %v11468_v59 = vld [vmem:[%s12808_s4 + $0x44] ss:$16 sps:$4 sm:$0xff]  }
 0x9f6   :  { %v11296_v21 = vadd.f32 %v3465_v19, %v3464_v2  ;;  %v11473_v2 = vld [vmem:[%s12808_s4 + $0x4c] ss:$16 sps:$4 sm:$0xff]   ;;  %v11480_v19 = vld [vmem:[%s12808_s4 + $0x40] ss:$16 sps:$4 sm:$0xff]  }
 0x9f8   :  { %v3468_v30 = vpack.c.bf16 %v11296_v21, %v11296_v21 }
 0x9fa   :  { %3694 = vmatmul.mubr.bf16.vlgmr.msra.gmra.mxu0 %v3468_v30  ;;  %3735 = vmatmul.mubr.bf16.vlgmr.msra.gmra.mxu1 %v3468_v30  ;;  %v11485_v30 = vld [vmem:[%s12808_s4 + $0x48] ss:$16 sps:$4 sm:$0xff]  }
 0x9fb   :  { %3965 = vmatpush1.bf16.msra.mxu0 %v10922_v33  ;;  %4006 = vmatpush1.bf16.msra.mxu1 %v10928_v44  ;;  %v2730_v33 = vadd.f32 %v11170_v31, %v11219_v20 }
 0x9fc   :  { %3966 = vmatprep.subr.bf16.mxu0 %v10940_v34  ;;  %4007 = vmatprep.subr.bf16.mxu1 %v10945_v5 }
 0x9fd   :  { %3996 = vmatprep.mubr.bf16.mxu0 %v12846_v13  ;;  %4037 = vmatprep.mubr.bf16.mxu1 %v12846_v13 }
 0x9ff   :  { %3967 = vmatpush1.bf16.msra.mxu0 %v10951_v46  ;;  %4008 = vmatpush1.bf16.msra.mxu1 %v10956_v47 }
 0xa00   :  { %3968 = vmatprep.subr.bf16.mxu0 %v10964_v48  ;;  %4009 = vmatprep.subr.bf16.mxu1 %v10969_v49 }
 0xa03   :  { %3969 = vmatpush1.bf16.msra.mxu0 %v10975_v50  ;;  %4010 = vmatpush1.bf16.msra.mxu1 %v10980_v51  ;;  %v2732_v51 = vadd.f32 %v11174_v35, %v11233_v1  ;;  %v11355_v35 = vld [vmem:[%s12808_s4 + $0xec] ss:$16 sps:$4 sm:$0xff]  }
 0xa04   :  { %3970 = vmatprep.subr.bf16.mxu0 %v10988_v52  ;;  %4011 = vmatprep.subr.bf16.mxu1 %v10993_v53 }
 0xa07   :  { %3971 = vmatpush1.bf16.msra.mxu0 %v10999_v54  ;;  %4012 = vmatpush1.bf16.msra.mxu1 %v11004_v39 }
 0xa08   :  { %3972 = vmatprep.subr.bf16.mxu0 %v11012_v40  ;;  %4013 = vmatprep.subr.bf16.mxu1 %v11017_v41 }
 0xa0b   :  { %3973 = vmatpush1.bf16.msra.mxu0 %v11023_v42  ;;  %4014 = vmatpush1.bf16.msra.mxu1 %v11028_v43  ;;  %v2805_v43 = vadd.f32 %v11176_v37, %v11240_v26  ;;  %v11360_v37 = vld [vmem:[%s12808_s4 + $0xe0] ss:$16 sps:$4 sm:$0xff]  }
 0xa0c   :  { %3974 = vmatprep.subr.bf16.mxu0 %v11036_v0  ;;  %4015 = vmatprep.subr.bf16.mxu1 %v11041_v45  ;;  %v2803_v45 = vadd.f32 %v11172_v32, %v11244_v14  ;;  %v11350_v32 = vld [vmem:[%s12808_s4 + $0xe4] ss:$16 sps:$4 sm:$0xff]  }
 0xa0f   :  { %3975 = vmatpush1.bf16.msra.mxu0 %v11047_v55  ;;  %4016 = vmatpush1.bf16.msra.mxu1 %v11052_v56 }
 0xa10   :  { %3976 = vmatprep.subr.bf16.mxu0 %v11064_v58  ;;  %4017 = vmatprep.subr.bf16.mxu1 %v11071_v4 }
 0xa13   :  { %3977 = vmatpush1.bf16.msra.mxu0 %v11057_v57  ;;  %4018 = vmatpush1.bf16.msra.mxu1 %v11077_v7 }
 0xa14   :  { %3978 = vmatprep.subr.bf16.mxu0 %v11082_v9  ;;  %4019 = vmatprep.subr.bf16.mxu1 %v11093_v11 }
 0xa17   :  { %3979 = vmatpush1.bf16.msra.mxu0 %v11088_v10  ;;  %4020 = vmatpush1.bf16.msra.mxu1 %v11099_v18 }
 0xa18   :  { %4267 = vmatprep.subr.bf16.mxu0 %v11350_v32  ;;  %4308 = vmatprep.subr.bf16.mxu1 %v11355_v35 }
 0xaba   :  { %v3695_v44 = vpop.f32.mrf.mxu0  ;;  %v3736_v34 = vpop.f32.mrf.mxu1 }
 0xabb   :  { %v3747_v5 = vadd.f32 %v3695_v44, %v2730_v33  ;;  %v3749_v57 = vadd.f32 %v3736_v34, %v2803_v45  ;;  %v11492_v33 = vld [vmem:[%s12808_s4 + $0x24] ss:$16 sps:$4 sm:$0xff]   ;;  %v11497_v44 = vld [vmem:[%s12808_s4 + $0x2c] ss:$16 sps:$4 sm:$0xff]   ;;  %v11504_v34 = vld [vmem:[%s12808_s4 + $0x20] ss:$16 sps:$4 sm:$0xff]  }
 0xabc   :  { %v3697_v46 = vpop.f32.mrf.mxu0  ;;  %v3738_v47 = vpop.f32.mrf.mxu1 }
 0xabd   :  { %v8850_v48 = vmul.f32 -1.442695, %v3747_v5  ;;  %v3748_v54 = vadd.f32 %v3697_v46, %v2732_v51  ;;  %v3750_v55 = vadd.f32 %v3738_v47, %v2805_v43  ;;  %v11509_v5 = vld [vmem:[%s12808_s4 + $0x28] ss:$16 sps:$4 sm:$0xff]   ;;  %v11516_v46 = vld [vmem:[%s12808_s4 + $0x4] ss:$16 sps:$4 sm:$0xff]  }
 0xabe   :  { %v3699_v49 = vpop.f32.mrf.mxu0  ;;  %v3740_v50 = vpop.f32.mrf.mxu1  ;;  %v11521_v47 = vld [vmem:[%s12808_s4 + $0xc] ss:$16 sps:$4 sm:$0xff]  }
 0xabf   :  { %9864 = vpow2.f32 %v8850_v48  ;;  %v8851_v39 = vmul.f32 -1.442695, %v3748_v54  ;;  %v11528_v48 = vld [vmem:[%s12808_s4] ss:$16 sps:$4 sm:$0xff]   ;;  %v11533_v49 = vld [vmem:[%s12808_s4 + $0x8] ss:$16 sps:$4 sm:$0xff]  }
 0xac0   :  { %v3700_v52 = vpop.f32.mrf.mxu0  ;;  %v3741_v53 = vpop.f32.mrf.mxu1  ;;  %v12847_v50 = vld [vmem:[#allocation4_spill] sm:$0xff] }
 0xac1   :  { %9866 = vpow2.f32 %v8851_v39  ;;  %v2734_v51 = vadd.f32 %v12847_v50, %v11219_v20 }
 0xacc   :  { %v9865_v40 = vpop.eup %9864 }
 0xacd   :  { %v3757_v41 = vadd.f32 1.0, %v9865_v40 }
 0xace   :  { %v9867_v42 = vpop.eup %9866 }
 0xacf   :  { %9868 = vrcp.f32 %v3757_v41  ;;  %v3758_v0 = vadd.f32 1.0, %v9867_v42 }
 0xad1   :  { %9870 = vrcp.f32 %v3758_v0  ;;  %v12848_v0 = vld [vmem:[#allocation6_spill] sm:$0xff] }
 0xad2   :  { %v2736_v45 = vadd.f32 %v12848_v0, %v11233_v1 }
 0xadc   :  { %v9869_v56 = vpop.eup %9868 }
 0xadd   :  { %v3763_v58 = vmul.f32 %v9869_v56, %v3750_v55 }
 0xade   :  { %v9871_v7 = vpop.eup %9870 }
 0xadf   :  { %v3764_v4 = vadd.f32 %v3763_v58, %v3749_v57  ;;  %v3766_v9 = vsub.f32 1.0, %v9871_v7  ;;  %v3768_v18 = vmul.f32 %v9871_v7, %v11296_v21 }
 0xae1   :  { %9872 = vtanh.f32 %v3764_v4 }
 0xaee   :  { %v9873_v10 = vpop.eup %9872 }
 0xaef   :  { %v3767_v11 = vmul.f32 %v9873_v10, %v3766_v9  ;;  %v12849_v10 = vld [vmem:[#allocation7_spill] sm:$0xff] }
 0xaf1   :  { %v11341_v17 = vadd.f32 %v3768_v18, %v3767_v11  ;;  %v2809_v11 = vadd.f32 %v12849_v10, %v11240_v26 }
 0xaf3   :  { %v3771_v31 = vpack.c.bf16 %v11341_v17, %v11341_v17 }
 0xaf5   :  { %3997 = vmatmul.mubr.bf16.vlgmr.msra.gmra.mxu0 %v3771_v31  ;;  %4038 = vmatmul.mubr.bf16.vlgmr.msra.gmra.mxu1 %v3771_v31  ;;  %v12850_v31 = vld [vmem:[#allocation5_spill] sm:$0xff] }
 0xaf6   :  { %4299 = vmatprep.mubr.bf16.mxu0 %v12846_v13  ;;  %4340 = vmatprep.mubr.bf16.mxu1 %v12846_v13  ;;  %v2807_v50 = vadd.f32 %v12850_v31, %v11244_v14 }
 0xaf7   :  { %4268 = vmatpush1.bf16.msra.mxu0 %v11360_v37  ;;  %4309 = vmatpush1.bf16.msra.mxu1 %v11365_v24 }
 0xaf8   :  { %4269 = vmatprep.subr.bf16.mxu0 %v11374_v60  ;;  %4310 = vmatprep.subr.bf16.mxu1 %v11379_v63 }
 0xafb   :  { %4270 = vmatpush1.bf16.msra.mxu0 %v11384_v22  ;;  %4311 = vmatpush1.bf16.msra.mxu1 %v11389_v36 }
 0xafc   :  { %4271 = vmatprep.subr.bf16.mxu0 %v11398_v25  ;;  %4312 = vmatprep.subr.bf16.mxu1 %v11403_v16 }
 0xaff   :  { %4272 = vmatpush1.bf16.msra.mxu0 %v11408_v12  ;;  %4313 = vmatpush1.bf16.msra.mxu1 %v11413_v8 }
 0xb00   :  { %4273 = vmatprep.subr.bf16.mxu0 %v11422_v15  ;;  %4314 = vmatprep.subr.bf16.mxu1 %v11427_v6 }
 0xb03   :  { %4274 = vmatpush1.bf16.msra.mxu0 %v11432_v23  ;;  %4315 = vmatpush1.bf16.msra.mxu1 %v11437_v29 }
 0xb04   :  { %4275 = vmatprep.subr.bf16.mxu0 %v11444_v38  ;;  %4316 = vmatprep.subr.bf16.mxu1 %v11449_v3 }
 0xb07   :  { %4276 = vmatpush1.bf16.msra.mxu0 %v11456_v61  ;;  %4317 = vmatpush1.bf16.msra.mxu1 %v11461_v62 }
 0xb08   :  { %4277 = vmatprep.subr.bf16.mxu0 %v11468_v59  ;;  %4318 = vmatprep.subr.bf16.mxu1 %v11473_v2 }
 0xb0b   :  { %4278 = vmatpush1.bf16.msra.mxu0 %v11480_v19  ;;  %4319 = vmatpush1.bf16.msra.mxu1 %v11485_v30 }
 0xb0c   :  { %4279 = vmatprep.subr.bf16.mxu0 %v11492_v33  ;;  %4320 = vmatprep.subr.bf16.mxu1 %v11497_v44 }
 0xb0f   :  { %4280 = vmatpush1.bf16.msra.mxu0 %v11504_v34  ;;  %4321 = vmatpush1.bf16.msra.mxu1 %v11509_v5 }
 0xb10   :  { %4281 = vmatprep.subr.bf16.mxu0 %v11516_v46  ;;  %4322 = vmatprep.subr.bf16.mxu1 %v11521_v47 }
 0xb13   :  { %4282 = vmatpush1.bf16.msra.mxu0 %v11528_v48  ;;  %4323 = vmatpush1.bf16.msra.mxu1 %v11533_v49 }
 0xb14   :  { %4570 = vmatprep.subr.bf16.mxu0 %v11350_v32  ;;  %4611 = vmatprep.subr.bf16.mxu1 %v11355_v35 }
 0xbb5   :  { %v3998_v52 = vpop.f32.mrf.mxu0  ;;  %v4039_v53 = vpop.f32.mrf.mxu1 }
 0xbb6   :  { %v4050_v54 = vadd.f32 %v3998_v52, %v2734_v51 }
 0xbb7   :  { %v4000_v39 = vpop.f32.mrf.mxu0  ;;  %v4041_v40 = vpop.f32.mrf.mxu1 }
 0xbb8   :  { %v8884_v41 = vmul.f32 -1.442695, %v4050_v54  ;;  %v4051_v57 = vadd.f32 %v4000_v39, %v2736_v45  ;;  %v4053_v51 = vadd.f32 %v4041_v40, %v2809_v11  ;;  %v4052_v54 = vadd.f32 %v4039_v53, %v2807_v50  ;;  %v12851_v53 = vld [vmem:[#allocation8_spill] sm:$0xff]  ;;  %v12852_v50 = vld [vmem:[#allocation10_spill] sm:$0xff] }
 0xbb9   :  { %v4002_v42 = vpop.f32.mrf.mxu0  ;;  %v4043_v43 = vpop.f32.mrf.mxu1  ;;  %v2740_v40 = vadd.f32 %v12851_v53, %v11219_v20  ;;  %v12854_v53 = vld [vmem:[#allocation9_spill] sm:$0xff] }
 0xbba   :  { %9874 = vpow2.f32 %v8884_v41  ;;  %v8885_v58 = vmul.f32 -1.442695, %v4051_v57 }
 0xbbb   :  { %v4003_v55 = vpop.f32.mrf.mxu0  ;;  %v4044_v56 = vpop.f32.mrf.mxu1 }
 0xbbc   :  { %9876 = vpow2.f32 %v8885_v58 }
 0xbc7   :  { %v9875_v4 = vpop.eup %9874 }
 0xbc8   :  { %v4060_v7 = vadd.f32 1.0, %v9875_v4 }
 0xbc9   :  { %v9877_v9 = vpop.eup %9876 }
 0xbca   :  { %9878 = vrcp.f32 %v4060_v7  ;;  %v4061_v18 = vadd.f32 1.0, %v9877_v9 }
 0xbcc   :  { %9880 = vrcp.f32 %v4061_v18 }
 0xbd7   :  { %v9879_v52 = vpop.eup %9878 }
 0xbd8   :  { %v4066_v41 = vmul.f32 %v9879_v52, %v4053_v51  ;;  %v2742_v51 = vadd.f32 %v12852_v50, %v11233_v1 }
 0xbd9   :  { %v9881_v39 = vpop.eup %9880 }
 0xbda   :  { %v4067_v42 = vadd.f32 %v4066_v41, %v4052_v54  ;;  %v4069_v43 = vsub.f32 1.0, %v9881_v39  ;;  %v4071_v55 = vmul.f32 %v9881_v39, %v11341_v17 }
 0xbdc   :  { %9882 = vtanh.f32 %v4067_v42 }
 0xbe9   :  { %v9883_v0 = vpop.eup %9882 }
 0xbea   :  { %v4070_v45 = vmul.f32 %v9883_v0, %v4069_v43 }
 0xbec   :  { %v11550_v56 = vadd.f32 %v4071_v55, %v4070_v45  ;;  %v12853_v45 = vld [vmem:[#allocation11_spill] sm:$0xff] }
 0xbed   :  { %v2815_v55 = vadd.f32 %v12853_v45, %v11240_v26 }
 0xbee   :  { %v4074_v57 = vpack.c.bf16 %v11550_v56, %v11550_v56 }
 0xbf0   :  { %4300 = vmatmul.mubr.bf16.vlgmr.msra.gmra.mxu0 %v4074_v57  ;;  %4341 = vmatmul.mubr.bf16.vlgmr.msra.gmra.mxu1 %v4074_v57 }
 0xbf1   :  { %4571 = vmatpush1.bf16.msra.mxu0 %v11360_v37  ;;  %4612 = vmatpush1.bf16.msra.mxu1 %v11365_v24 }
 0xbf2   :  { %4572 = vmatprep.subr.bf16.mxu0 %v11374_v60  ;;  %4613 = vmatprep.subr.bf16.mxu1 %v11379_v63 }
 0xbf3   :  { %4602 = vmatprep.mubr.bf16.mxu0 %v12846_v13  ;;  %4643 = vmatprep.mubr.bf16.mxu1 %v12846_v13 }
 0xbf5   :  { %4573 = vmatpush1.bf16.msra.mxu0 %v11384_v22  ;;  %4614 = vmatpush1.bf16.msra.mxu1 %v11389_v36 }
 0xbf6   :  { %4574 = vmatprep.subr.bf16.mxu0 %v11398_v25  ;;  %4615 = vmatprep.subr.bf16.mxu1 %v11403_v16 }
 0xbf9   :  { %4575 = vmatpush1.bf16.msra.mxu0 %v11408_v12  ;;  %4616 = vmatpush1.bf16.msra.mxu1 %v11413_v8 }
 0xbfa   :  { %4576 = vmatprep.subr.bf16.mxu0 %v11422_v15  ;;  %4617 = vmatprep.subr.bf16.mxu1 %v11427_v6 }
 0xbfd   :  { %4577 = vmatpush1.bf16.msra.mxu0 %v11432_v23  ;;  %4618 = vmatpush1.bf16.msra.mxu1 %v11437_v29 }
 0xbfe   :  { %4578 = vmatprep.subr.bf16.mxu0 %v11444_v38  ;;  %4619 = vmatprep.subr.bf16.mxu1 %v11449_v3 }
 0xc01   :  { %4579 = vmatpush1.bf16.msra.mxu0 %v11456_v61  ;;  %4620 = vmatpush1.bf16.msra.mxu1 %v11461_v62 }
 0xc02   :  { %4580 = vmatprep.subr.bf16.mxu0 %v11468_v59  ;;  %4621 = vmatprep.subr.bf16.mxu1 %v11473_v2 }
 0xc05   :  { %4581 = vmatpush1.bf16.msra.mxu0 %v11480_v19  ;;  %4622 = vmatpush1.bf16.msra.mxu1 %v11485_v30 }
 0xc06   :  { %4582 = vmatprep.subr.bf16.mxu0 %v11492_v33  ;;  %4623 = vmatprep.subr.bf16.mxu1 %v11497_v44 }
 0xc09   :  { %4583 = vmatpush1.bf16.msra.mxu0 %v11504_v34  ;;  %4624 = vmatpush1.bf16.msra.mxu1 %v11509_v5 }
 0xc0a   :  { %4584 = vmatprep.subr.bf16.mxu0 %v11516_v46  ;;  %4625 = vmatprep.subr.bf16.mxu1 %v11521_v47 }
 0xc0d   :  { %4585 = vmatpush1.bf16.msra.mxu0 %v11528_v48  ;;  %4626 = vmatpush1.bf16.msra.mxu1 %v11533_v49 }
 0xc0e   :  { %4873 = vmatprep.subr.bf16.mxu0 %v11350_v32  ;;  %4914 = vmatprep.subr.bf16.mxu1 %v11355_v35 }
 0xcb0   :  { %v4301_v58 = vpop.f32.mrf.mxu0  ;;  %v4342_v4 = vpop.f32.mrf.mxu1 }
 0xcb1   :  { %v4353_v7 = vadd.f32 %v4301_v58, %v2740_v40  ;;  %v2813_v40 = vadd.f32 %v12854_v53, %v11244_v14 }
 0xcb2   :  { %v4303_v9 = vpop.f32.mrf.mxu0  ;;  %v4344_v10 = vpop.f32.mrf.mxu1 }
 0xcb3   :  { %v8918_v11 = vmul.f32 -1.442695, %v4353_v7  ;;  %v4354_v41 = vadd.f32 %v4303_v9, %v2742_v51  ;;  %v4356_v58 = vadd.f32 %v4344_v10, %v2815_v55 }
 0xcb4   :  { %v4305_v18 = vpop.f32.mrf.mxu0  ;;  %v4346_v31 = vpop.f32.mrf.mxu1 }
 0xcb5   :  { %9884 = vpow2.f32 %v8918_v11  ;;  %v8919_v42 = vmul.f32 -1.442695, %v4354_v41  ;;  %v4355_v18 = vadd.f32 %v4342_v4, %v2813_v40  ;;  %v12855_v4 = vld [vmem:[#allocation12_spill] sm:$0xff] }
 0xcb6   :  { %v4306_v52 = vpop.f32.mrf.mxu0  ;;  %v4347_v54 = vpop.f32.mrf.mxu1  ;;  %v2744_v10 = vadd.f32 %v12855_v4, %v11219_v20 }
 0xcb7   :  { %9886 = vpow2.f32 %v8919_v42 }
 0xcc2   :  { %v9885_v39 = vpop.eup %9884 }
 0xcc3   :  { %v4363_v43 = vadd.f32 1.0, %v9885_v39 }
 0xcc4   :  { %v9887_v0 = vpop.eup %9886 }
 0xcc5   :  { %9888 = vrcp.f32 %v4363_v43  ;;  %v4364_v57 = vadd.f32 1.0, %v9887_v0 }
 0xcc7   :  { %9890 = vrcp.f32 %v4364_v57 }
 0xcd2   :  { %v9889_v7 = vpop.eup %9888 }
 0xcd3   :  { %v4369_v11 = vmul.f32 %v9889_v7, %v4356_v58  ;;  %v12856_v58 = vld [vmem:[#allocation15_spill] sm:$0xff] }
 0xcd4   :  { %v9891_v9 = vpop.eup %9890  ;;  %v2746_v7 = vadd.f32 %v12856_v58, %v11233_v1 }
 0xcd5   :  { %v4370_v31 = vadd.f32 %v4369_v11, %v4355_v18  ;;  %v4372_v50 = vsub.f32 1.0, %v9891_v9  ;;  %v4374_v54 = vmul.f32 %v9891_v9, %v11550_v56 }
 0xcd7   :  { %9892 = vtanh.f32 %v4370_v31 }
 0xce4   :  { %v9893_v51 = vpop.eup %9892 }
 0xce5   :  { %v4373_v52 = vmul.f32 %v9893_v51, %v4372_v50  ;;  %v12857_v51 = vld [vmem:[#allocation16_spill] sm:$0xff] }
 0xce7   :  { %v11597_v41 = vadd.f32 %v4374_v54, %v4373_v52  ;;  %v2819_v52 = vadd.f32 %v12857_v51, %v11240_v26 }
 0xce9   :  { %v4377_v42 = vpack.c.bf16 %v11597_v41, %v11597_v41 }
 0xceb   :  { %4603 = vmatmul.mubr.bf16.vlgmr.msra.gmra.mxu0 %v4377_v42  ;;  %4644 = vmatmul.mubr.bf16.vlgmr.msra.gmra.mxu1 %v4377_v42  ;;  %v12858_v42 = vld [vmem:[#allocation13_spill] sm:$0xff] }
 0xcec   :  { %4874 = vmatpush1.bf16.msra.mxu0 %v11360_v37  ;;  %4915 = vmatpush1.bf16.msra.mxu1 %v11365_v24  ;;  %v2817_v4 = vadd.f32 %v12858_v42, %v11244_v14 }
 0xced   :  { %4875 = vmatprep.subr.bf16.mxu0 %v11374_v60  ;;  %4916 = vmatprep.subr.bf16.mxu1 %v11379_v63 }
 0xcee   :  { %4905 = vmatprep.mubr.bf16.mxu0 %v12846_v13  ;;  %4946 = vmatprep.mubr.bf16.mxu1 %v12846_v13 }
 0xcf0   :  { %4876 = vmatpush1.bf16.msra.mxu0 %v11384_v22  ;;  %4917 = vmatpush1.bf16.msra.mxu1 %v11389_v36 }
 0xcf1   :  { %4877 = vmatprep.subr.bf16.mxu0 %v11398_v25  ;;  %4918 = vmatprep.subr.bf16.mxu1 %v11403_v16 }
 0xcf4   :  { %4878 = vmatpush1.bf16.msra.mxu0 %v11408_v12  ;;  %4919 = vmatpush1.bf16.msra.mxu1 %v11413_v8 }
 0xcf5   :  { %4879 = vmatprep.subr.bf16.mxu0 %v11422_v15  ;;  %4920 = vmatprep.subr.bf16.mxu1 %v11427_v6 }
 0xcf8   :  { %4880 = vmatpush1.bf16.msra.mxu0 %v11432_v23  ;;  %4921 = vmatpush1.bf16.msra.mxu1 %v11437_v29 }
 0xcf9   :  { %4881 = vmatprep.subr.bf16.mxu0 %v11444_v38  ;;  %4922 = vmatprep.subr.bf16.mxu1 %v11449_v3 }
 0xcfc   :  { %4882 = vmatpush1.bf16.msra.mxu0 %v11456_v61  ;;  %4923 = vmatpush1.bf16.msra.mxu1 %v11461_v62 }
 0xcfd   :  { %4883 = vmatprep.subr.bf16.mxu0 %v11468_v59  ;;  %4924 = vmatprep.subr.bf16.mxu1 %v11473_v2 }
 0xd00   :  { %4884 = vmatpush1.bf16.msra.mxu0 %v11480_v19  ;;  %4925 = vmatpush1.bf16.msra.mxu1 %v11485_v30 }
 0xd01   :  { %4885 = vmatprep.subr.bf16.mxu0 %v11492_v33  ;;  %4926 = vmatprep.subr.bf16.mxu1 %v11497_v44 }
 0xd04   :  { %4886 = vmatpush1.bf16.msra.mxu0 %v11504_v34  ;;  %4927 = vmatpush1.bf16.msra.mxu1 %v11509_v5 }
 0xd05   :  { %4887 = vmatprep.subr.bf16.mxu0 %v11516_v46  ;;  %4928 = vmatprep.subr.bf16.mxu1 %v11521_v47 }
 0xd08   :  { %4888 = vmatpush1.bf16.msra.mxu0 %v11528_v48  ;;  %4929 = vmatpush1.bf16.msra.mxu1 %v11533_v49 }
 0xd09   :  { %5176 = vmatprep.subr.bf16.mxu0 %v11350_v32  ;;  %5217 = vmatprep.subr.bf16.mxu1 %v11355_v35 }
 0xdab   :  { %v4604_v39 = vpop.f32.mrf.mxu0  ;;  %v4645_v43 = vpop.f32.mrf.mxu1 }
 0xdac   :  { %v4656_v0 = vadd.f32 %v4604_v39, %v2744_v10 }
 0xdad   :  { %v4606_v45 = vpop.f32.mrf.mxu0  ;;  %v4647_v55 = vpop.f32.mrf.mxu1 }
 0xdae   :  { %v8952_v57 = vmul.f32 -1.442695, %v4656_v0  ;;  %v4657_v32 = vadd.f32 %v4606_v45, %v2746_v7  ;;  %v4659_v10 = vadd.f32 %v4647_v55, %v2819_v52  ;;  %v4658_v0 = vadd.f32 %v4645_v43, %v2817_v4  ;;  %v9612_v52 = vld [vmem:[%s12810_s5 + $0xe0] ss:$16 sps:$4 sm:$0xff]   ;;  %v9620_v4 = vld [vmem:[%s12810_s5 + $0xc4] ss:$16 sps:$4 sm:$0xff]  }
 0xdaf   :  { %v4608_v53 = vpop.f32.mrf.mxu0  ;;  %v4649_v40 = vpop.f32.mrf.mxu1 }
 0xdb0   :  { %9894 = vpow2.f32 %v8952_v57  ;;  %v8953_v31 = vmul.f32 -1.442695, %v4657_v32 }
 0xdb1   :  { %v4609_v18 = vpop.f32.mrf.mxu0  ;;  %v4650_v11 = vpop.f32.mrf.mxu1 }
 0xdb2   :  { %9896 = vpow2.f32 %v8953_v31 }
 0xdbd   :  { %v9895_v35 = vpop.eup %9894 }
 0xdbe   :  { %v4666_v9 = vadd.f32 1.0, %v9895_v35 }
 0xdbf   :  { %v9897_v50 = vpop.eup %9896 }
 0xdc0   :  { %9898 = vrcp.f32 %v4666_v9  ;;  %v4667_v54 = vadd.f32 1.0, %v9897_v50 }
 0xdc2   :  { %9900 = vrcp.f32 %v4667_v54  ;;  %v9615_v54 = vld [vmem:[%s12810_s5 + $0xe8] ss:$16 sps:$4 sm:$0xff]  }
 0xdcd   :  { %v9899_v39 = vpop.eup %9898 }
 0xdce   :  { %v4672_v57 = vmul.f32 %v9899_v39, %v4659_v10  ;;  %v9623_v10 = vld [vmem:[%s12810_s5 + $0xcc] ss:$16 sps:$4 sm:$0xff]   ;;  %v9618_v39 = vld [vmem:[%s12810_s5 + $0xc0] ss:$16 sps:$4 sm:$0xff]  }
 0xdcf   :  { %v9901_v45 = vpop.eup %9900 }
 0xdd0   :  { %v4673_v53 = vadd.f32 %v4672_v57, %v4658_v0  ;;  %v4675_v40 = vsub.f32 1.0, %v9901_v45  ;;  %v4677_v18 = vmul.f32 %v9901_v45, %v11597_v41  ;;  %v9621_v0 = vld [vmem:[%s12810_s5 + $0xc8] ss:$16 sps:$4 sm:$0xff]   ;;  %v9626_v57 = vld [vmem:[%s12810_s5 + $0xa4] ss:$16 sps:$4 sm:$0xff]  }
 0xdd1   :  { %v9624_v45 = vld [vmem:[%s12810_s5 + $0xa0] ss:$16 sps:$4 sm:$0xff]  }
 0xdd2   :  { %9902 = vtanh.f32 %v4673_v53  ;;  %v9629_v53 = vld [vmem:[%s12810_s5 + $0xac] ss:$16 sps:$4 sm:$0xff]  }
 0xddf   :  { %v9903_v58 = vpop.eup %9902 }
 0xde0   :  { %v4676_v7 = vmul.f32 %v9903_v58, %v4675_v40  ;;  %v9627_v40 = vld [vmem:[%s12810_s5 + $0xa8] ss:$16 sps:$4 sm:$0xff]   ;;  %v9632_v58 = vld [vmem:[%s12810_s5 + $0x84] ss:$16 sps:$4 sm:$0xff]  }
 0xde2   :  { %v11644_v11 = vadd.f32 %v4677_v18, %v4676_v7  ;;  %v9635_v7 = vld [vmem:[%s12810_s5 + $0x8c] ss:$16 sps:$4 sm:$0xff]   ;;  %v9630_v18 = vld [vmem:[%s12810_s5 + $0x80] ss:$16 sps:$4 sm:$0xff]  }
 0xde4   :  { %v4680_v32 = vpack.c.bf16 %v11644_v11, %v11644_v11 }
 0xde6   :  { %4906 = vmatmul.mubr.bf16.vlgmr.msra.gmra.mxu0 %v4680_v32  ;;  %4947 = vmatmul.mubr.bf16.vlgmr.msra.gmra.mxu1 %v4680_v32  ;;  %v9633_v32 = vld [vmem:[%s12810_s5 + $0x88] ss:$16 sps:$4 sm:$0xff]  }
 0xde7   :  { %5177 = vmatpush1.bf16.msra.mxu0 %v11360_v37  ;;  %5218 = vmatpush1.bf16.msra.mxu1 %v11365_v24  ;;  %v9614_v37 = vld [vmem:[%s12810_s5 + $0xe4] ss:$16 sps:$4 sm:$0xff]   ;;  %v9617_v24 = vld [vmem:[%s12810_s5 + $0xec] ss:$16 sps:$4 sm:$0xff]  }
 0xde8   :  { %5178 = vmatprep.subr.bf16.mxu0 %v11374_v60  ;;  %5219 = vmatprep.subr.bf16.mxu1 %v11379_v63  ;;  %v12859_v60 = vld [vmem:[#allocation17_spill] sm:$0xff] }
 0xde9   :  { %5208 = vmatprep.mubr.bf16.mxu0 %v12846_v13  ;;  %5249 = vmatprep.mubr.bf16.mxu1 %v12846_v13  ;;  %v2750_v63 = vadd.f32 %v12859_v60, %v11219_v20  ;;  %v9636_v60 = vld [vmem:[%s12810_s5 + $0x60] ss:$16 sps:$4 sm:$0xff]  }
 0xdeb   :  { %5179 = vmatpush1.bf16.msra.mxu0 %v11384_v22  ;;  %5220 = vmatpush1.bf16.msra.mxu1 %v11389_v36 }
 0xdec   :  { %5180 = vmatprep.subr.bf16.mxu0 %v11398_v25  ;;  %5221 = vmatprep.subr.bf16.mxu1 %v11403_v16 }
 0xdef   :  { %5181 = vmatpush1.bf16.msra.mxu0 %v11408_v12  ;;  %5222 = vmatpush1.bf16.msra.mxu1 %v11413_v8 }
 0xdf0   :  { %5182 = vmatprep.subr.bf16.mxu0 %v11422_v15  ;;  %5223 = vmatprep.subr.bf16.mxu1 %v11427_v6 }
 0xdf3   :  { %5183 = vmatpush1.bf16.msra.mxu0 %v11432_v23  ;;  %5224 = vmatpush1.bf16.msra.mxu1 %v11437_v29  ;;  %v12860_v23 = vld [vmem:[#allocation19_spill] sm:$0xff] }
 0xdf4   :  { %5184 = vmatprep.subr.bf16.mxu0 %v11444_v38  ;;  %5225 = vmatprep.subr.bf16.mxu1 %v11449_v3  ;;  %v2752_v29 = vadd.f32 %v12860_v23, %v11233_v1  ;;  %v9656_v23 = vld [vmem:[%s12810_s5 + $0x4] ss:$16 sps:$4 sm:$0xff]  }
 0xdf7   :  { %5185 = vmatpush1.bf16.msra.mxu0 %v11456_v61  ;;  %5226 = vmatpush1.bf16.msra.mxu1 %v11461_v62 }
 0xdf8   :  { %5186 = vmatprep.subr.bf16.mxu0 %v11468_v59  ;;  %5227 = vmatprep.subr.bf16.mxu1 %v11473_v2 }
 0xdfb   :  { %5187 = vmatpush1.bf16.msra.mxu0 %v11480_v19  ;;  %5228 = vmatpush1.bf16.msra.mxu1 %v11485_v30  ;;  %v12861_v30 = vld [vmem:[#allocation20_spill] sm:$0xff] }
 0xdfc   :  { %5188 = vmatprep.subr.bf16.mxu0 %v11492_v33  ;;  %5229 = vmatprep.subr.bf16.mxu1 %v11497_v44  ;;  %v2825_v33 = vadd.f32 %v12861_v30, %v11240_v26  ;;  %v11853_v30 = vld [vmem:[%s12811_s7 + $0xa4] ss:$16 sps:$4 sm:$0xff]  }
 0xdff   :  { %5189 = vmatpush1.bf16.msra.mxu0 %v11504_v34  ;;  %5230 = vmatpush1.bf16.msra.mxu1 %v11509_v5  ;;  %v12862_v34 = vld [vmem:[#allocation18_spill] sm:$0xff] }
 0xe00   :  { %5190 = vmatprep.subr.bf16.mxu0 %v11516_v46  ;;  %5231 = vmatprep.subr.bf16.mxu1 %v11521_v47  ;;  %v2823_v5 = vadd.f32 %v12862_v34, %v11244_v14  ;;  %v11869_v34 = vld [vmem:[%s12811_s7 + $0xa8] ss:$16 sps:$4 sm:$0xff]  }
 0xe03   :  { %5191 = vmatpush1.bf16.msra.mxu0 %v11528_v48  ;;  %5232 = vmatpush1.bf16.msra.mxu1 %v11533_v49 }
 0xe04   :  { %5512 = vmatprep.subr.bf16.mxu0 %v9614_v37  ;;  %5585 = vmatprep.subr.bf16.mxu1 %v9617_v24  ;;  %v9638_v37 = vld [vmem:[%s12810_s5 + $0x64] ss:$16 sps:$4 sm:$0xff]   ;;  %v9641_v24 = vld [vmem:[%s12810_s5 + $0x6c] ss:$16 sps:$4 sm:$0xff]  }
 0xea6   :  { %v4907_v22 = vpop.f32.mrf.mxu0  ;;  %v4948_v36 = vpop.f32.mrf.mxu1 }
 0xea7   :  { %v4959_v25 = vadd.f32 %v4907_v22, %v2750_v63  ;;  %v4961_v48 = vadd.f32 %v4948_v36, %v2823_v5  ;;  %v9639_v63 = vld [vmem:[%s12810_s5 + $0x68] ss:$16 sps:$4 sm:$0xff]   ;;  %v9644_v22 = vld [vmem:[%s12810_s5 + $0x44] ss:$16 sps:$4 sm:$0xff]   ;;  %v9647_v36 = vld [vmem:[%s12810_s5 + $0x4c] ss:$16 sps:$4 sm:$0xff]  }
 0xea8   :  { %v4909_v16 = vpop.f32.mrf.mxu0  ;;  %v4950_v12 = vpop.f32.mrf.mxu1  ;;  %v11877_v5 = vld [vmem:[%s12811_s7 + $0x84] ss:$16 sps:$4 sm:$0xff]  }
 0xea9   :  { %v8986_v8 = vmul.f32 -1.442695, %v4959_v25  ;;  %v4960_v61 = vadd.f32 %v4909_v16, %v2752_v29  ;;  %v4962_v46 = vadd.f32 %v4950_v12, %v2825_v33  ;;  %v9642_v25 = vld [vmem:[%s12810_s5 + $0x40] ss:$16 sps:$4 sm:$0xff]   ;;  %v9645_v16 = vld [vmem:[%s12810_s5 + $0x48] ss:$16 sps:$4 sm:$0xff]  }
 0xeaa   :  { %v4911_v15 = vpop.f32.mrf.mxu0  ;;  %v4952_v6 = vpop.f32.mrf.mxu1  ;;  %v9650_v12 = vld [vmem:[%s12810_s5 + $0x24] ss:$16 sps:$4 sm:$0xff]   ;;  %v9659_v29 = vld [vmem:[%s12810_s5 + $0xc] ss:$16 sps:$4 sm:$0xff]  }
 0xeab   :  { %9904 = vpow2.f32 %v8986_v8  ;;  %v8987_v62 = vmul.f32 -1.442695, %v4960_v61  ;;  %v9653_v8 = vld [vmem:[%s12810_s5 + $0x2c] ss:$16 sps:$4 sm:$0xff]   ;;  %v9648_v15 = vld [vmem:[%s12810_s5 + $0x20] ss:$16 sps:$4 sm:$0xff]   ;;  %v5294_v61 = vpack.c.bf16 %v11296_v21, %v11249_v27 }
 0xeac   :  { %v4912_v38 = vpop.f32.mrf.mxu0  ;;  %v4953_v3 = vpop.f32.mrf.mxu1  ;;  %v9651_v6 = vld [vmem:[%s12810_s5 + $0x28] ss:$16 sps:$4 sm:$0xff]   ;;  %v11806_v27 = vld [vmem:[%s12811_s7 + $0xe4] ss:$16 sps:$4 sm:$0xff]   ;;  %v11811_v21 = vld [vmem:[%s12811_s7 + $0xe0] ss:$16 sps:$4 sm:$0xff]  }
 0xead   :  { %9906 = vpow2.f32 %v8987_v62  ;;  %v9654_v38 = vld [vmem:[%s12810_s5] ss:$16 sps:$4 sm:$0xff]   ;;  %v9657_v3 = vld [vmem:[%s12810_s5 + $0x8] ss:$16 sps:$4 sm:$0xff]   ;;  %v5295_v62 = vpack.c.bf16 %v11550_v56, %v11341_v17  ;;  %v11822_v56 = vld [vmem:[%s12811_s7 + $0xec] ss:$16 sps:$4 sm:$0xff]  }
 0xeae   :  { %v11817_v17 = vld [vmem:[%s12811_s7 + $0xe8] ss:$16 sps:$4 sm:$0xff]   ;;  %v11858_v33 = vld [vmem:[%s12811_s7 + $0xac] ss:$16 sps:$4 sm:$0xff]  }
 0xeb8   :  { %v9905_v59 = vpop.eup %9904 }
 0xeb9   :  { %v4969_v2 = vadd.f32 1.0, %v9905_v59  ;;  %v5296_v59 = vpack.c.bf16 %v11644_v11, %v11597_v41  ;;  %v11829_v41 = vld [vmem:[%s12811_s7 + $0xc4] ss:$16 sps:$4 sm:$0xff]  }
 0xeba   :  { %v9907_v19 = vpop.eup %9906 }
 0xebb   :  { %9908 = vrcp.f32 %v4969_v2  ;;  %v4970_v44 = vadd.f32 1.0, %v9907_v19  ;;  %v11840_v2 = vld [vmem:[%s12811_s7 + $0xc0] ss:$16 sps:$4 sm:$0xff]   ;;  %v11845_v19 = vld [vmem:[%s12811_s7 + $0xc8] ss:$16 sps:$4 sm:$0xff]  }
 0xebd   :  { %9910 = vrcp.f32 %v4970_v44  ;;  %v11864_v44 = vld [vmem:[%s12811_s7 + $0xa0] ss:$16 sps:$4 sm:$0xff]  }
 0xec8   :  { %v9909_v47 = vpop.eup %9908 }
 0xec9   :  { %v4975_v49 = vmul.f32 %v9909_v47, %v4962_v46  ;;  %v11882_v46 = vld [vmem:[%s12811_s7 + $0x8c] ss:$16 sps:$4 sm:$0xff]   ;;  %v11888_v47 = vld [vmem:[%s12811_s7 + $0x80] ss:$16 sps:$4 sm:$0xff]  }
 0xeca   :  { %v9911_v55 = vpop.eup %9910 }
 0xecb   :  { %v4976_v43 = vadd.f32 %v4975_v49, %v4961_v48  ;;  %v4978_v31 = vsub.f32 1.0, %v9911_v55  ;;  %v4980_v50 = vmul.f32 %v9911_v55, %v11644_v11  ;;  %v11834_v11 = vld [vmem:[%s12811_s7 + $0xcc] ss:$16 sps:$4 sm:$0xff]   ;;  %v11893_v48 = vld [vmem:[%s12811_s7 + $0x88] ss:$16 sps:$4 sm:$0xff]  }
 0xecc   :  { %v11901_v49 = vld [vmem:[%s12811_s7 + $0x64] ss:$16 sps:$4 sm:$0xff]   ;;  %v11912_v55 = vld [vmem:[%s12811_s7 + $0x60] ss:$16 sps:$4 sm:$0xff]  }
 0xecd   :  { %9912 = vtanh.f32 %v4976_v43  ;;  %v11906_v43 = vld [vmem:[%s12811_s7 + $0x6c] ss:$16 sps:$4 sm:$0xff]  }
 0xeda   :  { %v9913_v35 = vpop.eup %9912 }
 0xedb   :  { %v4979_v9 = vmul.f32 %v9913_v35, %v4978_v31  ;;  %v11917_v31 = vld [vmem:[%s12811_s7 + $0x68] ss:$16 sps:$4 sm:$0xff]   ;;  %v11925_v35 = vld [vmem:[%s12811_s7 + $0x44] ss:$16 sps:$4 sm:$0xff]  }
 0xedd   :  { %v11695_v51 = vadd.f32 %v4980_v50, %v4979_v9  ;;  %v11930_v9 = vld [vmem:[%s12811_s7 + $0x4c] ss:$16 sps:$4 sm:$0xff]   ;;  %v11936_v50 = vld [vmem:[%s12811_s7 + $0x40] ss:$16 sps:$4 sm:$0xff]  }
 0xedf   :  { %v4983_v42 = vpack.c.bf16 %v11695_v51, %v11695_v51 }
 0xee1   :  { %5209 = vmatmul.mubr.bf16.vlgmr.msra.gmra.mxu0 %v4983_v42  ;;  %5250 = vmatmul.mubr.bf16.vlgmr.msra.gmra.mxu1 %v4983_v42  ;;  %v11953_v42 = vld [vmem:[%s12811_s7 + $0x24] ss:$16 sps:$4 sm:$0xff]  }
 0xee2   :  { %5513 = vmatpush1.bf16.msra.mxu0 %v9612_v52  ;;  %5586 = vmatpush1.bf16.msra.mxu1 %v9615_v54  ;;  %v11941_v52 = vld [vmem:[%s12811_s7 + $0x48] ss:$16 sps:$4 sm:$0xff]   ;;  %v11946_v54 = vld [vmem:[%s12811_s7 + $0x20] ss:$16 sps:$4 sm:$0xff]  }
 0xee3   :  { %5514 = vmatprep.subr.bf16.mxu0 %v9620_v4  ;;  %5587 = vmatprep.subr.bf16.mxu1 %v9623_v10  ;;  %v11960_v4 = vld [vmem:[%s12811_s7 + $0x2c] ss:$16 sps:$4 sm:$0xff]   ;;  %v11966_v10 = vld [vmem:[%s12811_s7 + $0x28] ss:$16 sps:$4 sm:$0xff]  }
 0xee4   :  { %5544 = vmatprep.mubr.bf16.mxu0 %v12846_v13  ;;  %5617 = vmatprep.mubr.bf16.mxu1 %v12846_v13 }
 0xee6   :  { %5515 = vmatpush1.bf16.msra.mxu0 %v9618_v39  ;;  %5588 = vmatpush1.bf16.msra.mxu1 %v9621_v0  ;;  %v11971_v39 = vld [vmem:[%s12811_s7 + $0x4] ss:$16 sps:$4 sm:$0xff]   ;;  %v11977_v0 = vld [vmem:[%s12811_s7] ss:$16 sps:$4 sm:$0xff]  }
 0xee7   :  { %5516 = vmatprep.subr.bf16.mxu0 %v9626_v57  ;;  %5589 = vmatprep.subr.bf16.mxu1 %v9629_v53  ;;  %v11982_v57 = vld [vmem:[%s12811_s7 + $0xc] ss:$16 sps:$4 sm:$0xff]   ;;  %v11988_v53 = vld [vmem:[%s12811_s7 + $0x8] ss:$16 sps:$4 sm:$0xff]  }
 0xeea   :  { %5517 = vmatpush1.bf16.msra.mxu0 %v9624_v45  ;;  %5590 = vmatpush1.bf16.msra.mxu1 %v9627_v40  ;;  %v12863_v45 = vld [vmem:[#allocation21_spill] sm:$0xff] }
 0xeeb   :  { %5518 = vmatprep.subr.bf16.mxu0 %v9632_v58  ;;  %5591 = vmatprep.subr.bf16.mxu1 %v9635_v7  ;;  %v2754_v40 = vadd.f32 %v12863_v45, %v11219_v20 }
 0xeee   :  { %5519 = vmatpush1.bf16.msra.mxu0 %v9630_v18  ;;  %5592 = vmatpush1.bf16.msra.mxu1 %v9633_v32 }
 0xeef   :  { %5520 = vmatprep.subr.bf16.mxu0 %v9638_v37  ;;  %5593 = vmatprep.subr.bf16.mxu1 %v9641_v24 }
 0xef2   :  { %5521 = vmatpush1.bf16.msra.mxu0 %v9636_v60  ;;  %5594 = vmatpush1.bf16.msra.mxu1 %v9639_v63 }
 0xef3   :  { %5522 = vmatprep.subr.bf16.mxu0 %v9644_v22  ;;  %5595 = vmatprep.subr.bf16.mxu1 %v9647_v36  ;;  %v12864_v22 = vld [vmem:[#allocation23_spill] sm:$0xff] }
 0xef4   :  { %v2756_v36 = vadd.f32 %v12864_v22, %v11233_v1 }
 0xef6   :  { %5523 = vmatpush1.bf16.msra.mxu0 %v9642_v25  ;;  %5596 = vmatpush1.bf16.msra.mxu1 %v9645_v16 }
 0xef7   :  { %5524 = vmatprep.subr.bf16.mxu0 %v9650_v12  ;;  %5597 = vmatprep.subr.bf16.mxu1 %v9653_v8 }
 0xefa   :  { %5525 = vmatpush1.bf16.msra.mxu0 %v9648_v15  ;;  %5598 = vmatpush1.bf16.msra.mxu1 %v9651_v6 }
 0xefb   :  { %5526 = vmatprep.subr.bf16.mxu0 %v9656_v23  ;;  %5599 = vmatprep.subr.bf16.mxu1 %v9659_v29  ;;  %v12865_v23 = vld [vmem:[#allocation24_spill] sm:$0xff] }
 0xefc   :  { %v2829_v29 = vadd.f32 %v12865_v23, %v11240_v26 }
 0xefe   :  { %5527 = vmatpush1.bf16.msra.mxu0 %v9654_v38  ;;  %5600 = vmatpush1.bf16.msra.mxu1 %v9657_v3  ;;  %v12866_v3 = vld [vmem:[#allocation22_spill] sm:$0xff] }
 0xeff   :  { %5882 = vmatprep.subr.bf16.mxu0 %v11806_v27  ;;  %5923 = vmatprep.subr.bf16.mxu1 %v11822_v56 }
 0xf01   :  { %5545 = vmatmul.mubr.bf16.vlgmr.msra.gmra.mxu0 %v5294_v61  ;;  %5618 = vmatmul.mubr.bf16.vlgmr.msra.gmra.mxu1 %v5294_v61  ;;  %v2827_v61 = vadd.f32 %v12866_v3, %v11244_v14 }
 0xf02   :  { %5554 = vmatprep.mubr.bf16.mxu0 %v12846_v13  ;;  %5627 = vmatprep.mubr.bf16.mxu1 %v12846_v13 }
 0xf03   :  { %5883 = vmatpush1.bf16.msra.mxu0 %v11811_v21  ;;  %5924 = vmatpush1.bf16.msra.mxu1 %v11817_v17 }
 0xf04   :  { %5884 = vmatprep.subr.bf16.mxu0 %v11829_v41  ;;  %5925 = vmatprep.subr.bf16.mxu1 %v11834_v11 }
 0xf07   :  { %5885 = vmatpush1.bf16.msra.mxu0 %v11840_v2  ;;  %5926 = vmatpush1.bf16.msra.mxu1 %v11845_v19 }
 0xf08   :  { %5886 = vmatprep.subr.bf16.mxu0 %v11853_v30  ;;  %5927 = vmatprep.subr.bf16.mxu1 %v11858_v33 }
 0xf09   :  { %5555 = vmatmul.mubr.bf16.gmra.mxu0 %v5295_v62  ;;  %5628 = vmatmul.mubr.bf16.gmra.mxu1 %v5295_v62 }
 0xf0a   :  { %5564 = vmatprep.mubr.bf16.mxu0 %v12846_v13  ;;  %5637 = vmatprep.mubr.bf16.mxu1 %v12846_v13 }
 0xf0b   :  { %5887 = vmatpush1.bf16.msra.mxu0 %v11864_v44  ;;  %5928 = vmatpush1.bf16.msra.mxu1 %v11869_v34 }
 0xf0c   :  { %5888 = vmatprep.subr.bf16.mxu0 %v11877_v5  ;;  %5929 = vmatprep.subr.bf16.mxu1 %v11882_v46 }
 0xf0f   :  { %5889 = vmatpush1.bf16.msra.mxu0 %v11888_v47  ;;  %5930 = vmatpush1.bf16.msra.mxu1 %v11893_v48 }
 0xf10   :  { %5890 = vmatprep.subr.bf16.mxu0 %v11901_v49  ;;  %5931 = vmatprep.subr.bf16.mxu1 %v11906_v43 }
 0xf11   :  { %5565 = vmatmul.mubr.bf16.gmra.mxu0 %v5296_v59  ;;  %5638 = vmatmul.mubr.bf16.gmra.mxu1 %v5296_v59 }
 0xf12   :  { %5574 = vmatprep.mubr.bf16.mxu0 %v12846_v13  ;;  %5647 = vmatprep.mubr.bf16.mxu1 %v12846_v13 }
 0xf13   :  { %5891 = vmatpush1.bf16.msra.mxu0 %v11912_v55  ;;  %5932 = vmatpush1.bf16.msra.mxu1 %v11917_v31 }
 0xf14   :  { %5892 = vmatprep.subr.bf16.mxu0 %v11925_v35  ;;  %5933 = vmatprep.subr.bf16.mxu1 %v11930_v9 }
 0xf17   :  { %5893 = vmatpush1.bf16.msra.mxu0 %v11936_v50  ;;  %5934 = vmatpush1.bf16.msra.mxu1 %v11941_v52 }
 0xf18   :  { %5894 = vmatprep.subr.bf16.mxu0 %v11953_v42  ;;  %5935 = vmatprep.subr.bf16.mxu1 %v11960_v4 }
 0xf1b   :  { %5895 = vmatpush1.bf16.msra.mxu0 %v11946_v54  ;;  %5936 = vmatpush1.bf16.msra.mxu1 %v11966_v10 }
 0xf1c   :  { %5896 = vmatprep.subr.bf16.mxu0 %v11971_v39  ;;  %5937 = vmatprep.subr.bf16.mxu1 %v11982_v57 }
 0xf1f   :  { %5897 = vmatpush1.bf16.msra.mxu0 %v11977_v0  ;;  %5938 = vmatpush1.bf16.msra.mxu1 %v11988_v53 }
 0xf20   :  { %6185 = vmatprep.subr.bf16.mxu0 %v11806_v27  ;;  %6226 = vmatprep.subr.bf16.mxu1 %v11822_v56 }
 0xfa1   :  { %v5210_v58 = vpop.f32.mrf.mxu0  ;;  %v5251_v7 = vpop.f32.mrf.mxu1 }
 0xfa2   :  { %v5262_v18 = vadd.f32 %v5210_v58, %v2754_v40  ;;  %v5264_v1 = vadd.f32 %v5251_v7, %v2827_v61 }
 0xfa3   :  { %v5212_v32 = vpop.f32.mrf.mxu0  ;;  %v5253_v37 = vpop.f32.mrf.mxu1 }
 0xfa4   :  { %v9020_v24 = vmul.f32 -1.442695, %v5262_v18  ;;  %v5263_v12 = vadd.f32 %v5212_v32, %v2756_v36  ;;  %v5265_v62 = vadd.f32 %v5253_v37, %v2829_v29 }
 0xfa5   :  { %v5214_v60 = vpop.f32.mrf.mxu0  ;;  %v5255_v63 = vpop.f32.mrf.mxu1 }
 0xfa6   :  { %9914 = vpow2.f32 %v9020_v24  ;;  %v9021_v8 = vmul.f32 -1.442695, %v5263_v12 }
 0xfa7   :  { %v5215_v25 = vpop.f32.mrf.mxu0  ;;  %v5256_v16 = vpop.f32.mrf.mxu1 }
 0xfa8   :  { %9916 = vpow2.f32 %v9021_v8 }
 0xfb3   :  { %v9915_v15 = vpop.eup %9914 }
 0xfb4   :  { %v5272_v6 = vadd.f32 1.0, %v9915_v15 }
 0xfb5   :  { %v9917_v20 = vpop.eup %9916 }
 0xfb6   :  { %9918 = vrcp.f32 %v5272_v6  ;;  %v5273_v38 = vadd.f32 1.0, %v9917_v20 }
 0xfb8   :  { %9920 = vrcp.f32 %v5273_v38 }
 0xfc1   :  { %v5546_v14 = vpop.f32.mrf.mxu0 }
 0xfc3   :  { %v9919_v59 = vpop.eup %9918  ;;  %v5548_v7 = vpop.f32.mrf.mxu0 }
 0xfc4   :  { %v5278_v45 = vmul.f32 %v9919_v59, %v5265_v62 }
 0xfc5   :  { %v9921_v58 = vpop.eup %9920  ;;  %v12045_v22 = vpop.f32.mrf.mxu0 }
 0xfc6   :  { %v5279_v40 = vadd.f32 %v5278_v45, %v5264_v1  ;;  %v5281_v18 = vsub.f32 1.0, %v9921_v58  ;;  %v5283_v60 = vmul.f32 %v9921_v58, %v11695_v51 }
 0xfc7   :  { %v12049_v25 = vpop.f32.mrf.mxu0 }
 0xfc8   :  { %9922 = vtanh.f32 %v5279_v40 }
 0xfc9   :  { %v12053_v12 = vpop.f32.mrf.mxu0 }
 0xfcb   :  { %v12057_v15 = vpop.f32.mrf.mxu0 }
 0xfcd   :  { %v12061_v20 = vpop.f32.mrf.mxu0 }
 0xfce   :  { %12869 = vst [vmem:[#allocation7_spill] sm:$0xff] %v12061_v20 }
 0xfcf   :  { %v12065_v29 = vpop.f32.mrf.mxu0 }
 0xfd0   :  { %12871 = vst [vmem:[#allocation8_spill] sm:$0xff] %v12065_v29 }
 0xfd1   :  { %v12069_v3 = vpop.f32.mrf.mxu0 }
 0xfd2   :  { %12873 = vst [vmem:[#allocation11_spill] sm:$0xff] %v12069_v3 }
 0xfd3   :  { %v12073_v62 = vpop.f32.mrf.mxu0 }
 0xfd4   :  { %12875 = vst [vmem:[#allocation12_spill] sm:$0xff] %v12073_v62 }
 0xfd5   :  { %v9923_v32 = vpop.eup %9922  ;;  %v12077_v1 = vpop.f32.mrf.mxu0 }
 0xfd6   :  { %v5282_v24 = vmul.f32 %v9923_v32, %v5281_v18  ;;  %12877 = vst [vmem:[#allocation16_spill] sm:$0xff] %v12077_v1  ;;  %v5330_v18 = vld [vmem:[%s12812_s6] sm:$0xf] }
 0xfd7   :  { %v12081_v40 = vpop.f32.mrf.mxu0 }
 0xfd8   :  { %v5284_v63 = vadd.f32 %v5283_v60, %v5282_v24  ;;  %12879 = vst [vmem:[#allocation17_spill] sm:$0xff] %v12081_v40 }
 0xfda   :  { %v5297_v26 = vpack.c.bf16 %v5284_v63, %v11695_v51  ;;  %v5619_v51 = vpop.f32.mrf.mxu1 }
 0xfdc   :  { %5575 = vmatmul.mubr.bf16.gmra.mxu0 %v5297_v26  ;;  %5648 = vmatmul.mubr.bf16.gmra.mxu1 %v5297_v26  ;;  %v5621_v37 = vpop.f32.mrf.mxu1  ;;  %v12885_v26 = vld [vmem:[#allocation14_spill] sm:$0xff] }
 0xfdd   :  { %5914 = vmatprep.mubr.bf16.mxu0 %v12846_v13  ;;  %5955 = vmatprep.mubr.bf16.mxu1 %v12846_v13  ;;  %v12886_v28 = vsub.s32 0, %v12885_v26 }
 0xfde   :  { %v12047_v36 = vpop.f32.mrf.mxu1 }
 0xfdf   :  { %v12098_v1 = vrot.slane %v5330_v18, %v12886_v28 }
 0xfe0   :  { %v12051_v16 = vpop.f32.mrf.mxu1 }
 0xfe2   :  { %v12055_v8 = vpop.f32.mrf.mxu1 }
 0xfe3   :  { %12867 = vst [vmem:[#allocation4_spill] sm:$0xff] %v12055_v8 }
 0xfe4   :  { %5915 = vmatmul.mubr.bf16.vlgmr.msra.gmra.mxu0 %v12846_v13  ;;  %5956 = vmatmul.mubr.bf16.vlgmr.msra.gmra.mxu1 %v12846_v13  ;;  %v12059_v6 = vpop.f32.mrf.mxu1 }
 0xfe5   :  { %6186 = vmatpush1.bf16.msra.mxu0 %v11811_v21  ;;  %6227 = vmatpush1.bf16.msra.mxu1 %v11817_v17  ;;  %12868 = vst [vmem:[#allocation6_spill] sm:$0xff] %v12059_v6 }
 0xfe6   :  { %6187 = vmatprep.subr.bf16.mxu0 %v11829_v41  ;;  %6228 = vmatprep.subr.bf16.mxu1 %v11834_v11  ;;  %v12063_v23 = vpop.f32.mrf.mxu1 }
 0xfe7   :  { %6217 = vmatprep.mubr.bf16.mxu0 %v12846_v13  ;;  %6258 = vmatprep.mubr.bf16.mxu1 %v12846_v13  ;;  %12870 = vst [vmem:[#allocation5_spill] sm:$0xff] %v12063_v23 }
 0xfe8   :  { %v12067_v38 = vpop.f32.mrf.mxu1 }
 0xfe9   :  { %6188 = vmatpush1.bf16.msra.mxu0 %v11840_v2  ;;  %6229 = vmatpush1.bf16.msra.mxu1 %v11845_v19  ;;  %12872 = vst [vmem:[#allocation10_spill] sm:$0xff] %v12067_v38 }
 0xfea   :  { %6189 = vmatprep.subr.bf16.mxu0 %v11853_v30  ;;  %6230 = vmatprep.subr.bf16.mxu1 %v11858_v33  ;;  %v12071_v61 = vpop.f32.mrf.mxu1 }
 0xfeb   :  { %12874 = vst [vmem:[#allocation9_spill] sm:$0xff] %v12071_v61 }
 0xfec   :  { %v12075_v59 = vpop.f32.mrf.mxu1 }
 0xfed   :  { %6190 = vmatpush1.bf16.msra.mxu0 %v11864_v44  ;;  %6231 = vmatpush1.bf16.msra.mxu1 %v11869_v34  ;;  %12876 = vst [vmem:[#allocation15_spill] sm:$0xff] %v12075_v59 }
 0xfee   :  { %6191 = vmatprep.subr.bf16.mxu0 %v11877_v5  ;;  %6232 = vmatprep.subr.bf16.mxu1 %v11882_v46  ;;  %v12079_v45 = vpop.f32.mrf.mxu1 }
 0xfef   :  { %12878 = vst [vmem:[#allocation13_spill] sm:$0xff] %v12079_v45 }
 0xff0   :  { %v12083_v58 = vpop.f32.mrf.mxu1 }
 0xff1   :  { %6192 = vmatpush1.bf16.msra.mxu0 %v11888_v47  ;;  %6233 = vmatpush1.bf16.msra.mxu1 %v11893_v48  ;;  %12880 = vst [vmem:[#allocation19_spill] sm:$0xff] %v12083_v58 }
 0xff2   :  { %6193 = vmatprep.subr.bf16.mxu0 %v11901_v49  ;;  %6234 = vmatprep.subr.bf16.mxu1 %v11906_v43 }
 0xff5   :  { %6194 = vmatpush1.bf16.msra.mxu0 %v11912_v55  ;;  %6235 = vmatpush1.bf16.msra.mxu1 %v11917_v31 }
 0xff6   :  { %6195 = vmatprep.subr.bf16.mxu0 %v11925_v35  ;;  %6236 = vmatprep.subr.bf16.mxu1 %v11930_v9 }
 0xff9   :  { %6196 = vmatpush1.bf16.msra.mxu0 %v11936_v50  ;;  %6237 = vmatpush1.bf16.msra.mxu1 %v11941_v52 }
 0xffa   :  { %6197 = vmatprep.subr.bf16.mxu0 %v11953_v42  ;;  %6238 = vmatprep.subr.bf16.mxu1 %v11960_v4 }
 0xffd   :  { %6198 = vmatpush1.bf16.msra.mxu0 %v11946_v54  ;;  %6239 = vmatpush1.bf16.msra.mxu1 %v11966_v10 }
 0xffe   :  { %6199 = vmatprep.subr.bf16.mxu0 %v11971_v39  ;;  %6240 = vmatprep.subr.bf16.mxu1 %v11982_v57 }
0x1001   :  { %6200 = vmatpush1.bf16.msra.mxu0 %v11977_v0  ;;  %6241 = vmatpush1.bf16.msra.mxu1 %v11988_v53 }
0x1002   :  { %6488 = vmatprep.subr.bf16.mxu0 %v11806_v27  ;;  %6529 = vmatprep.subr.bf16.mxu1 %v11822_v56 }
0x109c   :  { %v12088_v32 = vpop.f32.mrf.mxu0  ;;  %v12090_v24 = vpop.f32.mrf.mxu1 }
0x109d   :  { %12881 = vst [vmem:[#allocation20_spill] sm:$0xff] %v12088_v32  ;;  %12882 = vst [vmem:[#allocation18_spill] sm:$0xff] %v12090_v24  ;;  %v5547_v32 = vadd.f32 %v5546_v14, %v12098_v1 }
0x109e   :  { %v12092_v60 = vpop.f32.mrf.mxu0  ;;  %v12094_v63 = vpop.f32.mrf.mxu1 }
0x109f   :  { %12883 = vst [vmem:[#allocation21_spill] sm:$0xff] %v12092_v60  ;;  %12884 = vst [vmem:[#allocation23_spill] sm:$0xff] %v12094_v63  ;;  %v12891_v60 = vsub.s32 1, %v12885_v26 }
0x10a0   :  { %v12100_v45 = vpop.f32.mrf.mxu0  ;;  %v12102_v40 = vpop.f32.mrf.mxu1 }
0x10a1   :  { %12887 = vst [vmem:[#allocation24_spill] sm:$0xff] %v12100_v45  ;;  %12888 = vst [vmem:[#allocation22_spill] sm:$0xff] %v12102_v40  ;;  %v12111_v62 = vrot.slane %v5330_v18, %v12891_v60  ;;  %v12892_v60 = vsub.s32 3, %v12885_v26 }
0x10a2   :  { %v12104_v58 = vpop.f32.mrf.mxu0  ;;  %v12106_v61 = vpop.f32.mrf.mxu1 }
0x10a3   :  { %12889 = vst [vmem:[#allocation14_spill] sm:$0xff] %v12104_v58  ;;  %12890 = vst [vmem:[#allocation25_spill] sm:$0xff] %v12106_v61  ;;  %v5549_v40 = vadd.f32 %v5548_v7, %v12111_v62  ;;  %v12116_v6 = vrot.slane %v5330_v18, %v12892_v60 }
0x10a4   :  { %v5916_v59 = vpop.f32.mrf.mxu0  ;;  %v5957_v24 = vpop.f32.mrf.mxu1 }
0x10a5   :  { %v5968_v63 = vadd.f32 %v5916_v59, %v5547_v32  ;;  %v12893_v32 = vsub.s32 2, %v12885_v26  ;;  %v5622_v7 = vadd.f32 %v5621_v37, %v12116_v6 }
0x10a6   :  { %v5918_v3 = vpop.f32.mrf.mxu0  ;;  %v5959_v28 = vpop.f32.mrf.mxu1 }
0x10a7   :  { %v9086_v23 = vmul.f32 -1.442695, %v5968_v63  ;;  %v5969_v61 = vadd.f32 %v5918_v3, %v5549_v40  ;;  %v5971_v3 = vadd.f32 %v5959_v28, %v5622_v7 }
0x10a8   :  { %v5920_v38 = vpop.f32.mrf.mxu0  ;;  %v5961_v45 = vpop.f32.mrf.mxu1 }
0x10a9   :  { %9924 = vpow2.f32 %v9086_v23  ;;  %v9087_v20 = vmul.f32 -1.442695, %v5969_v61  ;;  %v12120_v38 = vrot.slane %v5330_v18, %v12893_v32 }
0x10aa   :  { %v5921_v58 = vpop.f32.mrf.mxu0  ;;  %v5962_v29 = vpop.f32.mrf.mxu1 }
0x10ab   :  { %9926 = vpow2.f32 %v9087_v20  ;;  %v5620_v29 = vadd.f32 %v5619_v51, %v12120_v38  ;;  %v5551_v51 = vadd.f32 %v12045_v22, %v12098_v1 }
0x10ad   :  { %v5970_v20 = vadd.f32 %v5957_v24, %v5620_v29 }
0x10b6   :  { %v9925_v14 = vpop.eup %9924 }
0x10b7   :  { %v5978_v8 = vadd.f32 1.0, %v9925_v14 }
0x10b8   :  { %v9927_v59 = vpop.eup %9926 }
0x10b9   :  { %9928 = vrcp.f32 %v5978_v8  ;;  %v5979_v23 = vadd.f32 1.0, %v9927_v59 }
0x10bb   :  { %9930 = vrcp.f32 %v5979_v23 }
0x10c6   :  { %v9929_v61 = vpop.eup %9928 }
0x10c7   :  { %v5984_v45 = vmul.f32 %v9929_v61, %v5971_v3  ;;  %v5553_v3 = vadd.f32 %v12049_v25, %v12111_v62 }
0x10c8   :  { %v9931_v40 = vpop.eup %9930 }
0x10c9   :  { %v5985_v8 = vadd.f32 %v5984_v45, %v5970_v20  ;;  %v5987_v58 = vsub.f32 1.0, %v9931_v40  ;;  %v5989_v60 = vmul.f32 0.0, %v9931_v40  ;;  %v5626_v40 = vadd.f32 %v12051_v16, %v12116_v6 }
0x10cb   :  { %9932 = vtanh.f32 %v5985_v8 }
0x10d8   :  { %v9933_v63 = vpop.eup %9932 }
0x10d9   :  { %v5988_v14 = vmul.f32 %v9933_v63, %v5987_v58  ;;  %v5624_v63 = vadd.f32 %v12047_v36, %v12120_v38 }
0x10db   :  { %v12124_v26 = vadd.f32 %v5989_v60, %v5988_v14 }
0x10dd   :  { %v5992_v37 = vpack.c.bf16 %v12124_v26, %v12124_v26 }
0x10df   :  { %6218 = vmatmul.mubr.bf16.vlgmr.msra.gmra.mxu0 %v5992_v37  ;;  %6259 = vmatmul.mubr.bf16.vlgmr.msra.gmra.mxu1 %v5992_v37 }
0x10e0   :  { %6489 = vmatpush1.bf16.msra.mxu0 %v11811_v21  ;;  %6530 = vmatpush1.bf16.msra.mxu1 %v11817_v17 }
0x10e1   :  { %6490 = vmatprep.subr.bf16.mxu0 %v11829_v41  ;;  %6531 = vmatprep.subr.bf16.mxu1 %v11834_v11 }
0x10e2   :  { %6520 = vmatprep.mubr.bf16.mxu0 %v12846_v13  ;;  %6561 = vmatprep.mubr.bf16.mxu1 %v12846_v13 }
0x10e4   :  { %6491 = vmatpush1.bf16.msra.mxu0 %v11840_v2  ;;  %6532 = vmatpush1.bf16.msra.mxu1 %v11845_v19 }
0x10e5   :  { %6492 = vmatprep.subr.bf16.mxu0 %v11853_v30  ;;  %6533 = vmatprep.subr.bf16.mxu1 %v11858_v33 }
0x10e8   :  { %6493 = vmatpush1.bf16.msra.mxu0 %v11864_v44  ;;  %6534 = vmatpush1.bf16.msra.mxu1 %v11869_v34 }
0x10e9   :  { %6494 = vmatprep.subr.bf16.mxu0 %v11877_v5  ;;  %6535 = vmatprep.subr.bf16.mxu1 %v11882_v46 }
0x10ec   :  { %6495 = vmatpush1.bf16.msra.mxu0 %v11888_v47  ;;  %6536 = vmatpush1.bf16.msra.mxu1 %v11893_v48 }
0x10ed   :  { %6496 = vmatprep.subr.bf16.mxu0 %v11901_v49  ;;  %6537 = vmatprep.subr.bf16.mxu1 %v11906_v43 }
0x10f0   :  { %6497 = vmatpush1.bf16.msra.mxu0 %v11912_v55  ;;  %6538 = vmatpush1.bf16.msra.mxu1 %v11917_v31 }
0x10f1   :  { %6498 = vmatprep.subr.bf16.mxu0 %v11925_v35  ;;  %6539 = vmatprep.subr.bf16.mxu1 %v11930_v9 }
0x10f4   :  { %6499 = vmatpush1.bf16.msra.mxu0 %v11936_v50  ;;  %6540 = vmatpush1.bf16.msra.mxu1 %v11941_v52 }
0x10f5   :  { %6500 = vmatprep.subr.bf16.mxu0 %v11953_v42  ;;  %6541 = vmatprep.subr.bf16.mxu1 %v11960_v4 }
0x10f8   :  { %6501 = vmatpush1.bf16.msra.mxu0 %v11946_v54  ;;  %6542 = vmatpush1.bf16.msra.mxu1 %v11966_v10 }
0x10f9   :  { %6502 = vmatprep.subr.bf16.mxu0 %v11971_v39  ;;  %6543 = vmatprep.subr.bf16.mxu1 %v11982_v57 }
0x10fc   :  { %6503 = vmatpush1.bf16.msra.mxu0 %v11977_v0  ;;  %6544 = vmatpush1.bf16.msra.mxu1 %v11988_v53 }
0x10fd   :  { %6791 = vmatprep.subr.bf16.mxu0 %v11806_v27  ;;  %6832 = vmatprep.subr.bf16.mxu1 %v11822_v56 }
0x119f   :  { %v6219_v18 = vpop.f32.mrf.mxu0  ;;  %v6260_v24 = vpop.f32.mrf.mxu1 }
0x11a0   :  { %v6271_v28 = vadd.f32 %v6219_v18, %v5551_v51  ;;  %v6273_v25 = vadd.f32 %v6260_v24, %v5624_v63  ;;  %v12288_v63 = vld [vmem:[%s12811_s7 + $0xa8] ss:$16 sps:$4 sm:$0xff]  }
0x11a1   :  { %v6221_v59 = vpop.f32.mrf.mxu0  ;;  %v6262_v32 = vpop.f32.mrf.mxu1 }
0x11a2   :  { %v9120_v7 = vmul.f32 -1.442695, %v6271_v28  ;;  %v6272_v27 = vadd.f32 %v6221_v59, %v5553_v3  ;;  %v6274_v14 = vadd.f32 %v6262_v32, %v5626_v40  ;;  %v12225_v32 = vld [vmem:[%s12811_s7 + $0xe4] ss:$16 sps:$4 sm:$0xff]   ;;  %v12230_v3 = vld [vmem:[%s12811_s7 + $0xec] ss:$16 sps:$4 sm:$0xff]  }
0x11a3   :  { %v6223_v23 = vpop.f32.mrf.mxu0  ;;  %v6264_v29 = vpop.f32.mrf.mxu1  ;;  %v12278_v40 = vld [vmem:[%s12811_s7 + $0xac] ss:$16 sps:$4 sm:$0xff]  }
0x11a4   :  { %9934 = vpow2.f32 %v9120_v7  ;;  %v9121_v45 = vmul.f32 -1.442695, %v6272_v27  ;;  %v12249_v27 = vld [vmem:[%s12811_s7 + $0xc4] ss:$16 sps:$4 sm:$0xff]  }
0x11a5   :  { %v6224_v61 = vpop.f32.mrf.mxu0  ;;  %v6265_v20 = vpop.f32.mrf.mxu1 }
0x11a6   :  { %9936 = vpow2.f32 %v9121_v45  ;;  %v12235_v61 = vld [vmem:[%s12811_s7 + $0xe0] ss:$16 sps:$4 sm:$0xff]   ;;  %v12240_v20 = vld [vmem:[%s12811_s7 + $0xe8] ss:$16 sps:$4 sm:$0xff]   ;;  %v12254_v45 = vld [vmem:[%s12811_s7 + $0xcc] ss:$16 sps:$4 sm:$0xff]  }
0x11b1   :  { %v9935_v56 = vpop.eup %9934 }
0x11b2   :  { %v6281_v8 = vadd.f32 1.0, %v9935_v56  ;;  %v12259_v56 = vld [vmem:[%s12811_s7 + $0xc0] ss:$16 sps:$4 sm:$0xff]  }
0x11b3   :  { %v9937_v22 = vpop.eup %9936 }
0x11b4   :  { %9938 = vrcp.f32 %v6281_v8  ;;  %v6282_v58 = vadd.f32 1.0, %v9937_v22  ;;  %v12264_v8 = vld [vmem:[%s12811_s7 + $0xc8] ss:$16 sps:$4 sm:$0xff]   ;;  %v12273_v22 = vld [vmem:[%s12811_s7 + $0xa4] ss:$16 sps:$4 sm:$0xff]  }
0x11b6   :  { %9940 = vrcp.f32 %v6282_v58  ;;  %v12283_v58 = vld [vmem:[%s12811_s7 + $0xa0] ss:$16 sps:$4 sm:$0xff]  }
0x11c1   :  { %v9939_v60 = vpop.eup %9938 }
0x11c2   :  { %v6287_v37 = vmul.f32 %v9939_v60, %v6274_v14  ;;  %v12297_v14 = vld [vmem:[%s12811_s7 + $0x84] ss:$16 sps:$4 sm:$0xff]   ;;  %v12302_v60 = vld [vmem:[%s12811_s7 + $0x8c] ss:$16 sps:$4 sm:$0xff]  }
0x11c3   :  { %v9941_v18 = vpop.eup %9940 }
0x11c4   :  { %v6288_v51 = vadd.f32 %v6287_v37, %v6273_v25  ;;  %v6290_v28 = vsub.f32 1.0, %v9941_v18  ;;  %v6292_v23 = vmul.f32 %v9941_v18, %v12124_v26  ;;  %v12307_v25 = vld [vmem:[%s12811_s7 + $0x80] ss:$16 sps:$4 sm:$0xff]   ;;  %v12312_v37 = vld [vmem:[%s12811_s7 + $0x88] ss:$16 sps:$4 sm:$0xff]  }
0x11c5   :  { %v12324_v18 = vld [vmem:[%s12811_s7 + $0x6c] ss:$16 sps:$4 sm:$0xff]  }
0x11c6   :  { %9942 = vtanh.f32 %v6288_v51  ;;  %v12319_v51 = vld [vmem:[%s12811_s7 + $0x64] ss:$16 sps:$4 sm:$0xff]  }
0x11d3   :  { %v9943_v59 = vpop.eup %9942 }
0x11d4   :  { %v6291_v7 = vmul.f32 %v9943_v59, %v6290_v28  ;;  %v12331_v28 = vld [vmem:[%s12811_s7 + $0x60] ss:$16 sps:$4 sm:$0xff]   ;;  %v12336_v59 = vld [vmem:[%s12811_s7 + $0x68] ss:$16 sps:$4 sm:$0xff]  }
0x11d6   :  { %v12171_v29 = vadd.f32 %v6292_v23, %v6291_v7  ;;  %v12343_v7 = vld [vmem:[%s12811_s7 + $0x44] ss:$16 sps:$4 sm:$0xff]   ;;  %v12348_v23 = vld [vmem:[%s12811_s7 + $0x4c] ss:$16 sps:$4 sm:$0xff]  }
0x11d8   :  { %v6295_v16 = vpack.c.bf16 %v12171_v29, %v12171_v29 }
0x11da   :  { %6521 = vmatmul.mubr.bf16.vlgmr.msra.gmra.mxu0 %v6295_v16  ;;  %6562 = vmatmul.mubr.bf16.vlgmr.msra.gmra.mxu1 %v6295_v16  ;;  %v12355_v16 = vld [vmem:[%s12811_s7 + $0x40] ss:$16 sps:$4 sm:$0xff]  }
0x11db   :  { %6792 = vmatpush1.bf16.msra.mxu0 %v11811_v21  ;;  %6833 = vmatpush1.bf16.msra.mxu1 %v11817_v17  ;;  %v5557_v21 = vadd.f32 %v12053_v12, %v12098_v1 }
0x11dc   :  { %6793 = vmatprep.subr.bf16.mxu0 %v11829_v41  ;;  %6834 = vmatprep.subr.bf16.mxu1 %v11834_v11 }
0x11dd   :  { %6823 = vmatprep.mubr.bf16.mxu0 %v12846_v13  ;;  %6864 = vmatprep.mubr.bf16.mxu1 %v12846_v13 }
0x11df   :  { %6794 = vmatpush1.bf16.msra.mxu0 %v11840_v2  ;;  %6835 = vmatpush1.bf16.msra.mxu1 %v11845_v19 }
0x11e0   :  { %6795 = vmatprep.subr.bf16.mxu0 %v11853_v30  ;;  %6836 = vmatprep.subr.bf16.mxu1 %v11858_v33 }
0x11e3   :  { %6796 = vmatpush1.bf16.msra.mxu0 %v11864_v44  ;;  %6837 = vmatpush1.bf16.msra.mxu1 %v11869_v34  ;;  %v5559_v34 = vadd.f32 %v12057_v15, %v12111_v62 }
0x11e4   :  { %6797 = vmatprep.subr.bf16.mxu0 %v11877_v5  ;;  %6838 = vmatprep.subr.bf16.mxu1 %v11882_v46 }
0x11e7   :  { %6798 = vmatpush1.bf16.msra.mxu0 %v11888_v47  ;;  %6839 = vmatpush1.bf16.msra.mxu1 %v11893_v48 }
0x11e8   :  { %6799 = vmatprep.subr.bf16.mxu0 %v11901_v49  ;;  %6840 = vmatprep.subr.bf16.mxu1 %v11906_v43 }
0x11eb   :  { %6800 = vmatpush1.bf16.msra.mxu0 %v11912_v55  ;;  %6841 = vmatpush1.bf16.msra.mxu1 %v11917_v31  ;;  %v12894_v31 = vld [vmem:[#allocation6_spill] sm:$0xff] }
0x11ec   :  { %6801 = vmatprep.subr.bf16.mxu0 %v11925_v35  ;;  %6842 = vmatprep.subr.bf16.mxu1 %v11930_v9  ;;  %v5632_v35 = vadd.f32 %v12894_v31, %v12116_v6 }
0x11ef   :  { %6802 = vmatpush1.bf16.msra.mxu0 %v11936_v50  ;;  %6843 = vmatpush1.bf16.msra.mxu1 %v11941_v52  ;;  %v12895_v50 = vld [vmem:[#allocation4_spill] sm:$0xff] }
0x11f0   :  { %6803 = vmatprep.subr.bf16.mxu0 %v11953_v42  ;;  %6844 = vmatprep.subr.bf16.mxu1 %v11960_v4  ;;  %v5630_v52 = vadd.f32 %v12895_v50, %v12120_v38 }
0x11f3   :  { %6804 = vmatpush1.bf16.msra.mxu0 %v11946_v54  ;;  %6845 = vmatpush1.bf16.msra.mxu1 %v11966_v10 }
0x11f4   :  { %6805 = vmatprep.subr.bf16.mxu0 %v11971_v39  ;;  %6846 = vmatprep.subr.bf16.mxu1 %v11982_v57 }
0x11f7   :  { %6806 = vmatpush1.bf16.msra.mxu0 %v11977_v0  ;;  %6847 = vmatpush1.bf16.msra.mxu1 %v11988_v53 }
0x11f8   :  { %7094 = vmatprep.subr.bf16.mxu0 %v12225_v32  ;;  %7135 = vmatprep.subr.bf16.mxu1 %v12230_v3 }
0x129a   :  { %v6522_v17 = vpop.f32.mrf.mxu0  ;;  %v6563_v41 = vpop.f32.mrf.mxu1 }
0x129b   :  { %v6574_v11 = vadd.f32 %v6522_v17, %v5557_v21  ;;  %v6576_v4 = vadd.f32 %v6563_v41, %v5630_v52  ;;  %v12360_v21 = vld [vmem:[%s12811_s7 + $0x48] ss:$16 sps:$4 sm:$0xff]   ;;  %v12367_v17 = vld [vmem:[%s12811_s7 + $0x24] ss:$16 sps:$4 sm:$0xff]   ;;  %v12372_v41 = vld [vmem:[%s12811_s7 + $0x2c] ss:$16 sps:$4 sm:$0xff]  }
0x129c   :  { %v6524_v2 = vpop.f32.mrf.mxu0  ;;  %v6565_v19 = vpop.f32.mrf.mxu1 }
0x129d   :  { %v9154_v30 = vmul.f32 -1.442695, %v6574_v11  ;;  %v6575_v47 = vadd.f32 %v6524_v2, %v5559_v34  ;;  %v6577_v54 = vadd.f32 %v6565_v19, %v5632_v35  ;;  %v12379_v11 = vld [vmem:[%s12811_s7 + $0x20] ss:$16 sps:$4 sm:$0xff]   ;;  %v12384_v2 = vld [vmem:[%s12811_s7 + $0x28] ss:$16 sps:$4 sm:$0xff]  }
0x129e   :  { %v6526_v33 = vpop.f32.mrf.mxu0  ;;  %v6567_v44 = vpop.f32.mrf.mxu1  ;;  %v12391_v19 = vld [vmem:[%s12811_s7 + $0x4] ss:$16 sps:$4 sm:$0xff]   ;;  %v12896_v34 = vld [vmem:[#allocation7_spill] sm:$0xff] }
0x129f   :  { %9944 = vpow2.f32 %v9154_v30  ;;  %v9155_v48 = vmul.f32 -1.442695, %v6575_v47  ;;  %v12396_v30 = vld [vmem:[%s12811_s7 + $0xc] ss:$16 sps:$4 sm:$0xff]   ;;  %v12403_v33 = vld [vmem:[%s12811_s7] ss:$16 sps:$4 sm:$0xff]  }
0x12a0   :  { %v6527_v5 = vpop.f32.mrf.mxu0  ;;  %v6568_v46 = vpop.f32.mrf.mxu1  ;;  %v12408_v44 = vld [vmem:[%s12811_s7 + $0x8] ss:$16 sps:$4 sm:$0xff]  }
0x12a1   :  { %9946 = vpow2.f32 %v9155_v48  ;;  %v5561_v5 = vadd.f32 %v12896_v34, %v12098_v1 }
0x12ac   :  { %v9945_v49 = vpop.eup %9944 }
0x12ad   :  { %v6584_v43 = vadd.f32 1.0, %v9945_v49 }
0x12ae   :  { %v9947_v55 = vpop.eup %9946 }
0x12af   :  { %9948 = vrcp.f32 %v6584_v43  ;;  %v6585_v9 = vadd.f32 1.0, %v9947_v55 }
0x12b1   :  { %9950 = vrcp.f32 %v6585_v9  ;;  %v12897_v9 = vld [vmem:[#allocation8_spill] sm:$0xff] }
0x12b2   :  { %v5563_v50 = vadd.f32 %v12897_v9, %v12111_v62 }
0x12bc   :  { %v9949_v42 = vpop.eup %9948 }
0x12bd   :  { %v6590_v10 = vmul.f32 %v9949_v42, %v6577_v54 }
0x12be   :  { %v9951_v0 = vpop.eup %9950 }
0x12bf   :  { %v6591_v39 = vadd.f32 %v6590_v10, %v6576_v4  ;;  %v6593_v57 = vsub.f32 1.0, %v9951_v0  ;;  %v6595_v12 = vmul.f32 %v9951_v0, %v12171_v29 }
0x12c1   :  { %9952 = vtanh.f32 %v6591_v39 }
0x12ce   :  { %v9953_v53 = vpop.eup %9952 }
0x12cf   :  { %v6594_v36 = vmul.f32 %v9953_v53, %v6593_v57  ;;  %v12898_v57 = vld [vmem:[#allocation10_spill] sm:$0xff] }
0x12d0   :  { %v5636_v53 = vadd.f32 %v12898_v57, %v12116_v6 }
0x12d1   :  { %v12216_v15 = vadd.f32 %v6595_v12, %v6594_v36  ;;  %v12899_v12 = vld [vmem:[#allocation5_spill] sm:$0xff] }
0x12d3   :  { %v6598_v24 = vpack.c.bf16 %v12216_v15, %v12216_v15 }
0x12d5   :  { %6824 = vmatmul.mubr.bf16.vlgmr.msra.gmra.mxu0 %v6598_v24  ;;  %6865 = vmatmul.mubr.bf16.vlgmr.msra.gmra.mxu1 %v6598_v24  ;;  %v5634_v24 = vadd.f32 %v12899_v12, %v12120_v38  ;;  %v12901_v12 = vld [vmem:[#allocation12_spill] sm:$0xff] }
0x12d6   :  { %7126 = vmatprep.mubr.bf16.mxu0 %v12846_v13  ;;  %7167 = vmatprep.mubr.bf16.mxu1 %v12846_v13 }
0x12d7   :  { %7095 = vmatpush1.bf16.msra.mxu0 %v12235_v61  ;;  %7136 = vmatpush1.bf16.msra.mxu1 %v12240_v20 }
0x12d8   :  { %7096 = vmatprep.subr.bf16.mxu0 %v12249_v27  ;;  %7137 = vmatprep.subr.bf16.mxu1 %v12254_v45 }
0x12db   :  { %7097 = vmatpush1.bf16.msra.mxu0 %v12259_v56  ;;  %7138 = vmatpush1.bf16.msra.mxu1 %v12264_v8 }
0x12dc   :  { %7098 = vmatprep.subr.bf16.mxu0 %v12273_v22  ;;  %7139 = vmatprep.subr.bf16.mxu1 %v12278_v40 }
0x12df   :  { %7099 = vmatpush1.bf16.msra.mxu0 %v12283_v58  ;;  %7140 = vmatpush1.bf16.msra.mxu1 %v12288_v63 }
0x12e0   :  { %7100 = vmatprep.subr.bf16.mxu0 %v12297_v14  ;;  %7141 = vmatprep.subr.bf16.mxu1 %v12302_v60 }
0x12e3   :  { %7101 = vmatpush1.bf16.msra.mxu0 %v12307_v25  ;;  %7142 = vmatpush1.bf16.msra.mxu1 %v12312_v37 }
0x12e4   :  { %7102 = vmatprep.subr.bf16.mxu0 %v12319_v51  ;;  %7143 = vmatprep.subr.bf16.mxu1 %v12324_v18 }
0x12e7   :  { %7103 = vmatpush1.bf16.msra.mxu0 %v12331_v28  ;;  %7144 = vmatpush1.bf16.msra.mxu1 %v12336_v59 }
0x12e8   :  { %7104 = vmatprep.subr.bf16.mxu0 %v12343_v7  ;;  %7145 = vmatprep.subr.bf16.mxu1 %v12348_v23 }
0x12eb   :  { %7105 = vmatpush1.bf16.msra.mxu0 %v12355_v16  ;;  %7146 = vmatpush1.bf16.msra.mxu1 %v12360_v21 }
0x12ec   :  { %7106 = vmatprep.subr.bf16.mxu0 %v12367_v17  ;;  %7147 = vmatprep.subr.bf16.mxu1 %v12372_v41 }
0x12ef   :  { %7107 = vmatpush1.bf16.msra.mxu0 %v12379_v11  ;;  %7148 = vmatpush1.bf16.msra.mxu1 %v12384_v2 }
0x12f0   :  { %7108 = vmatprep.subr.bf16.mxu0 %v12391_v19  ;;  %7149 = vmatprep.subr.bf16.mxu1 %v12396_v30 }
0x12f3   :  { %7109 = vmatpush1.bf16.msra.mxu0 %v12403_v33  ;;  %7150 = vmatpush1.bf16.msra.mxu1 %v12408_v44 }
0x12f4   :  { %7397 = vmatprep.subr.bf16.mxu0 %v12225_v32  ;;  %7438 = vmatprep.subr.bf16.mxu1 %v12230_v3 }
0x1395   :  { %v6825_v46 = vpop.f32.mrf.mxu0  ;;  %v6866_v47 = vpop.f32.mrf.mxu1 }
0x1396   :  { %v6877_v48 = vadd.f32 %v6825_v46, %v5561_v5  ;;  %v6879_v46 = vadd.f32 %v6866_v47, %v5634_v24  ;;  %v12900_v47 = vld [vmem:[#allocation11_spill] sm:$0xff]  ;;  %v5569_v24 = vadd.f32 %v12901_v12, %v12111_v62 }
0x1397   :  { %v6827_v49 = vpop.f32.mrf.mxu0  ;;  %v6868_v43 = vpop.f32.mrf.mxu1 }
0x1398   :  { %v9188_v55 = vmul.f32 -1.442695, %v6877_v48  ;;  %v6878_v42 = vadd.f32 %v6827_v49, %v5563_v50  ;;  %v6880_v34 = vadd.f32 %v6868_v43, %v5636_v53  ;;  %v5567_v43 = vadd.f32 %v12900_v47, %v12098_v1 }
0x1399   :  { %v6829_v31 = vpop.f32.mrf.mxu0  ;;  %v6870_v35 = vpop.f32.mrf.mxu1 }
0x139a   :  { %9954 = vpow2.f32 %v9188_v55  ;;  %v9189_v4 = vmul.f32 -1.442695, %v6878_v42 }
0x139b   :  { %v6830_v52 = vpop.f32.mrf.mxu0  ;;  %v6871_v54 = vpop.f32.mrf.mxu1 }
0x139c   :  { %9956 = vpow2.f32 %v9189_v4 }
0x13a7   :  { %v9955_v10 = vpop.eup %9954 }
0x13a8   :  { %v6887_v39 = vadd.f32 1.0, %v9955_v10 }
0x13a9   :  { %v9957_v0 = vpop.eup %9956 }
0x13aa   :  { %9958 = vrcp.f32 %v6887_v39  ;;  %v6888_v36 = vadd.f32 1.0, %v9957_v0 }
0x13ac   :  { %9960 = vrcp.f32 %v6888_v36 }
0x13b7   :  { %v9959_v5 = vpop.eup %9958 }
0x13b8   :  { %v6893_v48 = vmul.f32 %v9959_v5, %v6880_v34 }
0x13b9   :  { %v9961_v49 = vpop.eup %9960 }
0x13ba   :  { %v6894_v55 = vadd.f32 %v6893_v48, %v6879_v46  ;;  %v6896_v31 = vsub.f32 1.0, %v9961_v49  ;;  %v6898_v50 = vmul.f32 %v9961_v49, %v12216_v15 }
0x13bc   :  { %9962 = vtanh.f32 %v6894_v55 }
0x13c9   :  { %v9963_v35 = vpop.eup %9962 }
0x13ca   :  { %v6897_v9 = vmul.f32 %v9963_v35, %v6896_v31  ;;  %v12902_v35 = vld [vmem:[#allocation15_spill] sm:$0xff] }
0x13cc   :  { %v12425_v52 = vadd.f32 %v6898_v50, %v6897_v9  ;;  %v5642_v9 = vadd.f32 %v12902_v35, %v12116_v6 }
0x13ce   :  { %v6901_v54 = vpack.c.bf16 %v12425_v52, %v12425_v52 }
0x13d0   :  { %7127 = vmatmul.mubr.bf16.vlgmr.msra.gmra.mxu0 %v6901_v54  ;;  %7168 = vmatmul.mubr.bf16.vlgmr.msra.gmra.mxu1 %v6901_v54  ;;  %v12903_v54 = vld [vmem:[#allocation9_spill] sm:$0xff] }
0x13d1   :  { %7398 = vmatpush1.bf16.msra.mxu0 %v12235_v61  ;;  %7439 = vmatpush1.bf16.msra.mxu1 %v12240_v20  ;;  %v5640_v47 = vadd.f32 %v12903_v54, %v12120_v38 }
0x13d2   :  { %7399 = vmatprep.subr.bf16.mxu0 %v12249_v27  ;;  %7440 = vmatprep.subr.bf16.mxu1 %v12254_v45 }
0x13d3   :  { %7429 = vmatprep.mubr.bf16.mxu0 %v12846_v13  ;;  %7470 = vmatprep.mubr.bf16.mxu1 %v12846_v13 }
0x13d5   :  { %7400 = vmatpush1.bf16.msra.mxu0 %v12259_v56  ;;  %7441 = vmatpush1.bf16.msra.mxu1 %v12264_v8 }
0x13d6   :  { %7401 = vmatprep.subr.bf16.mxu0 %v12273_v22  ;;  %7442 = vmatprep.subr.bf16.mxu1 %v12278_v40 }
0x13d9   :  { %7402 = vmatpush1.bf16.msra.mxu0 %v12283_v58  ;;  %7443 = vmatpush1.bf16.msra.mxu1 %v12288_v63 }
0x13da   :  { %7403 = vmatprep.subr.bf16.mxu0 %v12297_v14  ;;  %7444 = vmatprep.subr.bf16.mxu1 %v12302_v60 }
0x13dd   :  { %7404 = vmatpush1.bf16.msra.mxu0 %v12307_v25  ;;  %7445 = vmatpush1.bf16.msra.mxu1 %v12312_v37 }
0x13de   :  { %7405 = vmatprep.subr.bf16.mxu0 %v12319_v51  ;;  %7446 = vmatprep.subr.bf16.mxu1 %v12324_v18 }
0x13e1   :  { %7406 = vmatpush1.bf16.msra.mxu0 %v12331_v28  ;;  %7447 = vmatpush1.bf16.msra.mxu1 %v12336_v59 }
0x13e2   :  { %7407 = vmatprep.subr.bf16.mxu0 %v12343_v7  ;;  %7448 = vmatprep.subr.bf16.mxu1 %v12348_v23 }
0x13e5   :  { %7408 = vmatpush1.bf16.msra.mxu0 %v12355_v16  ;;  %7449 = vmatpush1.bf16.msra.mxu1 %v12360_v21 }
0x13e6   :  { %7409 = vmatprep.subr.bf16.mxu0 %v12367_v17  ;;  %7450 = vmatprep.subr.bf16.mxu1 %v12372_v41 }
0x13e9   :  { %7410 = vmatpush1.bf16.msra.mxu0 %v12379_v11  ;;  %7451 = vmatpush1.bf16.msra.mxu1 %v12384_v2 }
0x13ea   :  { %7411 = vmatprep.subr.bf16.mxu0 %v12391_v19  ;;  %7452 = vmatprep.subr.bf16.mxu1 %v12396_v30 }
0x13ed   :  { %7412 = vmatpush1.bf16.msra.mxu0 %v12403_v33  ;;  %7453 = vmatpush1.bf16.msra.mxu1 %v12408_v44 }
0x13ee   :  { %7700 = vmatprep.subr.bf16.mxu0 %v12225_v32  ;;  %7741 = vmatprep.subr.bf16.mxu1 %v12230_v3 }
0x1490   :  { %v7128_v42 = vpop.f32.mrf.mxu0  ;;  %v7169_v4 = vpop.f32.mrf.mxu1 }
0x1491   :  { %v7180_v10 = vadd.f32 %v7128_v42, %v5567_v43 }
0x1492   :  { %v7130_v39 = vpop.f32.mrf.mxu0  ;;  %v7171_v0 = vpop.f32.mrf.mxu1 }
0x1493   :  { %v9222_v57 = vmul.f32 -1.442695, %v7180_v10  ;;  %v7181_v46 = vadd.f32 %v7130_v39, %v5569_v24  ;;  %v7183_v43 = vadd.f32 %v7171_v0, %v5642_v9  ;;  %v7182_v10 = vadd.f32 %v7169_v4, %v5640_v47  ;;  %v12904_v4 = vld [vmem:[#allocation16_spill] sm:$0xff]  ;;  %v12905_v47 = vld [vmem:[#allocation17_spill] sm:$0xff] }
0x1494   :  { %v7132_v53 = vpop.f32.mrf.mxu0  ;;  %v7173_v36 = vpop.f32.mrf.mxu1  ;;  %v5571_v0 = vadd.f32 %v12904_v4, %v12098_v1 }
0x1495   :  { %9964 = vpow2.f32 %v9222_v57  ;;  %v9223_v48 = vmul.f32 -1.442695, %v7181_v46 }
0x1496   :  { %v7133_v34 = vpop.f32.mrf.mxu0  ;;  %v7174_v5 = vpop.f32.mrf.mxu1 }
0x1497   :  { %9966 = vpow2.f32 %v9223_v48 }
0x14a2   :  { %v9965_v55 = vpop.eup %9964 }
0x14a3   :  { %v7190_v49 = vadd.f32 1.0, %v9965_v55 }
0x14a4   :  { %v9967_v31 = vpop.eup %9966 }
0x14a5   :  { %9968 = vrcp.f32 %v7190_v49  ;;  %v7191_v50 = vadd.f32 1.0, %v9967_v31 }
0x14a7   :  { %9970 = vrcp.f32 %v7191_v50 }
0x14b2   :  { %v9969_v42 = vpop.eup %9968 }
0x14b3   :  { %v7196_v57 = vmul.f32 %v9969_v42, %v7183_v43  ;;  %v5573_v43 = vadd.f32 %v12905_v47, %v12111_v62 }
0x14b4   :  { %v9971_v39 = vpop.eup %9970 }
0x14b5   :  { %v7197_v53 = vadd.f32 %v7196_v57, %v7182_v10  ;;  %v7199_v36 = vsub.f32 1.0, %v9971_v39  ;;  %v7201_v34 = vmul.f32 %v9971_v39, %v12425_v52 }
0x14b7   :  { %9972 = vtanh.f32 %v7197_v53 }
0x14c4   :  { %v9973_v12 = vpop.eup %9972 }
0x14c5   :  { %v7200_v24 = vmul.f32 %v9973_v12, %v7199_v36  ;;  %v12906_v36 = vld [vmem:[#allocation19_spill] sm:$0xff] }
0x14c6   :  { %v5646_v12 = vadd.f32 %v12906_v36, %v12116_v6  ;;  %v8121_v36 = vpack.c.bf16 %v12171_v29, %v12124_v26  ;;  %v9760_v26 = vld [vmem:[%s12813_s8 + $0x18] sm:$0xff]   ;;  %v9761_v29 = vld [vmem:[%s12813_s8 + $0x10] sm:$0xff]  }
0x14c7   :  { %v12472_v5 = vadd.f32 %v7201_v34, %v7200_v24  ;;  %v12907_v34 = vld [vmem:[#allocation13_spill] sm:$0xff] }
0x14c9   :  { %v7204_v46 = vpack.c.bf16 %v12472_v5, %v12472_v5 }
0x14cb   :  { %7430 = vmatmul.mubr.bf16.vlgmr.msra.gmra.mxu0 %v7204_v46  ;;  %7471 = vmatmul.mubr.bf16.vlgmr.msra.gmra.mxu1 %v7204_v46  ;;  %v5644_v46 = vadd.f32 %v12907_v34, %v12120_v38  ;;  %v9762_v34 = vld [vmem:[%s12813_s8 + $0x8] sm:$0xff]  }
0x14cc   :  { %7701 = vmatpush1.bf16.msra.mxu0 %v12235_v61  ;;  %7742 = vmatpush1.bf16.msra.mxu1 %v12240_v20 }
0x14cd   :  { %7702 = vmatprep.subr.bf16.mxu0 %v12249_v27  ;;  %7743 = vmatprep.subr.bf16.mxu1 %v12254_v45 }
0x14ce   :  { %7732 = vmatprep.mubr.bf16.mxu0 %v12846_v13  ;;  %7773 = vmatprep.mubr.bf16.mxu1 %v12846_v13 }
0x14d0   :  { %7703 = vmatpush1.bf16.msra.mxu0 %v12259_v56  ;;  %7744 = vmatpush1.bf16.msra.mxu1 %v12264_v8 }
0x14d1   :  { %7704 = vmatprep.subr.bf16.mxu0 %v12273_v22  ;;  %7745 = vmatprep.subr.bf16.mxu1 %v12278_v40 }
0x14d4   :  { %7705 = vmatpush1.bf16.msra.mxu0 %v12283_v58  ;;  %7746 = vmatpush1.bf16.msra.mxu1 %v12288_v63 }
0x14d5   :  { %7706 = vmatprep.subr.bf16.mxu0 %v12297_v14  ;;  %7747 = vmatprep.subr.bf16.mxu1 %v12302_v60 }
0x14d8   :  { %7707 = vmatpush1.bf16.msra.mxu0 %v12307_v25  ;;  %7748 = vmatpush1.bf16.msra.mxu1 %v12312_v37 }
0x14d9   :  { %7708 = vmatprep.subr.bf16.mxu0 %v12319_v51  ;;  %7749 = vmatprep.subr.bf16.mxu1 %v12324_v18 }
0x14dc   :  { %7709 = vmatpush1.bf16.msra.mxu0 %v12331_v28  ;;  %7750 = vmatpush1.bf16.msra.mxu1 %v12336_v59 }
0x14dd   :  { %7710 = vmatprep.subr.bf16.mxu0 %v12343_v7  ;;  %7751 = vmatprep.subr.bf16.mxu1 %v12348_v23 }
0x14e0   :  { %7711 = vmatpush1.bf16.msra.mxu0 %v12355_v16  ;;  %7752 = vmatpush1.bf16.msra.mxu1 %v12360_v21 }
0x14e1   :  { %7712 = vmatprep.subr.bf16.mxu0 %v12367_v17  ;;  %7753 = vmatprep.subr.bf16.mxu1 %v12372_v41 }
0x14e4   :  { %7713 = vmatpush1.bf16.msra.mxu0 %v12379_v11  ;;  %7754 = vmatpush1.bf16.msra.mxu1 %v12384_v2 }
0x14e5   :  { %7714 = vmatprep.subr.bf16.mxu0 %v12391_v19  ;;  %7755 = vmatprep.subr.bf16.mxu1 %v12396_v30 }
0x14e8   :  { %7715 = vmatpush1.bf16.msra.mxu0 %v12403_v33  ;;  %7756 = vmatpush1.bf16.msra.mxu1 %v12408_v44 }
0x14e9   :  { %8003 = vmatprep.subr.bf16.mxu0 %v12225_v32  ;;  %8044 = vmatprep.subr.bf16.mxu1 %v12230_v3 }
0x158b   :  { %v7431_v48 = vpop.f32.mrf.mxu0  ;;  %v7472_v55 = vpop.f32.mrf.mxu1 }
0x158c   :  { %v7483_v49 = vadd.f32 %v7431_v48, %v5571_v0  ;;  %v7485_v48 = vadd.f32 %v7472_v55, %v5644_v46  ;;  %v9763_v46 = vld [vmem:[%s12813_s8] sm:$0xff]  }
0x158d   :  { %v7433_v31 = vpop.f32.mrf.mxu0  ;;  %v7474_v35 = vpop.f32.mrf.mxu1 }
0x158e   :  { %v9256_v9 = vmul.f32 -1.442695, %v7483_v49  ;;  %v7484_v32 = vadd.f32 %v7433_v31, %v5573_v43  ;;  %v7486_v4 = vadd.f32 %v7474_v35, %v5646_v12  ;;  %v9758_v12 = vld [vmem:[%s12813_s8 + $0x28] sm:$0xff]  }
0x158f   :  { %v7435_v50 = vpop.f32.mrf.mxu0  ;;  %v7476_v54 = vpop.f32.mrf.mxu1 }
0x1590   :  { %9974 = vpow2.f32 %v9256_v9  ;;  %v9257_v57 = vmul.f32 -1.442695, %v7484_v32 }
0x1591   :  { %v7436_v42 = vpop.f32.mrf.mxu0  ;;  %v7477_v10 = vpop.f32.mrf.mxu1 }
0x1592   :  { %9976 = vpow2.f32 %v9257_v57 }
0x159d   :  { %v9975_v3 = vpop.eup %9974 }
0x159e   :  { %v7493_v53 = vadd.f32 1.0, %v9975_v3 }
0x159f   :  { %v9977_v39 = vpop.eup %9976 }
0x15a0   :  { %9978 = vrcp.f32 %v7493_v53  ;;  %v7494_v24 = vadd.f32 1.0, %v9977_v39  ;;  %v9757_v39 = vld [vmem:[%s12813_s8 + $0x30] sm:$0xff]  }
0x15a2   :  { %9980 = vrcp.f32 %v7494_v24  ;;  %v9759_v24 = vld [vmem:[%s12813_s8 + $0x20] sm:$0xff]  }
0x15ad   :  { %v9979_v0 = vpop.eup %9978 }
0x15ae   :  { %v7499_v49 = vmul.f32 %v9979_v0, %v7486_v4  ;;  %v8122_v4 = vpack.c.bf16 %v12425_v52, %v12216_v15 }
0x15af   :  { %v9981_v31 = vpop.eup %9980 }
0x15b0   :  { %v7500_v9 = vadd.f32 %v7499_v49, %v7485_v48  ;;  %v7502_v50 = vsub.f32 1.0, %v9981_v31  ;;  %v7504_v43 = vmul.f32 %v9981_v31, %v12472_v5  ;;  %v12912_v48 = vld [vmem:[#allocation24_spill] sm:$0xff] }
0x15b1   :  { %v5581_v49 = vadd.f32 %v12912_v48, %v12098_v1 }
0x15b2   :  { %9982 = vtanh.f32 %v7500_v9 }
0x15bf   :  { %v9983_v54 = vpop.eup %9982 }
0x15c0   :  { %v7503_v47 = vmul.f32 %v9983_v54, %v7502_v50 }
0x15c2   :  { %v12519_v42 = vadd.f32 %v7504_v43, %v7503_v47 }
0x15c4   :  { %v7507_v10 = vpack.c.bf16 %v12519_v42, %v12519_v42  ;;  %v8123_v0 = vpack.c.bf16 %v12519_v42, %v12472_v5 }
0x15c6   :  { %7733 = vmatmul.mubr.bf16.vlgmr.msra.gmra.mxu0 %v7507_v10  ;;  %7774 = vmatmul.mubr.bf16.vlgmr.msra.gmra.mxu1 %v7507_v10  ;;  %v12913_v10 = vld [vmem:[#allocation14_spill] sm:$0xff] }
0x15c7   :  { %8004 = vmatpush1.bf16.msra.mxu0 %v12235_v61  ;;  %8045 = vmatpush1.bf16.msra.mxu1 %v12240_v20  ;;  %v12908_v61 = vld [vmem:[#allocation20_spill] sm:$0xff] }
0x15c8   :  { %8005 = vmatprep.subr.bf16.mxu0 %v12249_v27  ;;  %8046 = vmatprep.subr.bf16.mxu1 %v12254_v45  ;;  %v5577_v20 = vadd.f32 %v12908_v61, %v12098_v1  ;;  %v12914_v1 = vlaneseq }
0x15c9   :  { %8035 = vmatprep.mubr.bf16.mxu0 %v12846_v13  ;;  %8076 = vmatprep.mubr.bf16.mxu1 %v12846_v13  ;;  %v9756_v13 = vld [vmem:[%s12813_s8 + $0x38] sm:$0xff]  }
0x15cb   :  { %8006 = vmatpush1.bf16.msra.mxu0 %v12259_v56  ;;  %8047 = vmatpush1.bf16.msra.mxu1 %v12264_v8 }
0x15cc   :  { %8007 = vmatprep.subr.bf16.mxu0 %v12273_v22  ;;  %8048 = vmatprep.subr.bf16.mxu1 %v12278_v40 }
0x15cf   :  { %8008 = vmatpush1.bf16.msra.mxu0 %v12283_v58  ;;  %8049 = vmatpush1.bf16.msra.mxu1 %v12288_v63 }
0x15d0   :  { %8009 = vmatprep.subr.bf16.mxu0 %v12297_v14  ;;  %8050 = vmatprep.subr.bf16.mxu1 %v12302_v60  ;;  %v12909_v14 = vld [vmem:[#allocation21_spill] sm:$0xff] }
0x15d1   :  { %v5579_v60 = vadd.f32 %v12909_v14, %v12111_v62  ;;  %v12918_v14 = vld [vmem:[#allocation22_spill] sm:$0xff] }
0x15d3   :  { %8010 = vmatpush1.bf16.msra.mxu0 %v12307_v25  ;;  %8051 = vmatpush1.bf16.msra.mxu1 %v12312_v37 }
0x15d4   :  { %8011 = vmatprep.subr.bf16.mxu0 %v12319_v51  ;;  %8052 = vmatprep.subr.bf16.mxu1 %v12324_v18 }
0x15d7   :  { %8012 = vmatpush1.bf16.msra.mxu0 %v12331_v28  ;;  %8053 = vmatpush1.bf16.msra.mxu1 %v12336_v59 }
0x15d8   :  { %8013 = vmatprep.subr.bf16.mxu0 %v12343_v7  ;;  %8054 = vmatprep.subr.bf16.mxu1 %v12348_v23  ;;  %v12910_v23 = vld [vmem:[#allocation23_spill] sm:$0xff] }
0x15db   :  { %8014 = vmatpush1.bf16.msra.mxu0 %v12355_v16  ;;  %8055 = vmatpush1.bf16.msra.mxu1 %v12360_v21  ;;  %v5652_v16 = vadd.f32 %v12910_v23, %v12116_v6 }
0x15dc   :  { %8015 = vmatprep.subr.bf16.mxu0 %v12367_v17  ;;  %8056 = vmatprep.subr.bf16.mxu1 %v12372_v41  ;;  %v12911_v17 = vld [vmem:[#allocation18_spill] sm:$0xff] }
0x15dd   :  { %v5650_v41 = vadd.f32 %v12911_v17, %v12120_v38 }
0x15df   :  { %8016 = vmatpush1.bf16.msra.mxu0 %v12379_v11  ;;  %8057 = vmatpush1.bf16.msra.mxu1 %v12384_v2 }
0x15e0   :  { %8017 = vmatprep.subr.bf16.mxu0 %v12391_v19  ;;  %8058 = vmatprep.subr.bf16.mxu1 %v12396_v30 }
0x15e3   :  { %8018 = vmatpush1.bf16.msra.mxu0 %v12403_v33  ;;  %8059 = vmatpush1.bf16.msra.mxu1 %v12408_v44 }
0x15e4   :  { %9347 = vmatprep.subr.bf16.mxu0 %v9756_v13 }
0x1686   :  { %v7734_v27 = vpop.f32.mrf.mxu0  ;;  %v7775_v45 = vpop.f32.mrf.mxu1 }
0x1687   :  { %v7786_v56 = vadd.f32 %v7734_v27, %v5577_v20  ;;  %v7788_v19 = vadd.f32 %v7775_v45, %v5650_v41 }
0x1688   :  { %v7736_v8 = vpop.f32.mrf.mxu0  ;;  %v7777_v22 = vpop.f32.mrf.mxu1 }
0x1689   :  { %v9290_v40 = vmul.f32 -1.442695, %v7786_v56  ;;  %v7787_v51 = vadd.f32 %v7736_v8, %v5579_v60  ;;  %v7789_v11 = vadd.f32 %v7777_v22, %v5652_v16  ;;  %v12603_v56 = vand.u32 127, %v12914_v1  ;;  %v12610_v22 = vld [vmem:[%s12814_s9] ss:$0 sm:$0xff] }
0x168a   :  { %v7738_v58 = vpop.f32.mrf.mxu0  ;;  %v7779_v63 = vpop.f32.mrf.mxu1  ;;  %v5654_v60 = vadd.f32 %v12918_v14, %v12120_v38 }
0x168b   :  { %9984 = vpow2.f32 %v9290_v40  ;;  %v9291_v18 = vmul.f32 -1.442695, %v7787_v51  ;;  %vm8264_vm0 = vcmp.ge.s32.totalorder %v12603_v56, 24  ;;  %vm8265_vm1 = vcmp.lt.s32.totalorder %v12603_v56, 36  ;;  %v12915_v40 = vld [vmem:[#allocation25_spill] sm:$0xff] }
0x168c   :  { %v7739_v25 = vpop.f32.mrf.mxu0  ;;  %v7780_v37 = vpop.f32.mrf.mxu1  ;;  %v5656_v58 = vadd.f32 %v12915_v40, %v12116_v6  ;;  %vm8263_vm2 = vcmp.lt.s32.totalorder %v12603_v56, 24  ;;  %vm12615_vm3 = vmand %vm8264_vm0, %vm8265_vm1 }
0x168d   :  { %9986 = vpow2.f32 %v9291_v18  ;;  %vm12680_vm4 = vmor %vm8263_vm2, %vm12615_vm3 }
0x1698   :  { %v9985_v28 = vpop.eup %9984 }
0x1699   :  { %v7796_v59 = vadd.f32 1.0, %v9985_v28 }
0x169a   :  { %v9987_v7 = vpop.eup %9986 }
0x169b   :  { %9988 = vrcp.f32 %v7796_v59  ;;  %v7797_v21 = vadd.f32 1.0, %v9987_v7 }
0x169d   :  { %9990 = vrcp.f32 %v7797_v21 }
0x16a8   :  { %v9989_v2 = vpop.eup %9988 }
0x16a9   :  { %v7802_v30 = vmul.f32 %v9989_v2, %v7789_v11 }
0x16aa   :  { %v9991_v44 = vpop.eup %9990 }
0x16ab   :  { %v7803_v33 = vadd.f32 %v7802_v30, %v7788_v19  ;;  %v7805_v55 = vsub.f32 1.0, %v9991_v44  ;;  %v7807_v57 = vmul.f32 %v9991_v44, %v12519_v42 }
0x16ad   :  { %9992 = vtanh.f32 %v7803_v33 }
0x16ba   :  { %v9993_v35 = vpop.eup %9992 }
0x16bb   :  { %v7806_v32 = vmul.f32 %v9993_v35, %v7805_v55 }
0x16bd   :  { %v12567_v3 = vadd.f32 %v7807_v57, %v7806_v32 }
0x16bf   :  { %v7810_v53 = vpack.c.bf16 %v12567_v3, %v12567_v3 }
0x16c1   :  { %8036 = vmatmul.mubr.bf16.vlgmr.msra.gmra.mxu0 %v7810_v53  ;;  %8077 = vmatmul.mubr.bf16.vlgmr.msra.gmra.mxu1 %v7810_v53 }
0x16c2   :  { %9348 = vmatpush3.bf16.msra.mxu0 %v9756_v13  ;;  %9363 = vmatprep.mubr.bf16.mxu0 %v8121_v36  ;;  %v5583_v13 = vadd.f32 %v12913_v10, %v12111_v62 }
0x16c3   :  { %9349 = vmatprep.subr.bf16.mxu0 %v9757_v39 }
0x16c6   :  { %9350 = vmatpush3.bf16.msra.mxu0 %v9757_v39 }
0x16c7   :  { %9351 = vmatprep.subr.bf16.mxu0 %v9758_v12 }
0x16ca   :  { %9352 = vmatpush3.bf16.msra.mxu0 %v9758_v12 }
0x16cb   :  { %9353 = vmatprep.subr.bf16.mxu0 %v9759_v24 }
0x16ce   :  { %9354 = vmatpush3.bf16.msra.mxu0 %v9759_v24 }
0x16cf   :  { %9355 = vmatprep.subr.bf16.mxu0 %v9760_v26 }
0x16d2   :  { %9356 = vmatpush3.bf16.msra.mxu0 %v9760_v26 }
0x16d3   :  { %9357 = vmatprep.subr.bf16.mxu0 %v9761_v29 }
0x16d6   :  { %9358 = vmatpush3.bf16.msra.mxu0 %v9761_v29 }
0x16d7   :  { %9359 = vmatprep.subr.bf16.mxu0 %v9762_v34 }
0x16da   :  { %9360 = vmatpush3.bf16.msra.mxu0 %v9762_v34 }
0x16db   :  { %9361 = vmatprep.subr.bf16.mxu0 %v9763_v46 }
0x16de   :  { %9362 = vmatpush3.bf16.msra.mxu0 %v9763_v46 }
0x16e1   :  { %9364 = vmatmul.mubr.bf16.vlgmr.msra.gmra.mxu0 %v8122_v4 }
0x16e2   :  { %9367 = vmatprep.mubr.bf16.mxu0 %v8123_v0 }
0x1781   :  { %v8037_v9 = vpop.f32.mrf.mxu0  ;;  %v8078_v31 = vpop.f32.mrf.mxu1 }
0x1782   :  { %v8089_v50 = vadd.f32 %v8037_v9, %v5581_v49  ;;  %v8091_v28 = vadd.f32 %v8078_v31, %v5654_v60 }
0x1783   :  { %v8039_v54 = vpop.f32.mrf.mxu0  ;;  %v8080_v47 = vpop.f32.mrf.mxu1 }
0x1784   :  { %v9324_v43 = vmul.f32 -1.442695, %v8089_v50  ;;  %v8090_v15 = vadd.f32 %v8039_v54, %v5583_v13  ;;  %v8092_v37 = vadd.f32 %v8080_v47, %v5656_v58 }
0x1785   :  { %v8041_v61 = vpop.f32.mrf.mxu0  ;;  %v8082_v20 = vpop.f32.mrf.mxu1 }
0x1786   :  { %9994 = vpow2.f32 %v9324_v43  ;;  %v9325_v42 = vmul.f32 -1.442695, %v8090_v15 }
0x1787   :  { %v8042_v52 = vpop.f32.mrf.mxu0  ;;  %v8083_v5 = vpop.f32.mrf.mxu1 }
0x1788   :  { %9996 = vpow2.f32 %v9325_v42 }
0x1793   :  { %v9995_v27 = vpop.eup %9994 }
0x1794   :  { %v8099_v45 = vadd.f32 1.0, %v9995_v27 }
0x1795   :  { %v9997_v8 = vpop.eup %9996 }
0x1796   :  { %9998 = vrcp.f32 %v8099_v45  ;;  %v8100_v62 = vadd.f32 1.0, %v9997_v8 }
0x1798   :  { %10000 = vrcp.f32 %v8100_v62 }
0x17a1   :  { %v9365_v25 = vpop.f32.mrf.mxu0 }
0x17a2   :  { %v8239_v51 = vadd.f32 %v9365_v25, %v12610_v22 }
0x17a3   :  { %v9999_v18 = vpop.eup %9998  ;;  %v8230_v59 = vpop.f32.mrf.mxu0 }
0x17a4   :  { %v8105_v7 = vmul.f32 %v9999_v18, %v8092_v37  ;;  %v8231_v6 = vadd.f32 %v12610_v22, %v8230_v59  ;;  %v8297_v23 = vsel %vm12615_vm3, %v8239_v51, -1e+30  ;;  %v8271_v16 = vsel %vm8263_vm2, %v8239_v51, -1e+30 }
0x17a5   :  { %8307 = vmax.xlane.f32.xlu0 %v8297_v23  ;;  %8281 = vmax.xlane.f32.xlu1 %v8271_v16  ;;  %v9366_v38 = vpop.f32.mrf.mxu0  ;;  %v10001_v44 = vpop.eup %10000 }
0x17a6   :  { %v8106_v21 = vadd.f32 %v8105_v7, %v8091_v28  ;;  %v8242_v17 = vadd.f32 %v9366_v38, %v12610_v22  ;;  %v8269_v11 = vsel %vm8263_vm2, %v8231_v6, -1e+30  ;;  %v8295_v33 = vsel %vm12615_vm3, %v8231_v6, -1e+30 }
0x17a7   :  { %v8233_v2 = vpop.f32.mrf.mxu0  ;;  %v8108_v32 = vsub.f32 1.0, %v10001_v44  ;;  %v8110_v39 = vmul.f32 %v10001_v44, %v12567_v3 }
0x17a8   :  { %10002 = vtanh.f32 %v8106_v21  ;;  %v8272_v41 = vsel %vm8263_vm2, %v8242_v17, -1e+30  ;;  %v8234_v19 = vadd.f32 %v12610_v22, %v8233_v2  ;;  %v8298_v30 = vsel %vm12615_vm3, %v8242_v17, -1e+30 }
0x17a9   :  { %8283 = vmax.xlane.f32.xlu1 %v8272_v41  ;;  %8277 = vmax.xlane.f32.xlu0 %v8269_v11 }
0x17aa   :  { %v8296_v55 = vsel %vm12615_vm3, %v8234_v19, -1e+30  ;;  %v8270_v35 = vsel %vm8263_vm2, %v8234_v19, -1e+30 }
0x17ad   :  { %8309 = vmax.xlane.f32.xlu1 %v8298_v30  ;;  %8303 = vmax.xlane.f32.xlu0 %v8295_v33 }
0x17b1   :  { %8305 = vmax.xlane.f32.xlu1 %v8296_v55  ;;  %8279 = vmax.xlane.f32.xlu0 %v8270_v35 }
0x17b5   :  { %v10003_v57 = vpop.eup %10002 }
0x17b6   :  { %v8109_v53 = vmul.f32 %v10003_v57, %v8108_v32 }
0x17b8   :  { %v8111_v36 = vadd.f32 %v8110_v39, %v8109_v53 }
0x17ba   :  { %v8124_v12 = vpack.c.bf16 %v8111_v36, %v12567_v3 }
0x17bc   :  { %9368 = vmatmul.mubr.bf16.gmra.mxu0 %v8124_v12 }
0x182e   :  { %v8308_v24 = vpop.xlane.xlu0 %8307  ;;  %v8282_v26 = vpop.xlane.xlu1 %8281 }
0x182f   :  { %v8321_v9 = vsel %vm8263_vm2, %v8282_v26, %v8308_v24 }
0x1830   :  { %v8330_v3 = vsub.f32 %v8239_v51, %v8321_v9 }
0x1832   :  { %v8284_v29 = vpop.xlane.xlu1 %8283  ;;  %v8278_v34 = vpop.xlane.xlu0 %8277  ;;  %v8340_v10 = vmul.f32 1.442695, %v8330_v3 }
0x1836   :  { %v8310_v46 = vpop.xlane.xlu1 %8309  ;;  %v8304_v4 = vpop.xlane.xlu0 %8303 }
0x1837   :  { %v8319_v0 = vsel %vm8263_vm2, %v8278_v34, %v8304_v4  ;;  %v8322_v43 = vsel %vm8263_vm2, %v8284_v29, %v8310_v46 }
0x1838   :  { %v8328_v31 = vsub.f32 %v8231_v6, %v8319_v0  ;;  %v8331_v13 = vsub.f32 %v8242_v17, %v8322_v43 }
0x183a   :  { %v8306_v48 = vpop.xlane.xlu1 %8305  ;;  %v8280_v49 = vpop.xlane.xlu0 %8279  ;;  %v8336_v54 = vmul.f32 1.442695, %v8328_v31  ;;  %v8342_v27 = vmul.f32 1.442695, %v8331_v13 }
0x183b   :  { %v8320_v50 = vsel %vm8263_vm2, %v8280_v49, %v8306_v48 }
0x183c   :  { %v8329_v47 = vsub.f32 %v8234_v19, %v8320_v50  ;;  %10004 = vpow2.f32 %v8336_v54 }
0x183d   :  { %10006 = vpow2.f32 %v8340_v10 }
0x183e   :  { %v8338_v61 = vmul.f32 1.442695, %v8329_v47 }
0x1840   :  { %10008 = vpow2.f32 %v8338_v61 }
0x1841   :  { %10010 = vpow2.f32 %v8342_v27 }
0x1849   :  { %v10005_v25 = vpop.eup %10004 }
0x184a   :  { %v10007_v18 = vpop.eup %10006  ;;  %v12686_v28 = vsel %vm12680_vm4, %v10005_v25, 0.0 }
0x184b   :  { %v8362_v6 = vsel %vm8263_vm2, %v12686_v28, 0.0  ;;  %v12696_v23 = vsel %vm12680_vm4, %v10007_v18, 0.0  ;;  %v8386_v11 = vsel %vm12615_vm3, %v12686_v28, 0.0 }
0x184c   :  { %v8364_v21 = vsel %vm8263_vm2, %v12696_v23, 0.0  ;;  %v8388_v19 = vsel %vm12615_vm3, %v12696_v23, 0.0 }
0x184d   :  { %v10009_v59 = vpop.eup %10008 }
0x184e   :  { %v12700_v16 = vsel %vm12680_vm4, %v10009_v59, 0.0  ;;  %v10011_v38 = vpop.eup %10010 }
0x184f   :  { %v8363_v17 = vsel %vm8263_vm2, %v12700_v16, 0.0  ;;  %v12710_v41 = vsel %vm12680_vm4, %v10011_v38, 0.0  ;;  %v8387_v30 = vsel %vm12615_vm3, %v12700_v16, 0.0 }
0x1850   :  { %v8365_v2 = vsel %vm8263_vm2, %v12710_v41, 0.0  ;;  %v8389_v33 = vsel %vm12615_vm3, %v12710_v41, 0.0 }
0x187c   :  { %v9369_v20 = vpop.f32.mrf.mxu0 }
0x187d   :  { %v12652_v15 = vadd.f32 %v9369_v20, %v12610_v22 }
0x187e   :  { %v8246_v52 = vpop.f32.mrf.mxu0 }
0x187f   :  { %v8247_v5 = vadd.f32 %v12610_v22, %v8246_v52  ;;  %v8275_v42 = vsel %vm8263_vm2, %v12652_v15, -1e+30  ;;  %v8301_v37 = vsel %vm12615_vm3, %v12652_v15, -1e+30 }
0x1880   :  { %v9370_v45 = vpop.f32.mrf.mxu0  ;;  %8289 = vmax.xlane.f32.xlu0 %v8275_v42 }
0x1881   :  { %v12659_v1 = vadd.f32 %v9370_v45, %v12610_v22  ;;  %v8273_v58 = vsel %vm8263_vm2, %v8247_v5, -1e+30  ;;  %v8299_v60 = vsel %vm12615_vm3, %v8247_v5, -1e+30 }
0x1882   :  { %v8249_v8 = vpop.f32.mrf.mxu0 }
0x1883   :  { %v8250_v62 = vadd.f32 %v12610_v22, %v8249_v8  ;;  %v8276_v40 = vsel %vm8263_vm2, %v12659_v1, -1e+30  ;;  %v8302_v7 = vsel %vm12615_vm3, %v12659_v1, -1e+30 }
0x1884   :  { %8291 = vmax.xlane.f32.xlu1 %v8276_v40  ;;  %8285 = vmax.xlane.f32.xlu0 %v8273_v58 }
0x1885   :  { %v8274_v14 = vsel %vm8263_vm2, %v8250_v62, -1e+30  ;;  %v8300_v22 = vsel %vm12615_vm3, %v8250_v62, -1e+30 }
0x1888   :  { %8287 = vmax.xlane.f32.xlu1 %v8274_v14  ;;  %8311 = vmax.xlane.f32.xlu0 %v8299_v60 }
0x188c   :  { %8313 = vmax.xlane.f32.xlu1 %v8300_v22  ;;  %8315 = vmax.xlane.f32.xlu0 %v8301_v37 }
0x1890   :  { %8317 = vmax.xlane.f32.xlu1 %v8302_v7  ;;  %8370 = vadd.xlane.f32.xlu0 %v8362_v6 }
0x1894   :  { %8374 = vadd.xlane.f32.xlu0 %v8364_v21  ;;  %8372 = vadd.xlane.f32.xlu1 %v8363_v17 }
0x1898   :  { %8394 = vadd.xlane.f32.xlu0 %v8386_v11  ;;  %8376 = vadd.xlane.f32.xlu1 %v8365_v2 }
0x189c   :  { %8398 = vadd.xlane.f32.xlu0 %v8388_v19  ;;  %8396 = vadd.xlane.f32.xlu1 %v8387_v30 }
0x18a0   :  { %8400 = vadd.xlane.f32.xlu1 %v8389_v33 }
0x1909   :  { %v8290_v44 = vpop.xlane.xlu0 %8289 }
0x190d   :  { %v8292_v55 = vpop.xlane.xlu1 %8291  ;;  %v8286_v35 = vpop.xlane.xlu0 %8285 }
0x1911   :  { %v8288_v32 = vpop.xlane.xlu1 %8287  ;;  %v8312_v57 = vpop.xlane.xlu0 %8311 }
0x1912   :  { %v8323_v53 = vsel %vm8263_vm2, %v8286_v35, %v8312_v57 }
0x1913   :  { %v8332_v39 = vsub.f32 %v8247_v5, %v8323_v53 }
0x1915   :  { %v8314_v36 = vpop.xlane.xlu1 %8313  ;;  %v8316_v12 = vpop.xlane.xlu0 %8315  ;;  %v8344_v29 = vmul.f32 1.442695, %v8332_v39 }
0x1916   :  { %v8324_v24 = vsel %vm8263_vm2, %v8288_v32, %v8314_v36  ;;  %v8325_v26 = vsel %vm8263_vm2, %v8290_v44, %v8316_v12 }
0x1917   :  { %v8333_v34 = vsub.f32 %v8250_v62, %v8324_v24  ;;  %v8334_v46 = vsub.f32 %v12652_v15, %v8325_v26  ;;  %10012 = vpow2.f32 %v8344_v29 }
0x1919   :  { %v8348_v4 = vmul.f32 1.442695, %v8334_v46  ;;  %v8318_v0 = vpop.xlane.xlu1 %8317  ;;  %v8371_v48 = vpop.xlane.xlu0 %8370  ;;  %v8346_v49 = vmul.f32 1.442695, %v8333_v34 }
0x191a   :  { %v8326_v9 = vsel %vm8263_vm2, %v8292_v55, %v8318_v0 }
0x191b   :  { %v8335_v31 = vsub.f32 %v12659_v1, %v8326_v9  ;;  %10014 = vpow2.f32 %v8348_v4 }
0x191c   :  { %10016 = vpow2.f32 %v8346_v49 }
0x191d   :  { %v8350_v50 = vmul.f32 1.442695, %v8335_v31  ;;  %v8373_v3 = vpop.xlane.xlu1 %8372  ;;  %v8375_v54 = vpop.xlane.xlu0 %8374 }
0x191f   :  { %10018 = vpow2.f32 %v8350_v50 }
0x1921   :  { %v8377_v47 = vpop.xlane.xlu1 %8376  ;;  %v8395_v43 = vpop.xlane.xlu0 %8394 }
0x1922   :  { %v8410_v10 = vsel %vm8263_vm2, %v8371_v48, %v8395_v43 }
0x1923   :  { %10020 = vrcp.f32 %v8410_v10 }
0x1924   :  { %v10013_v52 = vpop.eup %10012 }
0x1925   :  { %v8397_v13 = vpop.xlane.xlu1 %8396  ;;  %v8399_v61 = vpop.xlane.xlu0 %8398  ;;  %v8358_v40 = vsel %vm12680_vm4, %v10013_v52, 0.0 }
0x1926   :  { %v8411_v20 = vsel %vm8263_vm2, %v8373_v3, %v8397_v13  ;;  %v8412_v15 = vsel %vm8263_vm2, %v8375_v54, %v8399_v61  ;;  %v8366_v60 = vsel %vm8263_vm2, %v8358_v40, 0.0  ;;  %v8390_v59 = vsel %vm12615_vm3, %v8358_v40, 0.0 }
0x1927   :  { %10022 = vrcp.f32 %v8411_v20 }
0x1928   :  { %10024 = vrcp.f32 %v8412_v15  ;;  %v10015_v5 = vpop.eup %10014 }
0x1929   :  { %v8401_v42 = vpop.xlane.xlu1 %8400  ;;  %v8360_v45 = vsel %vm12680_vm4, %v10015_v5, 0.0  ;;  %v10017_v1 = vpop.eup %10016 }
0x192a   :  { %v8413_v27 = vsel %vm8263_vm2, %v8377_v47, %v8401_v42  ;;  %v8368_v8 = vsel %vm8263_vm2, %v8360_v45, 0.0  ;;  %v8359_v25 = vsel %vm12680_vm4, %v10017_v1, 0.0  ;;  %v8392_v21 = vsel %vm12615_vm3, %v8360_v45, 0.0 }
0x192b   :  { %10026 = vrcp.f32 %v8413_v27  ;;  %8382 = vadd.xlane.f32.xlu0 %v8368_v8  ;;  %v8367_v18 = vsel %vm8263_vm2, %v8359_v25, 0.0 }
0x192c   :  { %v10019_v62 = vpop.eup %10018 }
0x192d   :  { %v8361_v58 = vsel %vm12680_vm4, %v10019_v62, 0.0 }
0x192e   :  { %v8369_v14 = vsel %vm8263_vm2, %v8361_v58, 0.0 }
0x192f   :  { %8384 = vadd.xlane.f32.xlu1 %v8369_v14  ;;  %8378 = vadd.xlane.f32.xlu0 %v8366_v60 }
0x1930   :  { %v10021_v22 = vpop.eup %10020 }
0x1931   :  { %v8419_v37 = vmul.f32 %v10021_v22, %v12686_v28  ;;  %v8391_v28 = vsel %vm12615_vm3, %v8359_v25, 0.0 }
0x1933   :  { %8434 = vst [vmem:[%s12815_s10] sm:$0xff] %v8419_v37  ;;  %8380 = vadd.xlane.f32.xlu1 %v8367_v18  ;;  %8402 = vadd.xlane.f32.xlu0 %v8390_v59 }
0x1934   :  { %v10023_v7 = vpop.eup %10022 }
0x1935   :  { %v10025_v6 = vpop.eup %10024  ;;  %v8421_v51 = vmul.f32 %v10023_v7, %v12700_v16 }
0x1936   :  { %v8423_v38 = vmul.f32 %v10025_v6, %v12696_v23  ;;  %v8393_v23 = vsel %vm12615_vm3, %v8361_v58, 0.0 }
0x1937   :  { %8435 = vst [vmem:[%s12815_s10 + $0x8] sm:$0xff] %v8421_v51  ;;  %8404 = vadd.xlane.f32.xlu1 %v8391_v28  ;;  %8406 = vadd.xlane.f32.xlu0 %v8392_v21 }
0x1938   :  { %v10027_v17 = vpop.eup %10026  ;;  %8436 = vst [vmem:[%s12815_s10 + $0x10] sm:$0xff] %v8423_v38 }
0x1939   :  { %v8425_v16 = vmul.f32 %v10027_v17, %v12710_v41 }
0x193b   :  { %8437 = vst [vmem:[%s12815_s10 + $0x18] sm:$0xff] %v8425_v16  ;;  %8408 = vadd.xlane.f32.xlu1 %v8393_v23 }
0x19b4   :  { %v8383_v11 = vpop.xlane.xlu0 %8382 }
0x19b8   :  { %v8385_v2 = vpop.xlane.xlu1 %8384  ;;  %v8379_v19 = vpop.xlane.xlu0 %8378 }
0x19bc   :  { %v8381_v30 = vpop.xlane.xlu1 %8380  ;;  %v8403_v33 = vpop.xlane.xlu0 %8402 }
0x19bd   :  { %v8414_v44 = vsel %vm8263_vm2, %v8379_v19, %v8403_v33 }
0x19be   :  { %10028 = vrcp.f32 %v8414_v44 }
0x19c0   :  { %v8405_v55 = vpop.xlane.xlu1 %8404  ;;  %v8407_v63 = vpop.xlane.xlu0 %8406 }
0x19c1   :  { %v8415_v41 = vsel %vm8263_vm2, %v8381_v30, %v8405_v55  ;;  %v8416_v35 = vsel %vm8263_vm2, %v8383_v11, %v8407_v63 }
0x19c2   :  { %10030 = vrcp.f32 %v8415_v41 }
0x19c3   :  { %10032 = vrcp.f32 %v8416_v35 }
0x19c4   :  { %v8409_v32 = vpop.xlane.xlu1 %8408 }
0x19c5   :  { %v8417_v57 = vsel %vm8263_vm2, %v8385_v2, %v8409_v32 }
0x19c6   :  { %10034 = vrcp.f32 %v8417_v57 }
0x19cb   :  { %v10029_v53 = vpop.eup %10028 }
0x19cc   :  { %v8427_v39 = vmul.f32 %v10029_v53, %v8358_v40 }
0x19ce   :  { %8438 = vst [vmem:[%s12815_s10 + $0x20] sm:$0xff] %v8427_v39 }
0x19cf   :  { %v10031_v36 = vpop.eup %10030 }
0x19d0   :  { %v10033_v12 = vpop.eup %10032  ;;  %v8429_v24 = vmul.f32 %v10031_v36, %v8359_v25 }
0x19d1   :  { %v8431_v26 = vmul.f32 %v10033_v12, %v8360_v45 }
0x19d2   :  { %8439 = vst [vmem:[%s12815_s10 + $0x28] sm:$0xff] %v8429_v24 }
0x19d3   :  { %v10035_v29 = vpop.eup %10034  ;;  %8440 = vst [vmem:[%s12815_s10 + $0x30] sm:$0xff] %v8431_v26 }
0x19d4   :  { %v8433_v56 = vmul.f32 %v10035_v29, %v8361_v58 }
0x19d6   :  { %8441 = vst [vmem:[%s12815_s10 + $0x38] sm:$0xff] %v8433_v56 }

</bundles_post_ra>
